<compile_context>
chip_gen: v7x
topology: tpu7x:2x2x1
jax: 0.10.0
libtpu: 0.0.40
codegen_flags: <defaults>
</compile_context>

<pallas_src>
import jax
import jax.numpy as jnp
from jax.experimental import pallas as pl
from jax.experimental.pallas import tpu as pltpu

EPS = 1e-5
LANE = 128


# ------------------------------ kernels ----------------------------------
def _emit_stats(st_ref, y_f32):
    # Per-channel sum and sum-of-squares for this tile, emitted with ONE store.
    # Always computed from the f32 accumulator (before any bf16 cast).
    s = jnp.sum(y_f32, axis=0)
    ss = jnp.sum(y_f32 * y_f32, axis=0)
    st_ref[...] = jnp.stack([s, ss], axis=0).reshape(st_ref.shape)


def conv1_kernel(x_ref, w_ref, y_ref, st_ref):
    # 1x1 conv == row-wise matmul (conv bias omitted: cancelled by BN).
    _, TH, W, Cin = x_ref.shape
    x2 = x_ref[...].reshape(TH * W, Cin)                     # already bf16
    y = jnp.dot(x2, w_ref[...], preferred_element_type=jnp.float32)
    y_ref[...] = y.astype(jnp.bfloat16).reshape(1, TH, W, -1)
    _emit_stats(st_ref, y)


def conv2_kernel(y1_ref, sc_ref, sh_ref, w_ref, y_ref, st_ref, pad_ref):
    # BN1-apply + ReLU, then 3x3 conv (stride=1, pad=1).
    # No full im2col materialization: per kernel row (dy) concatenate the 3
    # dx-shifted windows (K = 3*C) and accumulate 3 matmuls in f32.
    _, H, W, C = y1_ref.shape
    a = y1_ref[...].reshape(H * W, C).astype(jnp.float32)
    a = jnp.maximum(a * sc_ref[...] + sh_ref[...], 0.0)
    a = a.reshape(H, W, C).astype(jnp.bfloat16)

    # Halo scratch (H+2, W+2, C): zero only the 1-wide border every step
    # (do NOT move this under pl.when(first step): scratch is per-core).
    pad_ref[0:1, :, :] = jnp.zeros((1, W + 2, C), jnp.bfloat16)
    pad_ref[H + 1:H + 2, :, :] = jnp.zeros((1, W + 2, C), jnp.bfloat16)
    pad_ref[:, 0:1, :] = jnp.zeros((H + 2, 1, C), jnp.bfloat16)
    pad_ref[:, W + 1:W + 2, :] = jnp.zeros((H + 2, 1, C), jnp.bfloat16)
    pad_ref[1:H + 1, 1:W + 1, :] = a

    acc = None
    for dy in range(3):                                      # static unroll
        slab = pad_ref[dy:dy + H, :, :]                      # (H, W+2, C)
        patches = jnp.concatenate(
            [slab[:, dx:dx + W, :] for dx in range(3)], axis=-1)
        part = jnp.dot(patches.reshape(H * W, 3 * C),
                       w_ref[dy * 3 * C:(dy + 1) * 3 * C, :],
                       preferred_element_type=jnp.float32)
        acc = part if acc is None else acc + part
    y_ref[...] = acc.astype(jnp.bfloat16).reshape(1, H, W, -1)
    _emit_stats(st_ref, acc)


def conv3_kernel(y2_ref, sc_ref, sh_ref, w_ref, y_ref, st_ref):
    # BN2-apply + ReLU, then 1x1 conv.
    _, TH, W, C = y2_ref.shape
    a = y2_ref[...].reshape(TH * W, C).astype(jnp.float32)
    a = jnp.maximum(a * sc_ref[...] + sh_ref[...], 0.0)
    y = jnp.dot(a.astype(jnp.bfloat16), w_ref[...],
                preferred_element_type=jnp.float32)
    y_ref[...] = y.astype(jnp.bfloat16).reshape(1, TH, W, -1)
    _emit_stats(st_ref, y)


def residual_kernel(y3_ref, x_ref, sc_ref, sh_ref, o_ref):
    # BN3-apply + shortcut add + ReLU (x re-read here, bf16 in HBM, f32 math).
    _, TH, W, C = y3_ref.shape
    y = y3_ref[...].reshape(TH * W, C).astype(jnp.float32) * sc_ref[...] + sh_ref[...]
    out = jnp.maximum(y + x_ref[...].reshape(TH * W, C).astype(jnp.float32), 0.0)
    o_ref[...] = out.reshape(1, TH, W, C)


# ------------------------------ wrapper -----------------------------------
def _round_up(x, m):
    return ((x + m - 1) // m) * m


def _pad_axis(a, axis, target):
    pad = target - a.shape[axis]
    if pad <= 0:
        return a
    widths = [(0, 0)] * a.ndim
    widths[axis] = (0, pad)
    return jnp.pad(a, widths)


def _vmem_limit_bytes():
    # ~half of physical VMEM, capped at 64 MiB:
    # v5e/v6e (128 MiB) -> 64 MiB, v7x (64 MiB) -> 32 MiB.
    default = 64 * 1024 * 1024
    try:
        cap = int(getattr(pltpu.get_tpu_info(), "vmem_capacity_bytes", default))
    except Exception:
        cap = default
    return int(min(max(cap // 2, 16 * 1024 * 1024), 64 * 1024 * 1024))


def _pick_row_tile(H, W):
    # ~2048 spatial positions per grid step (good matmul M-dim, bounded VMEM);
    # TH must divide H for block tiling.
    th = max(1, min(H, 2048 // max(W, 1)))
    while H % th:
        th -= 1
    return th


def bottleneck_forward(x_nchw, params):
    """x_nchw: (N, Cin, H, W) float32; params as produced by init_params."""
    (w1, _b1, g1, be1, w2, _b2, g2, be2, w3, _b3, g3, be3) = params
    # Conv biases are exactly cancelled by the training-mode BN mean
    # subtraction that follows each conv, so the kernels skip them.

    x = jnp.transpose(x_nchw, (0, 2, 3, 1))                       # NHWC
    N, H, W, Cin = x.shape
    Cmid = w1.shape[1]
    Cout = w3.shape[1]
    assert Cin == Cout, "residual add requires in_channels == out_channels * 4"
    # TODO(synk): stride > 1 and a non-None downsample branch are not implemented.

    Cin_p = _round_up(Cin, LANE)
    Cm_p = _round_up(Cmid, LANE)
    Co_p = _round_up(Cout, LANE)

    # Lane-dense zero padding; activations/weights bf16, all accumulation f32.
    x_p = _pad_axis(x, 3, Cin_p).astype(jnp.bfloat16)
    w1_p = _pad_axis(_pad_axis(w1, 0, Cin_p), 1, Cm_p).astype(jnp.bfloat16)
    w2_p = _pad_axis(_pad_axis(w2, 1, Cm_p), 2, Cm_p)
    w2_p = w2_p.reshape(9 * Cm_p, Cm_p).astype(jnp.bfloat16)
    w3_p = _pad_axis(_pad_axis(w3, 0, Cm_p), 1, Co_p).astype(jnp.bfloat16)
    g1p, be1p = [_pad_axis(v.reshape(-1), 0, Cm_p) for v in (g1, be1)]
    g2p, be2p = [_pad_axis(v.reshape(-1), 0, Cm_p) for v in (g2, be2)]
    g3p, be3p = [_pad_axis(v.reshape(-1), 0, Co_p) for v in (g3, be3)]

    count = float(N * H * W)
    vmem = _vmem_limit_bytes()
    TH = _pick_row_tile(H, W)
    n_th = H // TH

    def cparams(n_axes):
        return pltpu.CompilerParams(
            dimension_semantics=("parallel",) * n_axes,
            vmem_limit_bytes=vmem)

    def bn_scale_shift(stats, gamma, beta):
        # Fold batch mean / biased variance + gamma/beta into scale & shift.
        tot = jnp.sum(stats.reshape(-1, 2, stats.shape[-1]), axis=0)
        mean = tot[0] / count
        var = tot[1] / count - mean * mean
        scale = gamma * jax.lax.rsqrt(var + EPS)
        shift = beta - mean * scale
        return scale.reshape(1, -1), shift.reshape(1, -1)

    # BlockSpecs for the row-tiled (n, t) grids.
    tile = lambda c: pl.BlockSpec((1, TH, W, c), lambda n, t: (n, t, 0, 0))
    vec2 = lambda c: pl.BlockSpec((1, c), lambda n, t: (0, 0))
    mat2 = lambda r, c: pl.BlockSpec((r, c), lambda n, t: (0, 0))
    stat2 = lambda c: pl.BlockSpec((1, 1, 2, c), lambda n, t: (n, t, 0, 0))

    # ---- K1: conv1 (1x1) + stats  (grid = (N, H/TH)) ------------------------
    y1, st1 = pl.pallas_call(
        conv1_kernel,
        out_shape=(jax.ShapeDtypeStruct((N, H, W, Cm_p), jnp.bfloat16),
                   jax.ShapeDtypeStruct((N, n_th, 2, Cm_p), jnp.float32)),
        grid=(N, n_th),
        in_specs=[tile(Cin_p), mat2(Cin_p, Cm_p)],
        out_specs=(tile(Cm_p), stat2(Cm_p)),
        compiler_params=cparams(2),
    )(x_p, w1_p)
    sc1, sh1 = bn_scale_shift(st1, g1p, be1p)

    # ---- K2: BN1+ReLU + conv2 (3x3) + stats  (grid = (N,)) ------------------
    # TODO(synk): row-tiling K2 needs a 1-row halo exchange between tiles;
    # kept at one whole image per grid step for now.
    img = lambda c: pl.BlockSpec((1, H, W, c), lambda n: (n, 0, 0, 0))
    vec1 = lambda c: pl.BlockSpec((1, c), lambda n: (0, 0))
    mat1 = lambda r, c: pl.BlockSpec((r, c), lambda n: (0, 0))
    stat1 = lambda c: pl.BlockSpec((1, 2, c), lambda n: (n, 0, 0))

    y2, st2 = pl.pallas_call(
        conv2_kernel,
        out_shape=(jax.ShapeDtypeStruct((N, H, W, Cm_p), jnp.bfloat16),
                   jax.ShapeDtypeStruct((N, 2, Cm_p), jnp.float32)),
        grid=(N,),
        in_specs=[img(Cm_p), vec1(Cm_p), vec1(Cm_p), mat1(9 * Cm_p, Cm_p)],
        out_specs=(img(Cm_p), stat1(Cm_p)),
        scratch_shapes=[pltpu.VMEM((H + 2, W + 2, Cm_p), jnp.bfloat16)],
        compiler_params=cparams(1),
    )(y1, sc1, sh1, w2_p)
    sc2, sh2 = bn_scale_shift(st2, g2p, be2p)

    # ---- K3: BN2+ReLU + conv3 (1x1) + stats ---------------------------------
    y3, st3 = pl.pallas_call(
        conv3_kernel,
        out_shape=(jax.ShapeDtypeStruct((N, H, W, Co_p), jnp.bfloat16),
                   jax.ShapeDtypeStruct((N, n_th, 2, Co_p), jnp.float32)),
        grid=(N, n_th),
        in_specs=[tile(Cm_p), vec2(Cm_p), vec2(Cm_p), mat2(Cm_p, Co_p)],
        out_specs=(tile(Co_p), stat2(Co_p)),
        compiler_params=cparams(2),
    )(y2, sc2, sh2, w3_p)
    sc3, sh3 = bn_scale_shift(st3, g3p, be3p)

    # ---- K4: BN3 + residual + ReLU ------------------------------------------
    out_p = pl.pallas_call(
        residual_kernel,
        out_shape=jax.ShapeDtypeStruct((N, H, W, Co_p), jnp.float32),
        grid=(N, n_th),
        in_specs=[tile(Co_p), tile(Cin_p), vec2(Co_p), vec2(Co_p)],
        out_specs=tile(Co_p),
        compiler_params=cparams(2),
    )(y3, x_p, sc3, sh3)

    return jnp.transpose(out_p[..., :Cout], (0, 3, 1, 2))          # back to NCHW


# ------------------------- pure-JAX reference ----------------------------
def bottleneck_ref(x_nchw, params):
    x = jnp.transpose(x_nchw, (0, 2, 3, 1)).astype(jnp.float32)
    (w1, b1, g1, be1, w2, b2, g2, be2, w3, b3, g3, be3) = params

    def bn(h, g, b):
        mean = jnp.mean(h, axis=(0, 1, 2), keepdims=True)
        var = jnp.mean((h - mean) ** 2, axis=(0, 1, 2), keepdims=True)
        return (h - mean) * jax.lax.rsqrt(var + EPS) * g.reshape(1, 1, 1, -1) \
            + b.reshape(1, 1, 1, -1)

    h = jnp.einsum('nhwc,cd->nhwd', x, w1) + b1.reshape(1, 1, 1, -1)
    h = jax.nn.relu(bn(h, g1, be1))
    w2_hwio = w2.reshape(3, 3, w2.shape[1], w2.shape[2])
    h = jax.lax.conv_general_dilated(
        h, w2_hwio, window_strides=(1, 1), padding='SAME',
        dimension_numbers=('NHWC', 'HWIO', 'NHWC')) + b2.reshape(1, 1, 1, -1)
    h = jax.nn.relu(bn(h, g2, be2))
    h = jnp.einsum('nhwc,cd->nhwd', h, w3) + b3.reshape(1, 1, 1, -1)
    h = bn(h, g3, be3)
    out = jax.nn.relu(h + x)
    return jnp.transpose(out, (0, 3, 1, 2))


# ------------------------- deterministic params --------------------------
def init_params(key, in_channels, out_channels):
    cmid = out_channels
    cout = out_channels * 4  # expansion = 4
    ks = jax.random.split(key, 6)
    w1 = jax.random.normal(ks[0], (in_channels, cmid), jnp.float32) * 0.1
    b1 = jax.random.normal(ks[1], (1, cmid), jnp.float32) * 0.1
    w2 = jax.random.normal(ks[2], (9, cmid, cmid), jnp.float32) * 0.1
    b2 = jax.random.normal(ks[3], (1, cmid), jnp.float32) * 0.1
    w3 = jax.random.normal(ks[4], (cmid, cout), jnp.float32) * 0.1
    b3 = jax.random.normal(ks[5], (1, cout), jnp.float32) * 0.1
    g1, be1 = jnp.ones((1, cmid)), jnp.zeros((1, cmid))
    g2, be2 = jnp.ones((1, cmid)), jnp.zeros((1, cmid))
    g3, be3 = jnp.ones((1, cout)), jnp.zeros((1, cout))
    return (w1, b1, g1, be1, w2, b2, g2, be2, w3, b3, g3, be3)


if __name__ == "__main__":
    key = jax.random.PRNGKey(0)
    k_param, k_x = jax.random.split(key)

    out_channels = 8                      # Cmid
    in_channels = out_channels * 4        # = Cout, so the residual add is valid
    N, H, W = 2, 16, 16

    params = init_params(k_param, in_channels, out_channels)
    x = jax.random.normal(k_x, (N, in_channels, H, W), jnp.float32)

    fwd = jax.jit(bottleneck_forward)
    out_kernel = jax.block_until_ready(fwd(x, params))
    out_ref = jax.block_until_ready(bottleneck_ref(x, params))

    assert out_kernel.shape == (N, in_channels, H, W)
    max_err = float(jnp.max(jnp.abs(out_kernel - out_ref)))
    # bf16 intermediate activations + bf16 MXU operands (f32 accumulation)
    # vs the pure-f32 reference.
    if max_err > 1e-1:
        raise AssertionError(f"mismatch vs reference, max_err={max_err}")
    print("KERNEL_OK")
</pallas_src>

<mosaic_0001>
module attributes {stable_mosaic.version = 11 : i64} {
  func.func @conv1_kernel(%arg0: i32, %arg1: i32, %arg2: memref<1x16x16x128xbf16, #tpu.memory_space<vmem>>, %arg3: memref<128x128xbf16, #tpu.memory_space<vmem>>, %arg4: memref<1x16x16x128xbf16, #tpu.memory_space<vmem>>, %arg5: memref<1x1x2x128xf32, #tpu.memory_space<vmem>>) attributes {dimension_semantics = [#tpu.dimension_semantics<parallel>, #tpu.dimension_semantics<parallel>], iteration_bounds = array<i64: 2, 1>, scalar_prefetch = 0 : i64, scratch_operands = 0 : i64, tpu.core_type = #tpu.core_type<tc>, window_params = [{transform_indices = @transform_0, window_bounds = array<i64: 1, 16, 16, 128>}, {pipeline_mode = #tpu.pipeline_mode<synchronous>, transform_indices = @transform_1, window_bounds = array<i64: 128, 128>}, {transform_indices = @transform_2, window_bounds = array<i64: 1, 16, 16, 128>}, {transform_indices = @transform_3, window_bounds = array<i64: 1, 1, 2, 128>}]} {
    %c0 = arith.constant 0 : index
    %c0_0 = arith.constant 0 : index
    %c0_1 = arith.constant 0 : index
    %c0_2 = arith.constant 0 : index
    %0 = vector.load %arg2[%c0, %c0_0, %c0_1, %c0_2] : memref<1x16x16x128xbf16, #tpu.memory_space<vmem>>, vector<1x16x16x128xbf16>
    %1 = vector.shape_cast %0 : vector<1x16x16x128xbf16> to vector<256x128xbf16>
    %c0_3 = arith.constant 0 : index
    %c0_4 = arith.constant 0 : index
    %2 = vector.load %arg3[%c0_3, %c0_4] : memref<128x128xbf16, #tpu.memory_space<vmem>>, vector<128x128xbf16>
    %cst = arith.constant dense<0.000000e+00> : vector<256x128xf32>
    %3 = tpu.matmul %1, %2, %cst {dimension_numbers = #tpu.dot_dimension_numbers<[1], [0], [0], [1], [0, 0, 1, 1], [], []>} : vector<256x128xbf16>, vector<128x128xbf16>, vector<256x128xf32> -> vector<256x128xf32>
    %4 = arith.truncf %3 : vector<256x128xf32> to vector<256x128xbf16>
    %5 = vector.shape_cast %4 : vector<256x128xbf16> to vector<1x16x16x128xbf16>
    %c0_5 = arith.constant 0 : index
    %c0_6 = arith.constant 0 : index
    %c0_7 = arith.constant 0 : index
    %c0_8 = arith.constant 0 : index
    %6 = vector.load %arg4[%c0_5, %c0_6, %c0_7, %c0_8] : memref<1x16x16x128xbf16, #tpu.memory_space<vmem>>, vector<1x16x16x128xbf16>
    tpu.vector_store %arg4[%c0_5, %c0_6, %c0_7, %c0_8], %5 {strides = array<i32>} : memref<1x16x16x128xbf16, #tpu.memory_space<vmem>>, vector<1x16x16x128xbf16>,
    %cst_9 = arith.constant dense<0.000000e+00> : vector<128xf32>
    %7 = vector.multi_reduction <add>, %3, %cst_9 [0] : vector<256x128xf32> to vector<128xf32>
    %8 = arith.mulf %3, %3 : vector<256x128xf32>
    %cst_10 = arith.constant dense<0.000000e+00> : vector<128xf32>
    %9 = vector.multi_reduction <add>, %8, %cst_10 [0] : vector<256x128xf32> to vector<128xf32>
    %10 = vector.shape_cast %7 : vector<128xf32> to vector<1x128xf32>
    %11 = vector.shape_cast %9 : vector<128xf32> to vector<1x128xf32>
    %12 = tpu.concatenate %10, %11 in 0 : vector<1x128xf32>, vector<1x128xf32> -> vector<2x128xf32>
    %13 = vector.shape_cast %12 : vector<2x128xf32> to vector<1x1x2x128xf32>
    %c0_11 = arith.constant 0 : index
    %c0_12 = arith.constant 0 : index
    %c0_13 = arith.constant 0 : index
    %c0_14 = arith.constant 0 : index
    %14 = vector.load %arg5[%c0_11, %c0_12, %c0_13, %c0_14] : memref<1x1x2x128xf32, #tpu.memory_space<vmem>>, vector<1x1x2x128xf32>
    tpu.vector_store %arg5[%c0_11, %c0_12, %c0_13, %c0_14], %13 {strides = array<i32>} : memref<1x1x2x128xf32, #tpu.memory_space<vmem>>, vector<1x1x2x128xf32>,
    return
  }
  func.func @transform_0(%arg0: i32, %arg1: i32) -> (i32, i32, i32, i32) {
    %c0_i32 = arith.constant 0 : i32
    %c0_i32_0 = arith.constant 0 : i32
    %c0_i32_1 = arith.constant 0 : i32
    return %arg0, %arg1, %c0_i32, %c0_i32_0 : i32, i32, i32, i32
  }
  func.func @transform_1(%arg0: i32, %arg1: i32) -> (i32, i32) {
    %c0_i32 = arith.constant 0 : i32
    %c0_i32_0 = arith.constant 0 : i32
    %c0_i32_1 = arith.constant 0 : i32
    return %c0_i32, %c0_i32_0 : i32, i32
  }
  func.func @transform_2(%arg0: i32, %arg1: i32) -> (i32, i32, i32, i32) {
    %c0_i32 = arith.constant 0 : i32
    %c0_i32_0 = arith.constant 0 : i32
    %c0_i32_1 = arith.constant 0 : i32
    return %arg0, %arg1, %c0_i32, %c0_i32_0 : i32, i32, i32, i32
  }
  func.func @transform_3(%arg0: i32, %arg1: i32) -> (i32, i32, i32, i32) {
    %c0_i32 = arith.constant 0 : i32
    %c0_i32_0 = arith.constant 0 : i32
    %c0_i32_1 = arith.constant 0 : i32
    return %arg0, %arg1, %c0_i32, %c0_i32_0 : i32, i32, i32, i32
  }
}

module attributes {stable_mosaic.version = 11 : i64} {
  func.func @conv2_kernel(%arg0: i32, %arg1: memref<1x16x16x128xbf16, #tpu.memory_space<vmem>>, %arg2: memref<1x128xf32, #tpu.memory_space<vmem>>, %arg3: memref<1x128xf32, #tpu.memory_space<vmem>>, %arg4: memref<1152x128xbf16, #tpu.memory_space<vmem>>, %arg5: memref<1x16x16x128xbf16, #tpu.memory_space<vmem>>, %arg6: memref<1x2x128xf32, #tpu.memory_space<vmem>>, %arg7: memref<18x18x128xbf16, #tpu.memory_space<vmem>>) attributes {dimension_semantics = [#tpu.dimension_semantics<parallel>], iteration_bounds = array<i64: 2>, scalar_prefetch = 0 : i64, scratch_operands = 1 : i64, tpu.core_type = #tpu.core_type<tc>, window_params = [{transform_indices = @transform_0, window_bounds = array<i64: 1, 16, 16, 128>}, {pipeline_mode = #tpu.pipeline_mode<synchronous>, transform_indices = @transform_1, window_bounds = array<i64: 1, 128>}, {pipeline_mode = #tpu.pipeline_mode<synchronous>, transform_indices = @transform_2, window_bounds = array<i64: 1, 128>}, {pipeline_mode = #tpu.pipeline_mode<synchronous>, transform_indices = @transform_3, window_bounds = array<i64: 1152, 128>}, {transform_indices = @transform_4, window_bounds = array<i64: 1, 16, 16, 128>}, {transform_indices = @transform_5, window_bounds = array<i64: 1, 2, 128>}]} {
    %c0 = arith.constant 0 : index
    %c0_0 = arith.constant 0 : index
    %c0_1 = arith.constant 0 : index
    %c0_2 = arith.constant 0 : index
    %0 = vector.load %arg1[%c0, %c0_0, %c0_1, %c0_2] : memref<1x16x16x128xbf16, #tpu.memory_space<vmem>>, vector<1x16x16x128xbf16>
    %1 = vector.shape_cast %0 : vector<1x16x16x128xbf16> to vector<256x128xbf16>
    %2 = arith.extf %1 : vector<256x128xbf16> to vector<256x128xf32>
    %c0_3 = arith.constant 0 : index
    %c0_4 = arith.constant 0 : index
    %3 = vector.load %arg2[%c0_3, %c0_4] : memref<1x128xf32, #tpu.memory_space<vmem>>, vector<1x128xf32>
    %4 = vector.broadcast %3 : vector<1x128xf32> to vector<256x128xf32>
    %5 = arith.mulf %2, %4 : vector<256x128xf32>
    %c0_5 = arith.constant 0 : index
    %c0_6 = arith.constant 0 : index
    %6 = vector.load %arg3[%c0_5, %c0_6] : memref<1x128xf32, #tpu.memory_space<vmem>>, vector<1x128xf32>
    %7 = vector.broadcast %6 : vector<1x128xf32> to vector<256x128xf32>
    %8 = arith.addf %5, %7 : vector<256x128xf32>
    %cst = arith.constant 0.000000e+00 : f32
    %9 = vector.broadcast %cst : f32 to vector<256x128xf32>
    %10 = arith.maximumf %8, %9 : vector<256x128xf32>
    %11 = vector.shape_cast %10 : vector<256x128xf32> to vector<16x16x128xf32>
    %12 = arith.truncf %11 : vector<16x16x128xf32> to vector<16x16x128xbf16>
    %cst_7 = arith.constant 0.000000e+00 : bf16
    %13 = vector.broadcast %cst_7 : bf16 to vector<1x18x128xbf16>
    %c0_8 = arith.constant 0 : index
    %c0_9 = arith.constant 0 : index
    %c0_10 = arith.constant 0 : index
    %14 = vector.load %arg7[%c0_8, %c0_9, %c0_10] : memref<18x18x128xbf16, #tpu.memory_space<vmem>>, vector<1x18x128xbf16>
    tpu.vector_store %arg7[%c0_8, %c0_9, %c0_10], %13 {strides = array<i32>} : memref<18x18x128xbf16, #tpu.memory_space<vmem>>, vector<1x18x128xbf16>,
    %cst_11 = arith.constant 0.000000e+00 : bf16
    %15 = vector.broadcast %cst_11 : bf16 to vector<1x18x128xbf16>
    %c17 = arith.constant 17 : index
    %c0_12 = arith.constant 0 : index
    %c0_13 = arith.constant 0 : index
    %16 = vector.load %arg7[%c17, %c0_12, %c0_13] : memref<18x18x128xbf16, #tpu.memory_space<vmem>>, vector<1x18x128xbf16>
    tpu.vector_store %arg7[%c17, %c0_12, %c0_13], %15 {strides = array<i32>} : memref<18x18x128xbf16, #tpu.memory_space<vmem>>, vector<1x18x128xbf16>,
    %cst_14 = arith.constant 0.000000e+00 : bf16
    %17 = vector.broadcast %cst_14 : bf16 to vector<18x1x128xbf16>
    %c0_15 = arith.constant 0 : index
    %c0_16 = arith.constant 0 : index
    %c0_17 = arith.constant 0 : index
    %18 = vector.load %arg7[%c0_15, %c0_16, %c0_17] : memref<18x18x128xbf16, #tpu.memory_space<vmem>>, vector<18x1x128xbf16>
    tpu.vector_store %arg7[%c0_15, %c0_16, %c0_17], %17 {strides = array<i32>} : memref<18x18x128xbf16, #tpu.memory_space<vmem>>, vector<18x1x128xbf16>,
    %cst_18 = arith.constant 0.000000e+00 : bf16
    %19 = vector.broadcast %cst_18 : bf16 to vector<18x1x128xbf16>
    %c0_19 = arith.constant 0 : index
    %c17_20 = arith.constant 17 : index
    %c0_21 = arith.constant 0 : index
    %20 = vector.load %arg7[%c0_19, %c17_20, %c0_21] : memref<18x18x128xbf16, #tpu.memory_space<vmem>>, vector<18x1x128xbf16>
    tpu.vector_store %arg7[%c0_19, %c17_20, %c0_21], %19 {strides = array<i32>} : memref<18x18x128xbf16, #tpu.memory_space<vmem>>, vector<18x1x128xbf16>,
    %c1 = arith.constant 1 : index
    %c1_22 = arith.constant 1 : index
    %c0_23 = arith.constant 0 : index
    %21 = vector.load %arg7[%c1, %c1_22, %c0_23] : memref<18x18x128xbf16, #tpu.memory_space<vmem>>, vector<16x16x128xbf16>
    tpu.vector_store %arg7[%c1, %c1_22, %c0_23], %12 {strides = array<i32>} : memref<18x18x128xbf16, #tpu.memory_space<vmem>>, vector<16x16x128xbf16>,
    %c0_24 = arith.constant 0 : index
    %c0_25 = arith.constant 0 : index
    %c0_26 = arith.constant 0 : index
    %22 = vector.load %arg7[%c0_24, %c0_25, %c0_26] : memref<18x18x128xbf16, #tpu.memory_space<vmem>>, vector<16x18x128xbf16>
    %23 = vector.extract_strided_slice %22 {offsets = [0, 0, 0], sizes = [16, 16, 128], strides = [1, 1, 1]} : vector<16x18x128xbf16> to vector<16x16x128xbf16>
    %24 = vector.extract_strided_slice %22 {offsets = [0, 1, 0], sizes = [16, 16, 128], strides = [1, 1, 1]} : vector<16x18x128xbf16> to vector<16x16x128xbf16>
    %25 = vector.extract_strided_slice %22 {offsets = [0, 2, 0], sizes = [16, 16, 128], strides = [1, 1, 1]} : vector<16x18x128xbf16> to vector<16x16x128xbf16>
    %26 = tpu.concatenate %23, %24, %25 in 2 : vector<16x16x128xbf16>, vector<16x16x128xbf16>, vector<16x16x128xbf16> -> vector<16x16x384xbf16>
    %27 = vector.shape_cast %26 : vector<16x16x384xbf16> to vector<256x384xbf16>
    %c0_27 = arith.constant 0 : index
    %c0_28 = arith.constant 0 : index
    %28 = vector.load %arg4[%c0_27, %c0_28] : memref<1152x128xbf16, #tpu.memory_space<vmem>>, vector<384x128xbf16>
    %cst_29 = arith.constant dense<0.000000e+00> : vector<256x128xf32>
    %29 = tpu.matmul %27, %28, %cst_29 {dimension_numbers = #tpu.dot_dimension_numbers<[1], [0], [0], [1], [0, 0, 1, 1], [], []>} : vector<256x384xbf16>, vector<384x128xbf16>, vector<256x128xf32> -> vector<256x128xf32>
    %c1_30 = arith.constant 1 : index
    %c0_31 = arith.constant 0 : index
    %c0_32 = arith.constant 0 : index
    %30 = vector.load %arg7[%c1_30, %c0_31, %c0_32] : memref<18x18x128xbf16, #tpu.memory_space<vmem>>, vector<16x18x128xbf16>
    %31 = vector.extract_strided_slice %30 {offsets = [0, 0, 0], sizes = [16, 16, 128], strides = [1, 1, 1]} : vector<16x18x128xbf16> to vector<16x16x128xbf16>
    %32 = vector.extract_strided_slice %30 {offsets = [0, 1, 0], sizes = [16, 16, 128], strides = [1, 1, 1]} : vector<16x18x128xbf16> to vector<16x16x128xbf16>
    %33 = vector.extract_strided_slice %30 {offsets = [0, 2, 0], sizes = [16, 16, 128], strides = [1, 1, 1]} : vector<16x18x128xbf16> to vector<16x16x128xbf16>
    %34 = tpu.concatenate %31, %32, %33 in 2 : vector<16x16x128xbf16>, vector<16x16x128xbf16>, vector<16x16x128xbf16> -> vector<16x16x384xbf16>
    %35 = vector.shape_cast %34 : vector<16x16x384xbf16> to vector<256x384xbf16>
    %c384 = arith.constant 384 : index
    %c0_33 = arith.constant 0 : index
    %36 = vector.load %arg4[%c384, %c0_33] : memref<1152x128xbf16, #tpu.memory_space<vmem>>, vector<384x128xbf16>
    %cst_34 = arith.constant dense<0.000000e+00> : vector<256x128xf32>
    %37 = tpu.matmul %35, %36, %cst_34 {dimension_numbers = #tpu.dot_dimension_numbers<[1], [0], [0], [1], [0, 0, 1, 1], [], []>} : vector<256x384xbf16>, vector<384x128xbf16>, vector<256x128xf32> -> vector<256x128xf32>
    %38 = arith.addf %29, %37 : vector<256x128xf32>
    %c2 = arith.constant 2 : index
    %c0_35 = arith.constant 0 : index
    %c0_36 = arith.constant 0 : index
    %39 = vector.load %arg7[%c2, %c0_35, %c0_36] : memref<18x18x128xbf16, #tpu.memory_space<vmem>>, vector<16x18x128xbf16>
    %40 = vector.extract_strided_slice %39 {offsets = [0, 0, 0], sizes = [16, 16, 128], strides = [1, 1, 1]} : vector<16x18x128xbf16> to vector<16x16x128xbf16>
    %41 = vector.extract_strided_slice %39 {offsets = [0, 1, 0], sizes = [16, 16, 128], strides = [1, 1, 1]} : vector<16x18x128xbf16> to vector<16x16x128xbf16>
    %42 = vector.extract_strided_slice %39 {offsets = [0, 2, 0], sizes = [16, 16, 128], strides = [1, 1, 1]} : vector<16x18x128xbf16> to vector<16x16x128xbf16>
    %43 = tpu.concatenate %40, %41, %42 in 2 : vector<16x16x128xbf16>, vector<16x16x128xbf16>, vector<16x16x128xbf16> -> vector<16x16x384xbf16>
    %44 = vector.shape_cast %43 : vector<16x16x384xbf16> to vector<256x384xbf16>
    %c768 = arith.constant 768 : index
    %c0_37 = arith.constant 0 : index
    %45 = vector.load %arg4[%c768, %c0_37] : memref<1152x128xbf16, #tpu.memory_space<vmem>>, vector<384x128xbf16>
    %cst_38 = arith.constant dense<0.000000e+00> : vector<256x128xf32>
    %46 = tpu.matmul %44, %45, %cst_38 {dimension_numbers = #tpu.dot_dimension_numbers<[1], [0], [0], [1], [0, 0, 1, 1], [], []>} : vector<256x384xbf16>, vector<384x128xbf16>, vector<256x128xf32> -> vector<256x128xf32>
    %47 = arith.addf %38, %46 : vector<256x128xf32>
    %48 = arith.truncf %47 : vector<256x128xf32> to vector<256x128xbf16>
    %49 = vector.shape_cast %48 : vector<256x128xbf16> to vector<1x16x16x128xbf16>
    %c0_39 = arith.constant 0 : index
    %c0_40 = arith.constant 0 : index
    %c0_41 = arith.constant 0 : index
    %c0_42 = arith.constant 0 : index
    %50 = vector.load %arg5[%c0_39, %c0_40, %c0_41, %c0_42] : memref<1x16x16x128xbf16, #tpu.memory_space<vmem>>, vector<1x16x16x128xbf16>
    tpu.vector_store %arg5[%c0_39, %c0_40, %c0_41, %c0_42], %49 {strides = array<i32>} : memref<1x16x16x128xbf16, #tpu.memory_space<vmem>>, vector<1x16x16x128xbf16>,
    %cst_43 = arith.constant dense<0.000000e+00> : vector<128xf32>
    %51 = vector.multi_reduction <add>, %47, %cst_43 [0] : vector<256x128xf32> to vector<128xf32>
    %52 = arith.mulf %47, %47 : vector<256x128xf32>
    %cst_44 = arith.constant dense<0.000000e+00> : vector<128xf32>
    %53 = vector.multi_reduction <add>, %52, %cst_44 [0] : vector<256x128xf32> to vector<128xf32>
    %54 = vector.shape_cast %51 : vector<128xf32> to vector<1x128xf32>
    %55 = vector.shape_cast %53 : vector<128xf32> to vector<1x128xf32>
    %56 = tpu.concatenate %54, %55 in 0 : vector<1x128xf32>, vector<1x128xf32> -> vector<2x128xf32>
    %57 = vector.shape_cast %56 : vector<2x128xf32> to vector<1x2x128xf32>
    %c0_45 = arith.constant 0 : index
    %c0_46 = arith.constant 0 : index
    %c0_47 = arith.constant 0 : index
    %58 = vector.load %arg6[%c0_45, %c0_46, %c0_47] : memref<1x2x128xf32, #tpu.memory_space<vmem>>, vector<1x2x128xf32>
    tpu.vector_store %arg6[%c0_45, %c0_46, %c0_47], %57 {strides = array<i32>} : memref<1x2x128xf32, #tpu.memory_space<vmem>>, vector<1x2x128xf32>,
    return
  }
  func.func @transform_0(%arg0: i32) -> (i32, i32, i32, i32) {
    %c0_i32 = arith.constant 0 : i32
    %c0_i32_0 = arith.constant 0 : i32
    %c0_i32_1 = arith.constant 0 : i32
    %c0_i32_2 = arith.constant 0 : i32
    return %arg0, %c0_i32, %c0_i32_0, %c0_i32_1 : i32, i32, i32, i32
  }
  func.func @transform_1(%arg0: i32) -> (i32, i32) {
    %c0_i32 = arith.constant 0 : i32
    %c0_i32_0 = arith.constant 0 : i32
    %c0_i32_1 = arith.constant 0 : i32
    return %c0_i32, %c0_i32_0 : i32, i32
  }
  func.func @transform_2(%arg0: i32) -> (i32, i32) {
    %c0_i32 = arith.constant 0 : i32
    %c0_i32_0 = arith.constant 0 : i32
    %c0_i32_1 = arith.constant 0 : i32
    return %c0_i32, %c0_i32_0 : i32, i32
  }
  func.func @transform_3(%arg0: i32) -> (i32, i32) {
    %c0_i32 = arith.constant 0 : i32
    %c0_i32_0 = arith.constant 0 : i32
    %c0_i32_1 = arith.constant 0 : i32
    return %c0_i32, %c0_i32_0 : i32, i32
  }
  func.func @transform_4(%arg0: i32) -> (i32, i32, i32, i32) {
    %c0_i32 = arith.constant 0 : i32
    %c0_i32_0 = arith.constant 0 : i32
    %c0_i32_1 = arith.constant 0 : i32
    %c0_i32_2 = arith.constant 0 : i32
    return %arg0, %c0_i32, %c0_i32_0, %c0_i32_1 : i32, i32, i32, i32
  }
  func.func @transform_5(%arg0: i32) -> (i32, i32, i32) {
    %c0_i32 = arith.constant 0 : i32
    %c0_i32_0 = arith.constant 0 : i32
    %c0_i32_1 = arith.constant 0 : i32
    return %arg0, %c0_i32, %c0_i32_0 : i32, i32, i32
  }
}

module attributes {stable_mosaic.version = 11 : i64} {
  func.func @residual_kernel(%arg0: i32, %arg1: i32, %arg2: memref<1x16x16x128xbf16, #tpu.memory_space<vmem>>, %arg3: memref<1x16x16x128xbf16, #tpu.memory_space<vmem>>, %arg4: memref<1x128xf32, #tpu.memory_space<vmem>>, %arg5: memref<1x128xf32, #tpu.memory_space<vmem>>, %arg6: memref<1x16x16x128xf32, #tpu.memory_space<vmem>>) attributes {dimension_semantics = [#tpu.dimension_semantics<parallel>, #tpu.dimension_semantics<parallel>], iteration_bounds = array<i64: 2, 1>, scalar_prefetch = 0 : i64, scratch_operands = 0 : i64, tpu.core_type = #tpu.core_type<tc>, window_params = [{transform_indices = @transform_0, window_bounds = array<i64: 1, 16, 16, 128>}, {transform_indices = @transform_1, window_bounds = array<i64: 1, 16, 16, 128>}, {pipeline_mode = #tpu.pipeline_mode<synchronous>, transform_indices = @transform_2, window_bounds = array<i64: 1, 128>}, {pipeline_mode = #tpu.pipeline_mode<synchronous>, transform_indices = @transform_3, window_bounds = array<i64: 1, 128>}, {transform_indices = @transform_4, window_bounds = array<i64: 1, 16, 16, 128>}]} {
    %c0 = arith.constant 0 : index
    %c0_0 = arith.constant 0 : index
    %c0_1 = arith.constant 0 : index
    %c0_2 = arith.constant 0 : index
    %0 = vector.load %arg2[%c0, %c0_0, %c0_1, %c0_2] : memref<1x16x16x128xbf16, #tpu.memory_space<vmem>>, vector<1x16x16x128xbf16>
    %1 = vector.shape_cast %0 : vector<1x16x16x128xbf16> to vector<256x128xbf16>
    %2 = arith.extf %1 : vector<256x128xbf16> to vector<256x128xf32>
    %c0_3 = arith.constant 0 : index
    %c0_4 = arith.constant 0 : index
    %3 = vector.load %arg4[%c0_3, %c0_4] : memref<1x128xf32, #tpu.memory_space<vmem>>, vector<1x128xf32>
    %4 = vector.broadcast %3 : vector<1x128xf32> to vector<256x128xf32>
    %5 = arith.mulf %2, %4 : vector<256x128xf32>
    %c0_5 = arith.constant 0 : index
    %c0_6 = arith.constant 0 : index
    %6 = vector.load %arg5[%c0_5, %c0_6] : memref<1x128xf32, #tpu.memory_space<vmem>>, vector<1x128xf32>
    %7 = vector.broadcast %6 : vector<1x128xf32> to vector<256x128xf32>
    %8 = arith.addf %5, %7 : vector<256x128xf32>
    %c0_7 = arith.constant 0 : index
    %c0_8 = arith.constant 0 : index
    %c0_9 = arith.constant 0 : index
    %c0_10 = arith.constant 0 : index
    %9 = vector.load %arg3[%c0_7, %c0_8, %c0_9, %c0_10] : memref<1x16x16x128xbf16, #tpu.memory_space<vmem>>, vector<1x16x16x128xbf16>
    %10 = vector.shape_cast %9 : vector<1x16x16x128xbf16> to vector<256x128xbf16>
    %11 = arith.extf %10 : vector<256x128xbf16> to vector<256x128xf32>
    %12 = arith.addf %8, %11 : vector<256x128xf32>
    %cst = arith.constant 0.000000e+00 : f32
    %13 = vector.broadcast %cst : f32 to vector<256x128xf32>
    %14 = arith.maximumf %12, %13 : vector<256x128xf32>
    %15 = vector.shape_cast %14 : vector<256x128xf32> to vector<1x16x16x128xf32>
    %c0_11 = arith.constant 0 : index
    %c0_12 = arith.constant 0 : index
    %c0_13 = arith.constant 0 : index
    %c0_14 = arith.constant 0 : index
    %16 = vector.load %arg6[%c0_11, %c0_12, %c0_13, %c0_14] : memref<1x16x16x128xf32, #tpu.memory_space<vmem>>, vector<1x16x16x128xf32>
    tpu.vector_store %arg6[%c0_11, %c0_12, %c0_13, %c0_14], %15 {strides = array<i32>} : memref<1x16x16x128xf32, #tpu.memory_space<vmem>>, vector<1x16x16x128xf32>,
    return
  }
  func.func @transform_0(%arg0: i32, %arg1: i32) -> (i32, i32, i32, i32) {
    %c0_i32 = arith.constant 0 : i32
    %c0_i32_0 = arith.constant 0 : i32
    %c0_i32_1 = arith.constant 0 : i32
    return %arg0, %arg1, %c0_i32, %c0_i32_0 : i32, i32, i32, i32
  }
  func.func @transform_1(%arg0: i32, %arg1: i32) -> (i32, i32, i32, i32) {
    %c0_i32 = arith.constant 0 : i32
    %c0_i32_0 = arith.constant 0 : i32
    %c0_i32_1 = arith.constant 0 : i32
    return %arg0, %arg1, %c0_i32, %c0_i32_0 : i32, i32, i32, i32
  }
  func.func @transform_2(%arg0: i32, %arg1: i32) -> (i32, i32) {
    %c0_i32 = arith.constant 0 : i32
    %c0_i32_0 = arith.constant 0 : i32
    %c0_i32_1 = arith.constant 0 : i32
    return %c0_i32, %c0_i32_0 : i32, i32
  }
  func.func @transform_3(%arg0: i32, %arg1: i32) -> (i32, i32) {
    %c0_i32 = arith.constant 0 : i32
    %c0_i32_0 = arith.constant 0 : i32
    %c0_i32_1 = arith.constant 0 : i32
    return %c0_i32, %c0_i32_0 : i32, i32
  }
  func.func @transform_4(%arg0: i32, %arg1: i32) -> (i32, i32, i32, i32) {
    %c0_i32 = arith.constant 0 : i32
    %c0_i32_0 = arith.constant 0 : i32
    %c0_i32_1 = arith.constant 0 : i32
    return %arg0, %arg1, %c0_i32, %c0_i32_0 : i32, i32, i32, i32
  }
}

module attributes {stable_mosaic.version = 11 : i64} {
  func.func @conv3_kernel(%arg0: i32, %arg1: i32, %arg2: memref<1x16x16x128xbf16, #tpu.memory_space<vmem>>, %arg3: memref<1x128xf32, #tpu.memory_space<vmem>>, %arg4: memref<1x128xf32, #tpu.memory_space<vmem>>, %arg5: memref<128x128xbf16, #tpu.memory_space<vmem>>, %arg6: memref<1x16x16x128xbf16, #tpu.memory_space<vmem>>, %arg7: memref<1x1x2x128xf32, #tpu.memory_space<vmem>>) attributes {dimension_semantics = [#tpu.dimension_semantics<parallel>, #tpu.dimension_semantics<parallel>], iteration_bounds = array<i64: 2, 1>, scalar_prefetch = 0 : i64, scratch_operands = 0 : i64, tpu.core_type = #tpu.core_type<tc>, window_params = [{transform_indices = @transform_0, window_bounds = array<i64: 1, 16, 16, 128>}, {pipeline_mode = #tpu.pipeline_mode<synchronous>, transform_indices = @transform_1, window_bounds = array<i64: 1, 128>}, {pipeline_mode = #tpu.pipeline_mode<synchronous>, transform_indices = @transform_2, window_bounds = array<i64: 1, 128>}, {pipeline_mode = #tpu.pipeline_mode<synchronous>, transform_indices = @transform_3, window_bounds = array<i64: 128, 128>}, {transform_indices = @transform_4, window_bounds = array<i64: 1, 16, 16, 128>}, {transform_indices = @transform_5, window_bounds = array<i64: 1, 1, 2, 128>}]} {
    %c0 = arith.constant 0 : index
    %c0_0 = arith.constant 0 : index
    %c0_1 = arith.constant 0 : index
    %c0_2 = arith.constant 0 : index
    %0 = vector.load %arg2[%c0, %c0_0, %c0_1, %c0_2] : memref<1x16x16x128xbf16, #tpu.memory_space<vmem>>, vector<1x16x16x128xbf16>
    %1 = vector.shape_cast %0 : vector<1x16x16x128xbf16> to vector<256x128xbf16>
    %2 = arith.extf %1 : vector<256x128xbf16> to vector<256x128xf32>
    %c0_3 = arith.constant 0 : index
    %c0_4 = arith.constant 0 : index
    %3 = vector.load %arg3[%c0_3, %c0_4] : memref<1x128xf32, #tpu.memory_space<vmem>>, vector<1x128xf32>
    %4 = vector.broadcast %3 : vector<1x128xf32> to vector<256x128xf32>
    %5 = arith.mulf %2, %4 : vector<256x128xf32>
    %c0_5 = arith.constant 0 : index
    %c0_6 = arith.constant 0 : index
    %6 = vector.load %arg4[%c0_5, %c0_6] : memref<1x128xf32, #tpu.memory_space<vmem>>, vector<1x128xf32>
    %7 = vector.broadcast %6 : vector<1x128xf32> to vector<256x128xf32>
    %8 = arith.addf %5, %7 : vector<256x128xf32>
    %cst = arith.constant 0.000000e+00 : f32
    %9 = vector.broadcast %cst : f32 to vector<256x128xf32>
    %10 = arith.maximumf %8, %9 : vector<256x128xf32>
    %11 = arith.truncf %10 : vector<256x128xf32> to vector<256x128xbf16>
    %c0_7 = arith.constant 0 : index
    %c0_8 = arith.constant 0 : index
    %12 = vector.load %arg5[%c0_7, %c0_8] : memref<128x128xbf16, #tpu.memory_space<vmem>>, vector<128x128xbf16>
    %cst_9 = arith.constant dense<0.000000e+00> : vector<256x128xf32>
    %13 = tpu.matmul %11, %12, %cst_9 {dimension_numbers = #tpu.dot_dimension_numbers<[1], [0], [0], [1], [0, 0, 1, 1], [], []>} : vector<256x128xbf16>, vector<128x128xbf16>, vector<256x128xf32> -> vector<256x128xf32>
    %14 = arith.truncf %13 : vector<256x128xf32> to vector<256x128xbf16>
    %15 = vector.shape_cast %14 : vector<256x128xbf16> to vector<1x16x16x128xbf16>
    %c0_10 = arith.constant 0 : index
    %c0_11 = arith.constant 0 : index
    %c0_12 = arith.constant 0 : index
    %c0_13 = arith.constant 0 : index
    %16 = vector.load %arg6[%c0_10, %c0_11, %c0_12, %c0_13] : memref<1x16x16x128xbf16, #tpu.memory_space<vmem>>, vector<1x16x16x128xbf16>
    tpu.vector_store %arg6[%c0_10, %c0_11, %c0_12, %c0_13], %15 {strides = array<i32>} : memref<1x16x16x128xbf16, #tpu.memory_space<vmem>>, vector<1x16x16x128xbf16>,
    %cst_14 = arith.constant dense<0.000000e+00> : vector<128xf32>
    %17 = vector.multi_reduction <add>, %13, %cst_14 [0] : vector<256x128xf32> to vector<128xf32>
    %18 = arith.mulf %13, %13 : vector<256x128xf32>
    %cst_15 = arith.constant dense<0.000000e+00> : vector<128xf32>
    %19 = vector.multi_reduction <add>, %18, %cst_15 [0] : vector<256x128xf32> to vector<128xf32>
    %20 = vector.shape_cast %17 : vector<128xf32> to vector<1x128xf32>
    %21 = vector.shape_cast %19 : vector<128xf32> to vector<1x128xf32>
    %22 = tpu.concatenate %20, %21 in 0 : vector<1x128xf32>, vector<1x128xf32> -> vector<2x128xf32>
    %23 = vector.shape_cast %22 : vector<2x128xf32> to vector<1x1x2x128xf32>
    %c0_16 = arith.constant 0 : index
    %c0_17 = arith.constant 0 : index
    %c0_18 = arith.constant 0 : index
    %c0_19 = arith.constant 0 : index
    %24 = vector.load %arg7[%c0_16, %c0_17, %c0_18, %c0_19] : memref<1x1x2x128xf32, #tpu.memory_space<vmem>>, vector<1x1x2x128xf32>
    tpu.vector_store %arg7[%c0_16, %c0_17, %c0_18, %c0_19], %23 {strides = array<i32>} : memref<1x1x2x128xf32, #tpu.memory_space<vmem>>, vector<1x1x2x128xf32>,
    return
  }
  func.func @transform_0(%arg0: i32, %arg1: i32) -> (i32, i32, i32, i32) {
    %c0_i32 = arith.constant 0 : i32
    %c0_i32_0 = arith.constant 0 : i32
    %c0_i32_1 = arith.constant 0 : i32
    return %arg0, %arg1, %c0_i32, %c0_i32_0 : i32, i32, i32, i32
  }
  func.func @transform_1(%arg0: i32, %arg1: i32) -> (i32, i32) {
    %c0_i32 = arith.constant 0 : i32
    %c0_i32_0 = arith.constant 0 : i32
    %c0_i32_1 = arith.constant 0 : i32
    return %c0_i32, %c0_i32_0 : i32, i32
  }
  func.func @transform_2(%arg0: i32, %arg1: i32) -> (i32, i32) {
    %c0_i32 = arith.constant 0 : i32
    %c0_i32_0 = arith.constant 0 : i32
    %c0_i32_1 = arith.constant 0 : i32
    return %c0_i32, %c0_i32_0 : i32, i32
  }
  func.func @transform_3(%arg0: i32, %arg1: i32) -> (i32, i32) {
    %c0_i32 = arith.constant 0 : i32
    %c0_i32_0 = arith.constant 0 : i32
    %c0_i32_1 = arith.constant 0 : i32
    return %c0_i32, %c0_i32_0 : i32, i32
  }
  func.func @transform_4(%arg0: i32, %arg1: i32) -> (i32, i32, i32, i32) {
    %c0_i32 = arith.constant 0 : i32
    %c0_i32_0 = arith.constant 0 : i32
    %c0_i32_1 = arith.constant 0 : i32
    return %arg0, %arg1, %c0_i32, %c0_i32_0 : i32, i32, i32, i32
  }
  func.func @transform_5(%arg0: i32, %arg1: i32) -> (i32, i32, i32, i32) {
    %c0_i32 = arith.constant 0 : i32
    %c0_i32_0 = arith.constant 0 : i32
    %c0_i32_1 = arith.constant 0 : i32
    return %arg0, %arg1, %c0_i32, %c0_i32_0 : i32, i32, i32, i32
  }
}

</mosaic_0001>

<bundles_post_ra>
// kernel: bottleneck_forward.7
= control target key start
LH: loop header
LB: loop body
LE: loop exit
PB: predicated region body
PF: predicated region fallthrough
CT: control target
= control target key end

     0   :  { %s949_s15 = smov 0   ;;  %s951_s16 = smov 0   ;;  %s1133_s0 = inlined_call_operand.vmem [shape: bf16[2,16,16,128], index: 0, kind: input, shape index: {}]   ;;  %s1134_s1 = inlined_call_operand.vmem [shape: bf16[2,16,16,128], index: 1, kind: input, shape index: {}]   ;;  %s1135_s2 = inlined_call_operand.vmem [shape: f32[1,128], index: 2, kind: input, shape index: {}]   ;;  %s1136_s3 = inlined_call_operand.vmem [shape: f32[1,128], index: 3, kind: input, shape index: {}]   ;;  %s1137_s4 = inlined_call_operand.vmem [shape: f32[2,16,16,128], index: 4, kind: output, shape index: {}]  }
   0x1   :  { %s953_s17 = smov 0  }
   0x2 LB: > { %s26_s18 = sadd.s32 1, %s918_s16  ;;  %p704_p0 = scmp.ge.s32.totalorder %s922_s17, 1  ;;  %s922_s17 = sphi %s953_s17, %s14_s17   ;;  %s918_s16 = sphi %s951_s16, %s1139_s16   ;;  %s914_s15 = sphi %s949_s15, %s1138_s15  }
   0x3   : > { %p28_p1 = scmp.ge.s32.totalorder %s26_s18, 2  ;;  %p202_p2 = scmp.lt.s32.totalorder %s922_s17, 3 }
   0x5   : > { %s1141_s18 = smov (%p28_p1, %s26_s18), 0  ;;  %p203_p3 = pnand %p704_p0, %p202_p2 }
   0x6   : > { %p249_p4 = scmp.lt.s32.totalorder (!%p203_p3), %s914_s15, 1  ;;  %v983_v0 = vld [vmem:[%s1135_s2] ss:$0 sm:$0xff] (!%p203_p3) }
   0x7   : > { %206 = sbr.rel (%p203_p3) target bundleno = 72 (0x48), region = 36  ;;  %v994_v11 = vld [vmem:[%s1136_s3] ss:$0 sm:$0xff] (!%p203_p3) }
   0xe   : > { %s1143_s15 = smov (!%p249_p4, %s914_s15), 1 }
   0xf   : > { %s715_s19 = sshll.u32 %s1143_s15, 7  ;;  %s717_s30 = sshll.u32 %s1143_s15, 8 }
  0x10   : > { %s973_s22 = scalar_lea.vmem %s1133_s0, %s715_s19  ;;  %s978_s25 = scalar_lea.vmem %s1134_s1, %s715_s19 }
  0x11   : > { %v719_v1 = vld [vmem:[%s973_s22] sm:$0xff]   ;;  %v846_v3 = vld [vmem:[%s973_s22 + $0x8] sm:$0xff]   ;;  %v847_v9 = vld [vmem:[%s973_s22 + $0x10] sm:$0xff]   ;;  %s1014_s7 = scalar_lea.vmem %s1137_s4, %s717_s30 }
  0x12   : > { %v783_v2 = vld [vmem:[%s978_s25] sm:$0xff]   ;;  %v720_v4 = vunpack.c.l.bf16 %v719_v1  ;;  %v721_v6 = vunpack.c.h.bf16 %v719_v1  ;;  %v861_v8 = vld [vmem:[%s978_s25 + $0x8] sm:$0xff]   ;;  %v862_v10 = vld [vmem:[%s978_s25 + $0x10] sm:$0xff]   ;;  %v724_v12 = vunpack.c.l.bf16 %v846_v3  ;;  %v725_v14 = vunpack.c.h.bf16 %v846_v3 }
  0x13   : > { %v784_v5 = vunpack.c.l.bf16 %v783_v2  ;;  %v785_v7 = vunpack.c.h.bf16 %v783_v2  ;;  %v788_v13 = vunpack.c.l.bf16 %v861_v8  ;;  %v789_v15 = vunpack.c.h.bf16 %v861_v8  ;;  %v848_v16 = vld [vmem:[%s973_s22 + $0x18] sm:$0xff]   ;;  %v849_v42 = vld [vmem:[%s973_s22 + $0x20] sm:$0xff]   ;;  %v850_v52 = vld [vmem:[%s973_s22 + $0x28] sm:$0xff]  }
  0x14   : > { %v352_v17 = vmul.f32 %v720_v4, %v983_v0  ;;  %v353_v18 = vmul.f32 %v721_v6, %v983_v0  ;;  %v728_v19 = vunpack.c.l.bf16 %v847_v9  ;;  %v792_v20 = vunpack.c.l.bf16 %v862_v10  ;;  %v863_v21 = vld [vmem:[%s978_s25 + $0x18] sm:$0xff]   ;;  %v864_v47 = vld [vmem:[%s978_s25 + $0x20] sm:$0xff]   ;;  %v865_v57 = vld [vmem:[%s978_s25 + $0x28] sm:$0xff]  }
  0x15   : > { %v354_v22 = vmul.f32 %v724_v12, %v983_v0  ;;  %v355_v23 = vmul.f32 %v725_v14, %v983_v0  ;;  %v729_v24 = vunpack.c.h.bf16 %v847_v9  ;;  %v793_v25 = vunpack.c.h.bf16 %v862_v10  ;;  %v851_v62 = vld [vmem:[%s973_s22 + $0x30] sm:$0xff]   ;;  %v852_v14 = vld [vmem:[%s973_s22 + $0x38] sm:$0xff]  }
  0x16   : > { %v391_v26 = vadd.f32 %v994_v11, %v352_v17  ;;  %v392_v27 = vadd.f32 %v994_v11, %v353_v18  ;;  %v356_v28 = vmul.f32 %v728_v19, %v983_v0  ;;  %v732_v29 = vunpack.c.l.bf16 %v848_v16  ;;  %v866_v4 = vld [vmem:[%s978_s25 + $0x30] sm:$0xff]  }
  0x17   : > { %v393_v30 = vadd.f32 %v994_v11, %v354_v22  ;;  %v394_v31 = vadd.f32 %v994_v11, %v355_v23  ;;  %v357_v32 = vmul.f32 %v729_v24, %v983_v0  ;;  %v796_v33 = vunpack.c.l.bf16 %v863_v21  ;;  %v867_v23 = vld [vmem:[%s978_s25 + $0x38] sm:$0xff]  }
  0x18   : > { %v487_v34 = vadd.f32 %v784_v5, %v391_v26  ;;  %v488_v35 = vadd.f32 %v785_v7, %v392_v27  ;;  %v395_v36 = vadd.f32 %v994_v11, %v356_v28  ;;  %v358_v37 = vmul.f32 %v732_v29, %v983_v0 }
  0x19   : > { %v489_v38 = vadd.f32 %v788_v13, %v393_v30  ;;  %v490_v39 = vadd.f32 %v789_v15, %v394_v31  ;;  %v396_v40 = vadd.f32 %v994_v11, %v357_v32  ;;  %v733_v41 = vunpack.c.h.bf16 %v848_v16  ;;  %v853_v32 = vld [vmem:[%s973_s22 + $0x40] sm:$0xff]  }
  0x1a   : > { %v519_v43 = vmax.f32 %v487_v34, 0.0  ;;  %v520_v44 = vmax.f32 %v488_v35, 0.0  ;;  %v491_v45 = vadd.f32 %v792_v20, %v395_v36  ;;  %v397_v46 = vadd.f32 %v994_v11, %v358_v37  ;;  %v868_v37 = vld [vmem:[%s978_s25 + $0x40] sm:$0xff]  }
  0x1b   : > { %v521_v48 = vmax.f32 %v489_v38, 0.0  ;;  %v522_v49 = vmax.f32 %v490_v39, 0.0  ;;  %v492_v50 = vadd.f32 %v793_v25, %v396_v40  ;;  %v359_v51 = vmul.f32 %v733_v41, %v983_v0 }
  0x1c   : > { %551 = vst [vmem:[%s1014_s7] sm:$0xff] %v519_v43  ;;  %552 = vst [vmem:[%s1014_s7 + $0x8] sm:$0xff] %v520_v44  ;;  %v523_v53 = vmax.f32 %v491_v45, 0.0  ;;  %v493_v54 = vadd.f32 %v796_v33, %v397_v46  ;;  %v797_v55 = vunpack.c.h.bf16 %v863_v21  ;;  %v736_v56 = vunpack.c.l.bf16 %v849_v42  ;;  %v854_v46 = vld [vmem:[%s973_s22 + $0x48] sm:$0xff]  }
  0x1d   : > { %553 = vst [vmem:[%s1014_s7 + $0x10] sm:$0xff] %v521_v48  ;;  %554 = vst [vmem:[%s1014_s7 + $0x18] sm:$0xff] %v522_v49  ;;  %v524_v58 = vmax.f32 %v492_v50, 0.0  ;;  %v398_v59 = vadd.f32 %v994_v11, %v359_v51  ;;  %v800_v60 = vunpack.c.l.bf16 %v864_v47  ;;  %v737_v61 = vunpack.c.h.bf16 %v849_v42 }
  0x1e   : > { %555 = vst [vmem:[%s1014_s7 + $0x20] sm:$0xff] %v523_v53  ;;  %v525_v63 = vmax.f32 %v493_v54, 0.0  ;;  %v360_v1 = vmul.f32 %v736_v56, %v983_v0  ;;  %v801_v2 = vunpack.c.h.bf16 %v864_v47  ;;  %v740_v3 = vunpack.c.l.bf16 %v850_v52  ;;  %v869_v47 = vld [vmem:[%s978_s25 + $0x48] sm:$0xff]   ;;  %v855_v56 = vld [vmem:[%s973_s22 + $0x50] sm:$0xff]  }
  0x1f   : > { %556 = vst [vmem:[%s1014_s7 + $0x28] sm:$0xff] %v524_v58  ;;  %v494_v5 = vadd.f32 %v797_v55, %v398_v59  ;;  %v361_v6 = vmul.f32 %v737_v61, %v983_v0  ;;  %v804_v7 = vunpack.c.l.bf16 %v865_v57  ;;  %v741_v8 = vunpack.c.h.bf16 %v850_v52  ;;  %v870_v61 = vld [vmem:[%s978_s25 + $0x50] sm:$0xff]  }
  0x20   : > { %557 = vst [vmem:[%s1014_s7 + $0x30] sm:$0xff] %v525_v63  ;;  %v399_v9 = vadd.f32 %v994_v11, %v360_v1  ;;  %v362_v10 = vmul.f32 %v740_v3, %v983_v0  ;;  %v805_v12 = vunpack.c.h.bf16 %v865_v57  ;;  %v744_v13 = vunpack.c.l.bf16 %v851_v62 }
  0x21   : > { %v526_v15 = vmax.f32 %v494_v5, 0.0  ;;  %v400_v16 = vadd.f32 %v994_v11, %v361_v6  ;;  %v363_v17 = vmul.f32 %v741_v8, %v983_v0  ;;  %v808_v18 = vunpack.c.l.bf16 %v866_v4 }
  0x22   : > { %v495_v19 = vadd.f32 %v800_v60, %v399_v9  ;;  %v401_v20 = vadd.f32 %v994_v11, %v362_v10  ;;  %v364_v21 = vmul.f32 %v744_v13, %v983_v0  ;;  %v745_v22 = vunpack.c.h.bf16 %v851_v62 }
  0x23   : > { %558 = vst [vmem:[%s1014_s7 + $0x38] sm:$0xff] %v526_v15  ;;  %v496_v24 = vadd.f32 %v801_v2, %v400_v16  ;;  %v402_v25 = vadd.f32 %v994_v11, %v363_v17  ;;  %v809_v26 = vunpack.c.h.bf16 %v866_v4  ;;  %v748_v27 = vunpack.c.l.bf16 %v852_v14  ;;  %v871_v17 = vld [vmem:[%s978_s25 + $0x58] sm:$0xff]  }
  0x24   : > { %v527_v28 = vmax.f32 %v495_v19, 0.0  ;;  %v497_v29 = vadd.f32 %v804_v7, %v401_v20  ;;  %v403_v30 = vadd.f32 %v994_v11, %v364_v21  ;;  %v365_v31 = vmul.f32 %v745_v22, %v983_v0 }
  0x25   : > { %v528_v33 = vmax.f32 %v496_v24, 0.0  ;;  %v498_v34 = vadd.f32 %v805_v12, %v402_v25  ;;  %v366_v35 = vmul.f32 %v748_v27, %v983_v0  ;;  %v812_v36 = vunpack.c.l.bf16 %v867_v23  ;;  %v856_v12 = vld [vmem:[%s973_s22 + $0x58] sm:$0xff]  }
  0x26   : > { %559 = vst [vmem:[%s1014_s7 + $0x40] sm:$0xff] %v527_v28  ;;  %v529_v38 = vmax.f32 %v497_v29, 0.0  ;;  %v499_v39 = vadd.f32 %v808_v18, %v403_v30  ;;  %v404_v40 = vadd.f32 %v994_v11, %v365_v31  ;;  %v749_v41 = vunpack.c.h.bf16 %v852_v14  ;;  %v872_v31 = vld [vmem:[%s978_s25 + $0x60] sm:$0xff]  }
  0x27   : > { %560 = vst [vmem:[%s1014_s7 + $0x48] sm:$0xff] %v528_v33  ;;  %v530_v42 = vmax.f32 %v498_v34, 0.0  ;;  %v405_v43 = vadd.f32 %v994_v11, %v366_v35  ;;  %v813_v44 = vunpack.c.h.bf16 %v867_v23  ;;  %v752_v45 = vunpack.c.l.bf16 %v853_v32 }
  0x28   : > { %561 = vst [vmem:[%s1014_s7 + $0x50] sm:$0xff] %v529_v38  ;;  %v531_v48 = vmax.f32 %v499_v39, 0.0  ;;  %v500_v49 = vadd.f32 %v809_v26, %v404_v40  ;;  %v367_v50 = vmul.f32 %v749_v41, %v983_v0  ;;  %v816_v51 = vunpack.c.l.bf16 %v868_v37  ;;  %v857_v26 = vld [vmem:[%s973_s22 + $0x60] sm:$0xff]   ;;  %v858_v40 = vld [vmem:[%s973_s22 + $0x68] sm:$0xff]  }
  0x29   : > { %562 = vst [vmem:[%s1014_s7 + $0x58] sm:$0xff] %v530_v42  ;;  %v501_v52 = vadd.f32 %v812_v36, %v405_v43  ;;  %v368_v53 = vmul.f32 %v752_v45, %v983_v0  ;;  %v753_v54 = vunpack.c.h.bf16 %v853_v32  ;;  %v817_v55 = vunpack.c.h.bf16 %v868_v37  ;;  %v873_v41 = vld [vmem:[%s978_s25 + $0x68] sm:$0xff]  }
  0x2a   : > { %563 = vst [vmem:[%s1014_s7 + $0x60] sm:$0xff] %v531_v48  ;;  %v532_v57 = vmax.f32 %v500_v49, 0.0  ;;  %v406_v58 = vadd.f32 %v994_v11, %v367_v50  ;;  %v756_v59 = vunpack.c.l.bf16 %v854_v46  ;;  %v820_v60 = vunpack.c.l.bf16 %v869_v47  ;;  %v859_v50 = vld [vmem:[%s973_s22 + $0x70] sm:$0xff]  }
  0x2b   : > { %v533_v62 = vmax.f32 %v501_v52, 0.0  ;;  %v407_v63 = vadd.f32 %v994_v11, %v368_v53  ;;  %v369_v1 = vmul.f32 %v753_v54, %v983_v0  ;;  %v757_v2 = vunpack.c.h.bf16 %v854_v46 }
  0x2c   : > { %564 = vst [vmem:[%s1014_s7 + $0x68] sm:$0xff] %v532_v57  ;;  %v502_v3 = vadd.f32 %v813_v44, %v406_v58  ;;  %v370_v4 = vmul.f32 %v756_v59, %v983_v0  ;;  %v821_v5 = vunpack.c.h.bf16 %v869_v47  ;;  %v760_v6 = vunpack.c.l.bf16 %v855_v56  ;;  %v874_v59 = vld [vmem:[%s978_s25 + $0x70] sm:$0xff]  }
  0x2d   : > { %565 = vst [vmem:[%s1014_s7 + $0x70] sm:$0xff] %v533_v62  ;;  %v503_v7 = vadd.f32 %v816_v51, %v407_v63  ;;  %v408_v8 = vadd.f32 %v994_v11, %v369_v1  ;;  %v371_v9 = vmul.f32 %v757_v2, %v983_v0  ;;  %v824_v10 = vunpack.c.l.bf16 %v870_v61 }
  0x2e   : > { %v534_v13 = vmax.f32 %v502_v3, 0.0  ;;  %v409_v14 = vadd.f32 %v994_v11, %v370_v4  ;;  %v372_v15 = vmul.f32 %v760_v6, %v983_v0  ;;  %v761_v16 = vunpack.c.h.bf16 %v855_v56 }
  0x2f   : > { %v535_v18 = vmax.f32 %v503_v7, 0.0  ;;  %v504_v19 = vadd.f32 %v817_v55, %v408_v8  ;;  %v410_v20 = vadd.f32 %v994_v11, %v371_v9  ;;  %v825_v21 = vunpack.c.h.bf16 %v870_v61 }
  0x30   : > { %566 = vst [vmem:[%s1014_s7 + $0x78] sm:$0xff] %v534_v13  ;;  %v505_v22 = vadd.f32 %v820_v60, %v409_v14  ;;  %v411_v23 = vadd.f32 %v994_v11, %v372_v15  ;;  %v373_v24 = vmul.f32 %v761_v16, %v983_v0  ;;  %v764_v25 = vunpack.c.l.bf16 %v856_v12 }
  0x31   : > { %567 = vst [vmem:[%s1014_s7 + $0x80] sm:$0xff] %v535_v18  ;;  %v536_v27 = vmax.f32 %v504_v19, 0.0  ;;  %v506_v28 = vadd.f32 %v821_v5, %v410_v20  ;;  %v828_v29 = vunpack.c.l.bf16 %v871_v17  ;;  %v765_v30 = vunpack.c.h.bf16 %v856_v12  ;;  %v860_v5 = vld [vmem:[%s973_s22 + $0x78] sm:$0xff]  }
  0x32   : > { %v537_v32 = vmax.f32 %v505_v22, 0.0  ;;  %v507_v33 = vadd.f32 %v824_v10, %v411_v23  ;;  %v412_v34 = vadd.f32 %v994_v11, %v373_v24  ;;  %v374_v35 = vmul.f32 %v764_v25, %v983_v0  ;;  %v875_v10 = vld [vmem:[%s978_s25 + $0x78] sm:$0xff]  }
  0x33   : > { %568 = vst [vmem:[%s1014_s7 + $0x88] sm:$0xff] %v536_v27  ;;  %v538_v36 = vmax.f32 %v506_v28, 0.0  ;;  %v375_v37 = vmul.f32 %v765_v30, %v983_v0  ;;  %v829_v38 = vunpack.c.h.bf16 %v871_v17  ;;  %v768_v39 = vunpack.c.l.bf16 %v857_v26 }
  0x34   : > { %569 = vst [vmem:[%s1014_s7 + $0x90] sm:$0xff] %v537_v32  ;;  %v539_v42 = vmax.f32 %v507_v33, 0.0  ;;  %v508_v43 = vadd.f32 %v825_v21, %v412_v34  ;;  %v413_v44 = vadd.f32 %v994_v11, %v374_v35  ;;  %v832_v45 = vunpack.c.l.bf16 %v872_v31 }
  0x35   : > { %570 = vst [vmem:[%s1014_s7 + $0x98] sm:$0xff] %v538_v36  ;;  %v414_v46 = vadd.f32 %v994_v11, %v375_v37  ;;  %v376_v47 = vmul.f32 %v768_v39, %v983_v0  ;;  %v769_v48 = vunpack.c.h.bf16 %v857_v26  ;;  %v833_v49 = vunpack.c.h.bf16 %v872_v31 }
  0x36   : > { %571 = vst [vmem:[%s1014_s7 + $0xa0] sm:$0xff] %v539_v42  ;;  %v540_v51 = vmax.f32 %v508_v43, 0.0  ;;  %v509_v52 = vadd.f32 %v828_v29, %v413_v44  ;;  %v772_v53 = vunpack.c.l.bf16 %v858_v40  ;;  %v836_v54 = vunpack.c.l.bf16 %v873_v41 }
  0x37   : > { %v510_v55 = vadd.f32 %v829_v38, %v414_v46  ;;  %v415_v56 = vadd.f32 %v994_v11, %v376_v47  ;;  %v377_v57 = vmul.f32 %v769_v48, %v983_v0  ;;  %v773_v58 = vunpack.c.h.bf16 %v858_v40 }
  0x38   : > { %572 = vst [vmem:[%s1014_s7 + $0xa8] sm:$0xff] %v540_v51  ;;  %v541_v60 = vmax.f32 %v509_v52, 0.0  ;;  %v378_v61 = vmul.f32 %v772_v53, %v983_v0  ;;  %v837_v62 = vunpack.c.h.bf16 %v873_v41  ;;  %v776_v63 = vunpack.c.l.bf16 %v859_v50 }
  0x39   : > { %v542_v1 = vmax.f32 %v510_v55, 0.0  ;;  %v511_v2 = vadd.f32 %v832_v45, %v415_v56  ;;  %v416_v3 = vadd.f32 %v994_v11, %v377_v57  ;;  %v379_v4 = vmul.f32 %v773_v58, %v983_v0 }
  0x3a   : > { %573 = vst [vmem:[%s1014_s7 + $0xb0] sm:$0xff] %v541_v60  ;;  %v417_v6 = vadd.f32 %v994_v11, %v378_v61  ;;  %v380_v7 = vmul.f32 %v776_v63, %v983_v0  ;;  %v840_v8 = vunpack.c.l.bf16 %v874_v59  ;;  %v777_v9 = vunpack.c.h.bf16 %v859_v50 }
  0x3b   : > { %574 = vst [vmem:[%s1014_s7 + $0xb8] sm:$0xff] %v542_v1  ;;  %v543_v12 = vmax.f32 %v511_v2, 0.0  ;;  %v512_v13 = vadd.f32 %v833_v49, %v416_v3  ;;  %v418_v14 = vadd.f32 %v994_v11, %v379_v4  ;;  %v841_v15 = vunpack.c.h.bf16 %v874_v59 }
  0x3c   : > { %v513_v16 = vadd.f32 %v836_v54, %v417_v6  ;;  %v419_v17 = vadd.f32 %v994_v11, %v380_v7  ;;  %v381_v18 = vmul.f32 %v777_v9, %v983_v0  ;;  %v780_v19 = vunpack.c.l.bf16 %v860_v5 }
  0x3d   : > { %575 = vst [vmem:[%s1014_s7 + $0xc0] sm:$0xff] %v543_v12  ;;  %v544_v20 = vmax.f32 %v512_v13, 0.0  ;;  %v514_v21 = vadd.f32 %v837_v62, %v418_v14  ;;  %v844_v22 = vunpack.c.l.bf16 %v875_v10  ;;  %v781_v23 = vunpack.c.h.bf16 %v860_v5 }
  0x3e   : > { %v545_v24 = vmax.f32 %v513_v16, 0.0  ;;  %v515_v25 = vadd.f32 %v840_v8, %v419_v17  ;;  %v420_v26 = vadd.f32 %v994_v11, %v381_v18  ;;  %v382_v27 = vmul.f32 %v780_v19, %v983_v0 }
  0x3f   : > { %576 = vst [vmem:[%s1014_s7 + $0xc8] sm:$0xff] %v544_v20  ;;  %v546_v28 = vmax.f32 %v514_v21, 0.0  ;;  %v383_v29 = vmul.f32 %v781_v23, %v983_v0  ;;  %v845_v30 = vunpack.c.h.bf16 %v875_v10 }
  0x40   : > { %577 = vst [vmem:[%s1014_s7 + $0xd0] sm:$0xff] %v545_v24  ;;  %v547_v31 = vmax.f32 %v515_v25, 0.0  ;;  %v516_v32 = vadd.f32 %v841_v15, %v420_v26  ;;  %v421_v33 = vadd.f32 %v994_v11, %v382_v27 }
  0x41   : > { %578 = vst [vmem:[%s1014_s7 + $0xd8] sm:$0xff] %v546_v28  ;;  %v422_v34 = vadd.f32 %v994_v11, %v383_v29 }
  0x42   : > { %579 = vst [vmem:[%s1014_s7 + $0xe0] sm:$0xff] %v547_v31  ;;  %v548_v35 = vmax.f32 %v516_v32, 0.0  ;;  %v517_v36 = vadd.f32 %v844_v22, %v421_v33 }
  0x43   : > { %v518_v37 = vadd.f32 %v845_v30, %v422_v34 }
  0x44   : > { %580 = vst [vmem:[%s1014_s7 + $0xe8] sm:$0xff] %v548_v35  ;;  %v549_v38 = vmax.f32 %v517_v36, 0.0 }
  0x45   : > { %v550_v39 = vmax.f32 %v518_v37, 0.0 }
  0x46   : > { %581 = vst [vmem:[%s1014_s7 + $0xf0] sm:$0xff] %v549_v38 }
  0x47   : > { %582 = vst [vmem:[%s1014_s7 + $0xf8] sm:$0xff] %v550_v39 }
  0x48 PF: > { %s14_s17 = sadd.s32 1, %s922_s17   ;;  %s1138_s15 = smov %s918_s16 }
  0x49   : > { %p11_p5 = scmp.ge.s32.totalorder %s14_s17, 4   ;;  %s1139_s16 = smov %s1141_s18 }
  0x4b   :  { %13 = sbr.rel (!%p11_p5) target bundleno = 2 (0x2), region = 69 }

// kernel: bottleneck_forward.4
= control target key start
LH: loop header
LB: loop body
LE: loop exit
PB: predicated region body
PF: predicated region fallthrough
CT: control target
= control target key end

     0   :  { %s1371_s12 = smov 0   ;;  %s1373_s13 = smov 0   ;;  %s1559_s0 = inlined_call_operand.vmem [shape: bf16[2,16,16,128], index: 0, kind: input, shape index: {}]   ;;  %s1560_s1 = inlined_call_operand.vmem [shape: bf16[128,128], index: 1, kind: input, shape index: {}]   ;;  %s1561_s2 = inlined_call_operand.vmem [shape: bf16[2,16,16,128], index: 2, kind: output, shape index: {0}]   ;;  %s1562_s3 = inlined_call_operand.vmem [shape: f32[2,1,2,128], index: 3, kind: output, shape index: {1}]  }
   0x1   :  { %s1375_s14 = smov 0  }
   0x2 LB: > { %s26_s15 = sadd.s32 1, %s1345_s13  ;;  %p998_p0 = scmp.ge.s32.totalorder %s1349_s14, 1  ;;  %s1349_s14 = sphi %s1375_s14, %s14_s14   ;;  %s1345_s13 = sphi %s1373_s13, %s1564_s13   ;;  %s1341_s12 = sphi %s1371_s12, %s1563_s12  }
   0x3   : > { %p28_p1 = scmp.ge.s32.totalorder %s26_s15, 2  ;;  %p164_p2 = scmp.lt.s32.totalorder %s1349_s14, 3 }
   0x5   : > { %s1566_s15 = smov (%p28_p1, %s26_s15), 0  ;;  %p165_p3 = pnand %p998_p0, %p164_p2 }
   0x6   : > { %v1303_v0 = vld [vmem:[%s1560_s1] sm:$0xff] (!%p165_p3)   ;;  %p206_p4 = scmp.lt.s32.totalorder (!%p165_p3), %s1341_s12, 1  ;;  %v1304_v1 = vld [vmem:[%s1560_s1 + $0x8] sm:$0xff] (!%p165_p3)   ;;  %v1305_v2 = vld [vmem:[%s1560_s1 + $0x10] sm:$0xff] (!%p165_p3)   ;;  %vm854_vm0 = vcmask (!%p165_p3), 1040384  }
   0x7   : > { %168 = sbr.rel (%p165_p3) target bundleno = 332 (0x14c), region = 28  ;;  %1215 = vmatprep.subr.bf16.mxu0 (!%p165_p3), %v1303_v0  ;;  %1263 = vmatprep.subr.bf16.mxu1 (!%p165_p3), %v1303_v0  ;;  %v1306_v3 = vld [vmem:[%s1560_s1 + $0x18] sm:$0xff] (!%p165_p3)   ;;  %v1307_v5 = vld [vmem:[%s1560_s1 + $0x20] sm:$0xff] (!%p165_p3)   ;;  %v1308_v6 = vld [vmem:[%s1560_s1 + $0x28] sm:$0xff] (!%p165_p3)  }
   0x8   : > { %1216 = vmatpush3.bf16.msra.mxu0 (!%p165_p3), %v1303_v0  ;;  %1271 = vmatpush3.bf16.msra.mxu1 (!%p165_p3), %v1303_v0  ;;  %v1309_v8 = vld [vmem:[%s1560_s1 + $0x30] sm:$0xff] (!%p165_p3)   ;;  %v1310_v9 = vld [vmem:[%s1560_s1 + $0x38] sm:$0xff] (!%p165_p3)  }
   0x9   : > { %1217 = vmatprep.subr.bf16.mxu0 (!%p165_p3), %v1304_v1  ;;  %1264 = vmatprep.subr.bf16.mxu1 (!%p165_p3), %v1304_v1 }
   0xc   : > { %1218 = vmatpush3.bf16.msra.mxu0 (!%p165_p3), %v1304_v1  ;;  %1272 = vmatpush3.bf16.msra.mxu1 (!%p165_p3), %v1304_v1 }
   0xd   : > { %1219 = vmatprep.subr.bf16.mxu0 (!%p165_p3), %v1305_v2  ;;  %1265 = vmatprep.subr.bf16.mxu1 (!%p165_p3), %v1305_v2 }
   0xe   : > { %s1568_s12 = smov (!%p206_p4, %s1341_s12), 1 }
   0xf   : > { %s1062_s22 = sshll.u32 %s1568_s12, 7  ;;  %s1003_s16 = sshll.u32 %s1568_s12, 1 }
  0x10   : > { %s1406_s25 = scalar_lea.vmem %s1559_s0, %s1062_s22  ;;  %1220 = vmatpush3.bf16.msra.mxu0 %v1305_v2  ;;  %1273 = vmatpush3.bf16.msra.mxu1 %v1305_v2  ;;  %s1448_s11 = scalar_lea.vmem %s1561_s2, %s1062_s22 }
  0x11   : > { %v1311_v4 = vld [vmem:[%s1406_s25] sm:$0xff]   ;;  %1221 = vmatprep.subr.bf16.mxu0 %v1306_v3  ;;  %1266 = vmatprep.subr.bf16.mxu1 %v1306_v3  ;;  %v1312_v10 = vld [vmem:[%s1406_s25 + $0x8] sm:$0xff]   ;;  %v1313_v12 = vld [vmem:[%s1406_s25 + $0x10] sm:$0xff]   ;;  %s233_s19 = scalar_lea.vmem %s1562_s3, %s1003_s16 }
  0x12   : > { %1231 = vmatprep.mubr.bf16.mxu0 %v1311_v4  ;;  %v1319_v7 = vld [vmem:[%s1406_s25 + $0x40] sm:$0xff]   ;;  %v1320_v11 = vld [vmem:[%s1406_s25 + $0x48] sm:$0xff]   ;;  %v1321_v13 = vld [vmem:[%s1406_s25 + $0x50] sm:$0xff]  }
  0x13   : > { %1247 = vmatprep.mubr.bf16.mxu1 %v1319_v7  ;;  %v1314_v14 = vld [vmem:[%s1406_s25 + $0x18] sm:$0xff]   ;;  %v1315_v16 = vld [vmem:[%s1406_s25 + $0x20] sm:$0xff]   ;;  %v1316_v18 = vld [vmem:[%s1406_s25 + $0x28] sm:$0xff]  }
  0x14   : > { %1222 = vmatpush3.bf16.msra.mxu0 %v1306_v3  ;;  %1274 = vmatpush3.bf16.msra.mxu1 %v1306_v3  ;;  %v1322_v15 = vld [vmem:[%s1406_s25 + $0x58] sm:$0xff]   ;;  %v1323_v17 = vld [vmem:[%s1406_s25 + $0x60] sm:$0xff]   ;;  %v1324_v19 = vld [vmem:[%s1406_s25 + $0x68] sm:$0xff]  }
  0x15   : > { %1223 = vmatprep.subr.bf16.mxu0 %v1307_v5  ;;  %1267 = vmatprep.subr.bf16.mxu1 %v1307_v5  ;;  %v1317_v20 = vld [vmem:[%s1406_s25 + $0x30] sm:$0xff]   ;;  %v1318_v22 = vld [vmem:[%s1406_s25 + $0x38] sm:$0xff]  }
  0x16   : > { %v1325_v21 = vld [vmem:[%s1406_s25 + $0x70] sm:$0xff]   ;;  %v1326_v23 = vld [vmem:[%s1406_s25 + $0x78] sm:$0xff]  }
  0x18   : > { %1224 = vmatpush3.bf16.msra.mxu0 %v1307_v5  ;;  %1275 = vmatpush3.bf16.msra.mxu1 %v1307_v5 }
  0x19   : > { %1225 = vmatprep.subr.bf16.mxu0 %v1308_v6  ;;  %1268 = vmatprep.subr.bf16.mxu1 %v1308_v6 }
  0x1c   : > { %1226 = vmatpush3.bf16.msra.mxu0 %v1308_v6  ;;  %1276 = vmatpush3.bf16.msra.mxu1 %v1308_v6 }
  0x1d   : > { %1227 = vmatprep.subr.bf16.mxu0 %v1309_v8  ;;  %1269 = vmatprep.subr.bf16.mxu1 %v1309_v8 }
  0x20   : > { %1228 = vmatpush3.bf16.msra.mxu0 %v1309_v8  ;;  %1277 = vmatpush3.bf16.msra.mxu1 %v1309_v8 }
  0x21   : > { %1229 = vmatprep.subr.bf16.mxu0 %v1310_v9  ;;  %1270 = vmatprep.subr.bf16.mxu1 %v1310_v9 }
  0x24   : > { %1230 = vmatpush3.bf16.msra.mxu0 %v1310_v9  ;;  %1278 = vmatpush3.bf16.msra.mxu1 %v1310_v9 }
  0x27   : > { %1232 = vmatmul.mubr.bf16.vlgmr.msra.gmra.mrb[0].mxu0 %v1312_v10  ;;  %1248 = vmatmul.mubr.bf16.vlgmr.msra.gmra.mrb[0].mxu1 %v1320_v11 }
  0x28   : > { %1235 = vmatprep.mubr.bf16.mxu0 %v1313_v12  ;;  %1251 = vmatprep.mubr.bf16.mxu1 %v1321_v13 }
  0x2f   : > { %1236 = vmatmul.mubr.bf16.gmra.mrb[4].mxu0 %v1314_v14  ;;  %1252 = vmatmul.mubr.bf16.gmra.mrb[4].mxu1 %v1322_v15 }
  0x30   : > { %1239 = vmatprep.mubr.bf16.mxu0 %v1315_v16  ;;  %1255 = vmatprep.mubr.bf16.mxu1 %v1323_v17 }
  0x37   : > { %1240 = vmatmul.mubr.bf16.gmra.mrb[8].mxu0 %v1316_v18  ;;  %1256 = vmatmul.mubr.bf16.gmra.mrb[8].mxu1 %v1324_v19 }
  0x38   : > { %1243 = vmatprep.mubr.bf16.mxu0 %v1317_v20  ;;  %1259 = vmatprep.mubr.bf16.mxu1 %v1325_v21 }
  0x3f   : > { %1244 = vmatmul.mubr.bf16.gmra.mrb[12].mxu0 %v1318_v22  ;;  %1260 = vmatmul.mubr.bf16.gmra.mrb[12].mxu1 %v1326_v23 }
  0xfa   : > { %v1233_v24 = vpop.f32.mrb[0].mxu0  ;;  %v1439_v25 = vpop.f32.mrb[0].mxu1 }
  0xfb   : > { %v461_v26 = vpop.f32.mrb[1].mxu0  ;;  %v1441_v27 = vpop.f32.mrb[1].mxu1  ;;  %v787_v39 = vmul.f32 %v1233_v24, %v1233_v24 }
  0xfc   : > { %v1234_v28 = vpop.f32.mrb[2].mxu0  ;;  %v1450_v29 = vpop.f32.mrb[2].mxu1  ;;  %v785_v30 = vmul.f32 %v461_v26, %v461_v26 }
  0xfd   : > { %v1104_v31 = vpack.c.bf16 %v1234_v28, %v1233_v24  ;;  %v464_v32 = vpop.f32.mrb[3].mxu0  ;;  %v1144_v33 = vpack.c.bf16 %v1450_v29, %v1439_v25  ;;  %v1454_v34 = vpop.f32.mrb[3].mxu1  ;;  %v788_v42 = vmul.f32 %v1234_v28, %v1234_v28 }
  0xfe   : > { %v1099_v35 = vpack.c.bf16 %v464_v32, %v461_v26  ;;  %v748_v36 = vadd.f32 %v464_v32, %v461_v26  ;;  %v786_v37 = vmul.f32 %v464_v32, %v464_v32  ;;  %v1139_v38 = vpack.c.bf16 %v1454_v34, %v1441_v27 }
  0xff   : > { %1176 = vst [vmem:[%s1448_s11 + $0x8] sm:$0xff] %v1104_v31   ;;  %1184 = vst [vmem:[%s1448_s11 + $0x48] sm:$0xff] %v1144_v33  }
 0x100   : > { %1100 = vst [vmem:[%s1448_s11] sm:$0xff] %v1099_v35   ;;  %v749_v40 = vadd.f32 %v1233_v24, %v748_v36  ;;  %v817_v41 = vadd.f32 %v786_v37, %v785_v30  ;;  %1183 = vst [vmem:[%s1448_s11 + $0x40] sm:$0xff] %v1139_v38  }
 0x102   : > { %v818_v43 = vadd.f32 %v817_v41, %v787_v39  ;;  %v1237_v44 = vpop.f32.mrb[4].mxu0  ;;  %v750_v45 = vadd.f32 %v1234_v28, %v749_v40  ;;  %v1462_v46 = vpop.f32.mrb[4].mxu1 }
 0x103   : > { %v477_v47 = vpop.f32.mrb[5].mxu0  ;;  %v1464_v48 = vpop.f32.mrb[5].mxu1  ;;  %v791_v63 = vmul.f32 %v1237_v44, %v1237_v44 }
 0x104   : > { %v751_v49 = vadd.f32 %v750_v45, %v477_v47  ;;  %v789_v50 = vmul.f32 %v477_v47, %v477_v47  ;;  %v819_v51 = vadd.f32 %v818_v43, %v788_v42  ;;  %v1238_v52 = vpop.f32.mrb[6].mxu0  ;;  %v1466_v53 = vpop.f32.mrb[6].mxu1 }
 0x105   : > { %v1114_v54 = vpack.c.bf16 %v1238_v52, %v1237_v44  ;;  %v480_v55 = vpop.f32.mrb[7].mxu0  ;;  %v1154_v56 = vpack.c.bf16 %v1466_v53, %v1462_v46  ;;  %v1470_v57 = vpop.f32.mrb[7].mxu1  ;;  %v792_v2 = vmul.f32 %v1238_v52, %v1238_v52 }
 0x106   : > { %v820_v58 = vadd.f32 %v819_v51, %v789_v50  ;;  %v1109_v59 = vpack.c.bf16 %v480_v55, %v477_v47  ;;  %v752_v60 = vadd.f32 %v751_v49, %v480_v55  ;;  %v790_v61 = vmul.f32 %v480_v55, %v480_v55 }
 0x107   : > { %1178 = vst [vmem:[%s1448_s11 + $0x18] sm:$0xff] %v1114_v54   ;;  %1186 = vst [vmem:[%s1448_s11 + $0x58] sm:$0xff] %v1154_v56   ;;  %v1149_v62 = vpack.c.bf16 %v1470_v57, %v1464_v48 }
 0x108   : > { %1177 = vst [vmem:[%s1448_s11 + $0x10] sm:$0xff] %v1109_v59   ;;  %v753_v0 = vadd.f32 %v1237_v44, %v752_v60  ;;  %v821_v1 = vadd.f32 %v820_v58, %v790_v61  ;;  %v801_v61 = vmul.f32 %v1441_v27, %v1441_v27 }
 0x109   : > { %1185 = vst [vmem:[%s1448_s11 + $0x50] sm:$0xff] %v1149_v62  }
 0x10a   : > { %v822_v3 = vadd.f32 %v821_v1, %v791_v63  ;;  %v1241_v4 = vpop.f32.mrb[8].mxu0  ;;  %v754_v5 = vadd.f32 %v1238_v52, %v753_v0  ;;  %v1478_v6 = vpop.f32.mrb[8].mxu1 }
 0x10b   : > { %v493_v7 = vpop.f32.mrb[9].mxu0  ;;  %v1480_v8 = vpop.f32.mrb[9].mxu1  ;;  %v795_v23 = vmul.f32 %v1241_v4, %v1241_v4 }
 0x10c   : > { %v755_v9 = vadd.f32 %v754_v5, %v493_v7  ;;  %v793_v10 = vmul.f32 %v493_v7, %v493_v7  ;;  %v823_v11 = vadd.f32 %v822_v3, %v792_v2  ;;  %v1242_v12 = vpop.f32.mrb[10].mxu0  ;;  %v1482_v13 = vpop.f32.mrb[10].mxu1  ;;  %v802_v2 = vmul.f32 %v1454_v34, %v1454_v34 }
 0x10d   : > { %v1124_v14 = vpack.c.bf16 %v1242_v12, %v1241_v4  ;;  %v496_v15 = vpop.f32.mrb[11].mxu0  ;;  %v1164_v16 = vpack.c.bf16 %v1482_v13, %v1478_v6  ;;  %v1486_v17 = vpop.f32.mrb[11].mxu1  ;;  %v796_v28 = vmul.f32 %v1242_v12, %v1242_v12  ;;  %v803_v3 = vmul.f32 %v1439_v25, %v1439_v25 }
 0x10e   : > { %v824_v18 = vadd.f32 %v823_v11, %v793_v10  ;;  %v1119_v19 = vpack.c.bf16 %v496_v15, %v493_v7  ;;  %v756_v20 = vadd.f32 %v755_v9, %v496_v15  ;;  %v794_v21 = vmul.f32 %v496_v15, %v496_v15 }
 0x10f   : > { %1180 = vst [vmem:[%s1448_s11 + $0x28] sm:$0xff] %v1124_v14   ;;  %1188 = vst [vmem:[%s1448_s11 + $0x68] sm:$0xff] %v1164_v16   ;;  %v1159_v22 = vpack.c.bf16 %v1486_v17, %v1480_v8  ;;  %v804_v7 = vmul.f32 %v1450_v29, %v1450_v29  ;;  %v806_v15 = vmul.f32 %v1470_v57, %v1470_v57 }
 0x110   : > { %1179 = vst [vmem:[%s1448_s11 + $0x20] sm:$0xff] %v1119_v19   ;;  %v757_v24 = vadd.f32 %v1241_v4, %v756_v20  ;;  %v825_v26 = vadd.f32 %v824_v18, %v794_v21 }
 0x111   : > { %1187 = vst [vmem:[%s1448_s11 + $0x60] sm:$0xff] %v1159_v22  }
 0x112   : > { %v826_v30 = vadd.f32 %v825_v26, %v795_v23  ;;  %v1245_v31 = vpop.f32.mrb[12].mxu0  ;;  %v758_v32 = vadd.f32 %v1242_v12, %v757_v24  ;;  %v1494_v33 = vpop.f32.mrb[12].mxu1  ;;  %v810_v24 = vmul.f32 %v1486_v17, %v1486_v17 }
 0x113   : > { %v509_v35 = vpop.f32.mrb[13].mxu0  ;;  %v573_v36 = vpop.f32.mrb[13].mxu1  ;;  %v799_v54 = vmul.f32 %v1245_v31, %v1245_v31 }
 0x114   : > { %v759_v37 = vadd.f32 %v758_v32, %v509_v35  ;;  %v797_v38 = vmul.f32 %v509_v35, %v509_v35  ;;  %v827_v39 = vadd.f32 %v826_v30, %v796_v28  ;;  %v1246_v40 = vpop.f32.mrb[14].mxu0  ;;  %v1496_v41 = vpop.f32.mrb[14].mxu1 }
 0x115   : > { %v1134_v42 = vpack.c.bf16 %v1246_v40, %v1245_v31  ;;  %v512_v43 = vpop.f32.mrb[15].mxu0  ;;  %v1174_v44 = vpack.c.bf16 %v1496_v41, %v1494_v33  ;;  %v576_v45 = vpop.f32.mrb[15].mxu1  ;;  %v800_v58 = vmul.f32 %v1246_v40, %v1246_v40 }
 0x116   : > { %v828_v47 = vadd.f32 %v827_v39, %v797_v38  ;;  %v1129_v49 = vpack.c.bf16 %v512_v43, %v509_v35  ;;  %v760_v50 = vadd.f32 %v759_v37, %v512_v43  ;;  %v798_v51 = vmul.f32 %v512_v43, %v512_v43 }
 0x117   : > { %1182 = vst [vmem:[%s1448_s11 + $0x38] sm:$0xff] %v1134_v42   ;;  %1190 = vst [vmem:[%s1448_s11 + $0x78] sm:$0xff] %v1174_v44   ;;  %v1169_v52 = vpack.c.bf16 %v576_v45, %v573_v36  ;;  %v814_v39 = vmul.f32 %v576_v45, %v576_v45  ;;  %v816_v42 = vmul.f32 %v1496_v41, %v1496_v41 }
 0x118   : > { %1181 = vst [vmem:[%s1448_s11 + $0x30] sm:$0xff] %v1129_v49   ;;  %v761_v55 = vadd.f32 %v1245_v31, %v760_v50  ;;  %v829_v56 = vadd.f32 %v828_v47, %v798_v51 }
 0x119   : > { %1189 = vst [vmem:[%s1448_s11 + $0x70] sm:$0xff] %v1169_v52  }
 0x11a   : > { %v830_v59 = vadd.f32 %v829_v56, %v799_v54  ;;  %v762_v60 = vadd.f32 %v1246_v40, %v761_v55 }
 0x11c   : > { %v763_v62 = vadd.f32 %v762_v60, %v1441_v27  ;;  %v831_v63 = vadd.f32 %v830_v59, %v800_v58  ;;  %v805_v27 = vmul.f32 %v1464_v48, %v1464_v48 }
 0x11e   : > { %v832_v0 = vadd.f32 %v831_v63, %v801_v61  ;;  %v764_v1 = vadd.f32 %v763_v62, %v1454_v34 }
 0x120   : > { %v765_v4 = vadd.f32 %v1439_v25, %v764_v1  ;;  %v833_v5 = vadd.f32 %v832_v0, %v802_v2  ;;  %v807_v25 = vmul.f32 %v1462_v46, %v1462_v46 }
 0x122   : > { %v834_v9 = vadd.f32 %v833_v5, %v803_v3  ;;  %v766_v10 = vadd.f32 %v1450_v29, %v765_v4  ;;  %v808_v29 = vmul.f32 %v1466_v53, %v1466_v53 }
 0x124   : > { %v767_v11 = vadd.f32 %v766_v10, %v1464_v48  ;;  %v835_v12 = vadd.f32 %v834_v9, %v804_v7  ;;  %v809_v48 = vmul.f32 %v1480_v8, %v1480_v8 }
 0x126   : > { %v836_v14 = vadd.f32 %v835_v12, %v805_v27  ;;  %v768_v34 = vadd.f32 %v767_v11, %v1470_v57 }
 0x128   : > { %v769_v16 = vadd.f32 %v1462_v46, %v768_v34  ;;  %v837_v18 = vadd.f32 %v836_v14, %v806_v15  ;;  %v811_v46 = vmul.f32 %v1478_v6, %v1478_v6 }
 0x12a   : > { %v838_v19 = vadd.f32 %v837_v18, %v807_v25  ;;  %v770_v20 = vadd.f32 %v1466_v53, %v769_v16  ;;  %v812_v53 = vmul.f32 %v1482_v13, %v1482_v13 }
 0x12c   : > { %v771_v21 = vadd.f32 %v770_v20, %v1480_v8  ;;  %v839_v22 = vadd.f32 %v838_v19, %v808_v29  ;;  %v813_v8 = vmul.f32 %v573_v36, %v573_v36 }
 0x12e   : > { %v840_v23 = vadd.f32 %v839_v22, %v809_v48  ;;  %v772_v57 = vadd.f32 %v771_v21, %v1486_v17  ;;  %v815_v17 = vmul.f32 %v1494_v33, %v1494_v33 }
 0x130   : > { %v773_v26 = vadd.f32 %v1478_v6, %v772_v57  ;;  %v841_v28 = vadd.f32 %v840_v23, %v810_v24 }
 0x132   : > { %v842_v30 = vadd.f32 %v841_v28, %v811_v46  ;;  %v774_v31 = vadd.f32 %v1482_v13, %v773_v26 }
 0x134   : > { %v775_v32 = vadd.f32 %v774_v31, %v573_v36  ;;  %v843_v35 = vadd.f32 %v842_v30, %v812_v53 }
 0x136   : > { %v844_v37 = vadd.f32 %v843_v35, %v813_v8  ;;  %v776_v38 = vadd.f32 %v775_v32, %v576_v45 }
 0x138   : > { %v777_v40 = vadd.f32 %v1494_v33, %v776_v38  ;;  %v845_v6 = vadd.f32 %v844_v37, %v814_v39 }
 0x13a   : > { %v778_v43 = vadd.f32 %v1496_v41, %v777_v40  ;;  %v846_v44 = vadd.f32 %v845_v6, %v815_v17 }
 0x13c   : > { %v779_v13 = vrot.slane %v778_v43, 4  ;;  %v847_v47 = vadd.f32 %v846_v44, %v816_v42 }
 0x13e   : > { %v780_v36 = vadd.f32 %v779_v13, %v778_v43  ;;  %v848_v49 = vrot.slane %v847_v47, 4 }
 0x140   : > { %v781_v50 = vrot.slane %v780_v36, 2  ;;  %v849_v51 = vadd.f32 %v848_v49, %v847_v47 }
 0x142   : > { %v782_v45 = vadd.f32 %v781_v50, %v780_v36  ;;  %v850_v52 = vrot.slane %v849_v51, 2 }
 0x144   : > { %v783_v54 = vrot.slane %v782_v45, 1  ;;  %v851_v55 = vadd.f32 %v850_v52, %v849_v51 }
 0x146   : > { %v852_v56 = vrot.slane %v851_v55, 1  ;;  %v784_v33 = vadd.f32 %v783_v54, %v782_v45 }
 0x148   : > { %v853_v41 = vadd.f32 %v852_v56, %v851_v55 }
 0x14a   : > { %v855_v58 = vsel %vm854_vm0, %v784_v33, %v853_v41 }
 0x14b   : > { %856 = vst [vmem:[%s233_s19] sm:$0x3] %v855_v58 }
 0x14c PF: > { %s14_s14 = sadd.s32 1, %s1349_s14   ;;  %s1563_s12 = smov %s1345_s13 }
 0x14d   : > { %p11_p5 = scmp.ge.s32.totalorder %s14_s14, 4   ;;  %s1564_s13 = smov %s1566_s15 }
 0x14f   :  { %13 = sbr.rel (!%p11_p5) target bundleno = 2 (0x2), region = 70 }

// kernel: bottleneck_forward.6
= control target key start
LH: loop header
LB: loop body
LE: loop exit
PB: predicated region body
PF: predicated region fallthrough
CT: control target
= control target key end

     0   :  { %s1546_s18 = smov 0   ;;  %s1548_s19 = smov 0   ;;  %s1826_s0 = inlined_call_operand.vmem [shape: bf16[2,16,16,128], index: 0, kind: input, shape index: {}]   ;;  %s1827_s1 = inlined_call_operand.vmem [shape: f32[1,128], index: 1, kind: input, shape index: {}]   ;;  %s1828_s2 = inlined_call_operand.vmem [shape: f32[1,128], index: 2, kind: input, shape index: {}]   ;;  %s1829_s3 = inlined_call_operand.vmem [shape: bf16[128,128], index: 3, kind: input, shape index: {}]   ;;  %s1830_s4 = inlined_call_operand.vmem [shape: bf16[2,16,16,128], index: 4, kind: output, shape index: {0}]   ;;  %s1831_s5 = inlined_call_operand.vmem [shape: f32[2,1,2,128], index: 5, kind: output, shape index: {1}]  }
   0x1   :  { %s1550_s20 = smov 0  }
   0x2 LB: > { %s28_s21 = sadd.s32 1, %s1510_s19  ;;  %p1114_p0 = scmp.ge.s32.totalorder %s1514_s20, 1  ;;  %s1514_s20 = sphi %s1550_s20, %s16_s20   ;;  %s1510_s19 = sphi %s1548_s19, %s1833_s19   ;;  %s1506_s18 = sphi %s1546_s18, %s1832_s18  }
   0x3   : > { %p30_p1 = scmp.ge.s32.totalorder %s28_s21, 2  ;;  %p214_p2 = scmp.lt.s32.totalorder %s1514_s20, 3 }
   0x5   : > { %s1835_s21 = smov (%p30_p1, %s28_s21), 0  ;;  %p215_p3 = pnand %p1114_p0, %p214_p2 }
   0x6   : > { %v1484_v0 = vld [vmem:[%s1829_s3] sm:$0xff] (!%p215_p3)   ;;  %p260_p4 = scmp.lt.s32.totalorder (!%p215_p3), %s1506_s18, 1  ;;  %v1485_v1 = vld [vmem:[%s1829_s3 + $0x8] sm:$0xff] (!%p215_p3)   ;;  %v1486_v2 = vld [vmem:[%s1829_s3 + $0x10] sm:$0xff] (!%p215_p3)   ;;  %vm970_vm0 = vcmask (!%p215_p3), 1040384  }
   0x7   : > { %218 = sbr.rel (%p215_p3) target bundleno = 332 (0x14c), region = 36  ;;  %1396 = vmatprep.subr.bf16.mxu0 (!%p215_p3), %v1484_v0  ;;  %1444 = vmatprep.subr.bf16.mxu1 (!%p215_p3), %v1484_v0  ;;  %v1487_v3 = vld [vmem:[%s1829_s3 + $0x18] sm:$0xff] (!%p215_p3)   ;;  %v1590_v5 = vld [vmem:[%s1827_s1] ss:$0 sm:$0xff] (!%p215_p3)  ;;  %v1489_v34 = vld [vmem:[%s1829_s3 + $0x28] sm:$0xff] (!%p215_p3)  }
   0x8   : > { %1397 = vmatpush3.bf16.msra.mxu0 (!%p215_p3), %v1484_v0  ;;  %1452 = vmatpush3.bf16.msra.mxu1 (!%p215_p3), %v1484_v0  ;;  %v1598_v11 = vld [vmem:[%s1828_s2] ss:$0 sm:$0xff] (!%p215_p3)  ;;  %v1490_v49 = vld [vmem:[%s1829_s3 + $0x30] sm:$0xff] (!%p215_p3)   ;;  %v1491_v63 = vld [vmem:[%s1829_s3 + $0x38] sm:$0xff] (!%p215_p3)  }
   0x9   : > { %1398 = vmatprep.subr.bf16.mxu0 (!%p215_p3), %v1485_v1  ;;  %1445 = vmatprep.subr.bf16.mxu1 (!%p215_p3), %v1485_v1  ;;  %v1488_v20 = vld [vmem:[%s1829_s3 + $0x20] sm:$0xff] (!%p215_p3)  }
   0xc   : > { %1399 = vmatpush3.bf16.msra.mxu0 (!%p215_p3), %v1485_v1  ;;  %1453 = vmatpush3.bf16.msra.mxu1 (!%p215_p3), %v1485_v1 }
   0xd   : > { %1400 = vmatprep.subr.bf16.mxu0 (!%p215_p3), %v1486_v2  ;;  %1446 = vmatprep.subr.bf16.mxu1 (!%p215_p3), %v1486_v2 }
   0xe   : > { %s1837_s18 = smov (!%p260_p4, %s1506_s18), 1 }
   0xf   : > { %s1164_s28 = sshll.u32 %s1837_s18, 7 }
  0x10   : > { %s1581_s6 = scalar_lea.vmem %s1826_s0, %s1164_s28  ;;  %1401 = vmatpush3.bf16.msra.mxu0 %v1486_v2  ;;  %1454 = vmatpush3.bf16.msra.mxu1 %v1486_v2  ;;  %s1723_s27 = scalar_lea.vmem %s1830_s4, %s1164_s28 }
  0x11   : > { %v1199_v4 = vld [vmem:[%s1581_s6] sm:$0xff]   ;;  %v1342_v8 = vld [vmem:[%s1581_s6 + $0x8] sm:$0xff]   ;;  %v1343_v9 = vld [vmem:[%s1581_s6 + $0x10] sm:$0xff]   ;;  %1402 = vmatprep.subr.bf16.mxu0 %v1487_v3  ;;  %1447 = vmatprep.subr.bf16.mxu1 %v1487_v3  ;;  %s1119_s28 = sshll.u32 %s1837_s18, 1 }
  0x12   : > { %v1200_v6 = vunpack.c.l.bf16 %v1199_v4  ;;  %v1201_v7 = vunpack.c.h.bf16 %v1199_v4  ;;  %v1344_v10 = vld [vmem:[%s1581_s6 + $0x18] sm:$0xff]   ;;  %v1204_v12 = vunpack.c.l.bf16 %v1342_v8  ;;  %v1205_v13 = vunpack.c.h.bf16 %v1342_v8  ;;  %v1345_v29 = vld [vmem:[%s1581_s6 + $0x20] sm:$0xff]   ;;  %v1346_v33 = vld [vmem:[%s1581_s6 + $0x28] sm:$0xff]  }
  0x13   : > { %v1208_v14 = vunpack.c.l.bf16 %v1343_v9  ;;  %v1209_v15 = vunpack.c.h.bf16 %v1343_v9  ;;  %v1212_v18 = vunpack.c.l.bf16 %v1344_v10  ;;  %v1213_v19 = vunpack.c.h.bf16 %v1344_v10  ;;  %v1347_v42 = vld [vmem:[%s1581_s6 + $0x30] sm:$0xff]   ;;  %v1627_v48 = vld [vmem:[%s1581_s6 + $0x38] sm:$0xff]   ;;  %v1349_v60 = vld [vmem:[%s1581_s6 + $0x40] sm:$0xff]  }
  0x14   : > { %v360_v16 = vmul.f32 %v1200_v6, %v1590_v5  ;;  %v361_v17 = vmul.f32 %v1201_v7, %v1590_v5  ;;  %v362_v21 = vmul.f32 %v1204_v12, %v1590_v5  ;;  %v363_v22 = vmul.f32 %v1205_v13, %v1590_v5  ;;  %1403 = vmatpush3.bf16.msra.mxu0 %v1487_v3  ;;  %v1351_v9 = vld [vmem:[%s1581_s6 + $0x50] sm:$0xff]  }
  0x15   : > { %v364_v23 = vmul.f32 %v1208_v14, %v1590_v5  ;;  %v365_v24 = vmul.f32 %v1209_v15, %v1590_v5  ;;  %v366_v27 = vmul.f32 %v1212_v18, %v1590_v5  ;;  %v367_v28 = vmul.f32 %v1213_v19, %v1590_v5  ;;  %1455 = vmatpush3.bf16.msra.mxu1 %v1487_v3  ;;  %v1350_v3 = vld [vmem:[%s1581_s6 + $0x48] sm:$0xff]   ;;  %v1352_v19 = vld [vmem:[%s1581_s6 + $0x58] sm:$0xff]  }
  0x16   : > { %v399_v25 = vadd.f32 %v1598_v11, %v360_v16  ;;  %v400_v26 = vadd.f32 %v1598_v11, %v361_v17  ;;  %v401_v32 = vadd.f32 %v1598_v11, %v362_v21  ;;  %1404 = vmatprep.subr.bf16.mxu0 %v1488_v20  ;;  %v402_v35 = vadd.f32 %v1598_v11, %v363_v22 }
  0x17   : > { %v403_v36 = vadd.f32 %v1598_v11, %v364_v23  ;;  %v404_v37 = vadd.f32 %v1598_v11, %v365_v24  ;;  %1448 = vmatprep.subr.bf16.mxu1 %v1488_v20  ;;  %v405_v39 = vadd.f32 %v1598_v11, %v366_v27  ;;  %v406_v40 = vadd.f32 %v1598_v11, %v367_v28 }
  0x18   : > { %v431_v30 = vmax.f32 %v399_v25, 0.0  ;;  %v432_v31 = vmax.f32 %v400_v26, 0.0  ;;  %v1216_v41 = vunpack.c.l.bf16 %v1345_v29  ;;  %v1217_v43 = vunpack.c.h.bf16 %v1345_v29  ;;  %1405 = vmatpush3.bf16.msra.mxu0 %v1488_v20 }
  0x19   : > { %v1220_v44 = vunpack.c.l.bf16 %v1346_v33  ;;  %v433_v45 = vmax.f32 %v401_v32, 0.0  ;;  %v1221_v47 = vunpack.c.h.bf16 %v1346_v33  ;;  %1406 = vmatprep.subr.bf16.mxu0 %v1489_v34  ;;  %v434_v50 = vmax.f32 %v402_v35, 0.0  ;;  %1456 = vmatpush3.bf16.msra.mxu1 %v1488_v20  ;;  %v1353_v32 = vld [vmem:[%s1581_s6 + $0x60] sm:$0xff]  }
  0x1a   : > { %v463_v38 = vpack.c.bf16 %v432_v31, %v431_v30  ;;  %v368_v46 = vmul.f32 %v1216_v41, %v1590_v5  ;;  %v435_v51 = vmax.f32 %v403_v36, 0.0  ;;  %v436_v52 = vmax.f32 %v404_v37, 0.0  ;;  %1449 = vmatprep.subr.bf16.mxu1 %v1489_v34 }
  0x1b   : > { %v1224_v53 = vunpack.c.l.bf16 %v1347_v42  ;;  %v437_v54 = vmax.f32 %v405_v39, 0.0  ;;  %v438_v55 = vmax.f32 %v406_v40, 0.0  ;;  %v369_v56 = vmul.f32 %v1217_v43, %v1590_v5 }
  0x1c   : > { %1412 = vmatprep.mubr.bf16.mxu0 %v463_v38  ;;  %v370_v57 = vmul.f32 %v1220_v44, %v1590_v5  ;;  %v1225_v58 = vunpack.c.h.bf16 %v1347_v42  ;;  %v1228_v59 = vunpack.c.l.bf16 %v1627_v48  ;;  %1407 = vmatpush3.bf16.msra.mxu0 %v1489_v34  ;;  %v1637_v61 = vadd.f32 %v1598_v11, %v368_v46 }
  0x1d   : > { %v371_v62 = vmul.f32 %v1221_v47, %v1590_v5  ;;  %1408 = vmatprep.subr.bf16.mxu0 %v1490_v49  ;;  %v464_v0 = vpack.c.bf16 %v434_v50, %v433_v45  ;;  %v465_v1 = vpack.c.bf16 %v436_v52, %v435_v51  ;;  %1457 = vmatpush3.bf16.msra.mxu1 %v1489_v34  ;;  %v1229_v7 = vunpack.c.h.bf16 %v1627_v48  ;;  %v1354_v45 = vld [vmem:[%s1581_s6 + $0x68] sm:$0xff]  }
  0x1e   : > { %v372_v2 = vmul.f32 %v1224_v53, %v1590_v5  ;;  %v1645_v4 = vpack.c.bf16 %v438_v55, %v437_v54  ;;  %v1648_v6 = vadd.f32 %v1598_v11, %v369_v56  ;;  %1450 = vmatprep.subr.bf16.mxu1 %v1490_v49  ;;  %v1232_v8 = vunpack.c.l.bf16 %v1349_v60  ;;  %v1355_v55 = vld [vmem:[%s1581_s6 + $0x70] sm:$0xff]  }
  0x1f   : > { %v1653_v10 = vadd.f32 %v1598_v11, %v370_v57  ;;  %v1656_v12 = vmul.f32 %v1225_v58, %v1590_v5  ;;  %v1659_v13 = vmul.f32 %v1228_v59, %v1590_v5  ;;  %v1233_v14 = vunpack.c.h.bf16 %v1349_v60 }
  0x20   : > { %1409 = vmatpush3.bf16.msra.mxu0 %v1490_v49  ;;  %v439_v15 = vmax.f32 %v1637_v61, 0.0  ;;  %v1663_v16 = vadd.f32 %v1598_v11, %v371_v62  ;;  %v376_v17 = vmul.f32 %v1232_v8, %v1590_v5  ;;  %v1236_v18 = vunpack.c.l.bf16 %v1350_v3 }
  0x21   : > { %1410 = vmatprep.subr.bf16.mxu0 %v1491_v63  ;;  %1458 = vmatpush3.bf16.msra.mxu1 %v1490_v49  ;;  %v1668_v20 = vadd.f32 %v1598_v11, %v372_v2  ;;  %v377_v21 = vmul.f32 %v1233_v14, %v1590_v5  ;;  %v1237_v22 = vunpack.c.h.bf16 %v1350_v3  ;;  %v1240_v23 = vunpack.c.l.bf16 %v1351_v9 }
  0x22   : > { %v440_v24 = vmax.f32 %v1648_v6, 0.0  ;;  %1451 = vmatprep.subr.bf16.mxu1 %v1491_v63  ;;  %v415_v25 = vadd.f32 %v1598_v11, %v376_v17  ;;  %v378_v26 = vmul.f32 %v1236_v18, %v1590_v5  ;;  %v1241_v27 = vunpack.c.h.bf16 %v1351_v9  ;;  %v1356_v17 = vld [vmem:[%s1581_s6 + $0x78] sm:$0xff]   ;;  %s287_s6 = scalar_lea.vmem %s1831_s5, %s1119_s28 }
  0x23   : > { %v416_v28 = vadd.f32 %v1598_v11, %v377_v21  ;;  %v379_v29 = vmul.f32 %v1237_v22, %v1590_v5  ;;  %v380_v30 = vmul.f32 %v1240_v23, %v1590_v5  ;;  %v1244_v31 = vunpack.c.l.bf16 %v1352_v19 }
  0x24   : > { %1411 = vmatpush3.bf16.msra.mxu0 %v1491_v63  ;;  %v447_v33 = vmax.f32 %v415_v25, 0.0  ;;  %v417_v34 = vadd.f32 %v1598_v11, %v378_v26  ;;  %v381_v35 = vmul.f32 %v1241_v27, %v1590_v5  ;;  %v1245_v36 = vunpack.c.h.bf16 %v1352_v19 }
  0x25   : > { %1459 = vmatpush3.bf16.msra.mxu1 %v1491_v63  ;;  %v448_v37 = vmax.f32 %v416_v28, 0.0  ;;  %v418_v38 = vadd.f32 %v1598_v11, %v379_v29  ;;  %v419_v39 = vadd.f32 %v1598_v11, %v380_v30  ;;  %v382_v40 = vmul.f32 %v1244_v31, %v1590_v5 }
  0x26   : > { %v449_v41 = vmax.f32 %v417_v34, 0.0  ;;  %v420_v42 = vadd.f32 %v1598_v11, %v381_v35  ;;  %v383_v43 = vmul.f32 %v1245_v36, %v1590_v5  ;;  %v1248_v44 = vunpack.c.l.bf16 %v1353_v32 }
  0x27   : > { %1413 = vmatmul.mubr.bf16.vlgmr.msra.gmra.mrb[0].mxu0 %v464_v0  ;;  %v471_v46 = vpack.c.bf16 %v448_v37, %v447_v33  ;;  %v450_v47 = vmax.f32 %v418_v38, 0.0  ;;  %v451_v49 = vmax.f32 %v419_v39, 0.0  ;;  %v421_v50 = vadd.f32 %v1598_v11, %v382_v40 }
  0x28   : > { %1416 = vmatprep.mubr.bf16.mxu0 %v465_v1  ;;  %v452_v51 = vmax.f32 %v420_v42, 0.0  ;;  %v422_v52 = vadd.f32 %v1598_v11, %v383_v43  ;;  %v1249_v53 = vunpack.c.h.bf16 %v1353_v32  ;;  %v384_v54 = vmul.f32 %v1248_v44, %v1590_v5 }
  0x29   : > { %1428 = vmatprep.mubr.bf16.mxu1 %v471_v46  ;;  %v472_v56 = vpack.c.bf16 %v450_v47, %v449_v41  ;;  %v453_v57 = vmax.f32 %v421_v50, 0.0  ;;  %v1252_v58 = vunpack.c.l.bf16 %v1354_v45  ;;  %v1253_v59 = vunpack.c.h.bf16 %v1354_v45 }
  0x2a   : > { %v473_v60 = vpack.c.bf16 %v452_v51, %v451_v49  ;;  %v454_v61 = vmax.f32 %v422_v52, 0.0  ;;  %v385_v62 = vmul.f32 %v1249_v53, %v1590_v5  ;;  %v423_v63 = vadd.f32 %v1598_v11, %v384_v54 }
  0x2b   : > { %1429 = vmatmul.mubr.bf16.vlgmr.msra.gmra.mrb[0].mxu1 %v472_v56  ;;  %v386_v0 = vmul.f32 %v1252_v58, %v1590_v5  ;;  %v387_v1 = vmul.f32 %v1253_v59, %v1590_v5  ;;  %v1256_v2 = vunpack.c.l.bf16 %v1355_v55  ;;  %v1257_v3 = vunpack.c.h.bf16 %v1355_v55 }
  0x2c   : > { %v467_v6 = vpack.c.bf16 %v440_v24, %v439_v15  ;;  %v412_v8 = vadd.f32 %v1598_v11, %v1656_v12  ;;  %1432 = vmatprep.mubr.bf16.mxu1 %v473_v60  ;;  %v424_v9 = vadd.f32 %v1598_v11, %v385_v62  ;;  %v455_v14 = vmax.f32 %v423_v63, 0.0 }
  0x2d   : > { %v441_v18 = vmax.f32 %v1653_v10, 0.0  ;;  %v375_v19 = vmul.f32 %v1229_v7, %v1590_v5  ;;  %v388_v21 = vmul.f32 %v1256_v2, %v1590_v5  ;;  %v389_v22 = vmul.f32 %v1257_v3, %v1590_v5 }
  0x2e   : > { %v442_v15 = vmax.f32 %v1663_v16, 0.0  ;;  %v443_v23 = vmax.f32 %v1668_v20, 0.0  ;;  %v474_v12 = vpack.c.bf16 %v454_v61, %v453_v57  ;;  %v456_v24 = vmax.f32 %v424_v9, 0.0 }
  0x2f   : > { %1417 = vmatmul.mubr.bf16.gmra.mrb[4].mxu0 %v1645_v4  ;;  %v425_v25 = vadd.f32 %v1598_v11, %v386_v0  ;;  %v426_v10 = vadd.f32 %v1598_v11, %v387_v1  ;;  %v1260_v26 = vunpack.c.l.bf16 %v1356_v17  ;;  %v1261_v27 = vunpack.c.h.bf16 %v1356_v17 }
  0x30   : > { %1420 = vmatprep.mubr.bf16.mxu0 %v467_v6  ;;  %v444_v48 = vmax.f32 %v412_v8, 0.0  ;;  %v475_v7 = vpack.c.bf16 %v456_v24, %v455_v14  ;;  %v427_v28 = vadd.f32 %v1598_v11, %v388_v21  ;;  %v428_v29 = vadd.f32 %v1598_v11, %v389_v22 }
  0x31   : > { %v468_v16 = vpack.c.bf16 %v442_v15, %v441_v18  ;;  %v413_v20 = vadd.f32 %v1598_v11, %v1659_v13  ;;  %v414_v30 = vadd.f32 %v1598_v11, %v375_v19  ;;  %v457_v4 = vmax.f32 %v425_v25, 0.0 }
  0x32   : > { %v458_v31 = vmax.f32 %v426_v10, 0.0  ;;  %v390_v32 = vmul.f32 %v1260_v26, %v1590_v5  ;;  %v391_v33 = vmul.f32 %v1261_v27, %v1590_v5  ;;  %v469_v34 = vpack.c.bf16 %v444_v48, %v443_v23 }
  0x33   : > { %1433 = vmatmul.mubr.bf16.gmra.mrb[4].mxu1 %v474_v12  ;;  %v459_v35 = vmax.f32 %v427_v28, 0.0  ;;  %v460_v36 = vmax.f32 %v428_v29, 0.0  ;;  %v445_v37 = vmax.f32 %v413_v20, 0.0  ;;  %v446_v38 = vmax.f32 %v414_v30, 0.0 }
  0x34   : > { %1436 = vmatprep.mubr.bf16.mxu1 %v475_v7  ;;  %v476_v39 = vpack.c.bf16 %v458_v31, %v457_v4  ;;  %v429_v13 = vadd.f32 %v1598_v11, %v390_v32  ;;  %v430_v40 = vadd.f32 %v1598_v11, %v391_v33 }
  0x35   : > { %v477_v41 = vpack.c.bf16 %v460_v36, %v459_v35  ;;  %v470_v42 = vpack.c.bf16 %v446_v38, %v445_v37 }
  0x36   : > { %v461_v43 = vmax.f32 %v429_v13, 0.0  ;;  %v462_v44 = vmax.f32 %v430_v40, 0.0 }
  0x37   : > { %1421 = vmatmul.mubr.bf16.gmra.mrb[8].mxu0 %v468_v16 }
  0x38   : > { %1424 = vmatprep.mubr.bf16.mxu0 %v469_v34  ;;  %v478_v5 = vpack.c.bf16 %v462_v44, %v461_v43 }
  0x3b   : > { %1437 = vmatmul.mubr.bf16.gmra.mrb[8].mxu1 %v476_v39 }
  0x3c   : > { %1440 = vmatprep.mubr.bf16.mxu1 %v477_v41 }
  0x3f   : > { %1425 = vmatmul.mubr.bf16.gmra.mrb[12].mxu0 %v470_v42 }
  0x43   : > { %1441 = vmatmul.mubr.bf16.gmra.mrb[12].mxu1 %v478_v5 }
  0xfa   : > { %v1414_v45 = vpop.f32.mrb[0].mxu0 }
  0xfb   : > { %v577_v46 = vpop.f32.mrb[1].mxu0  ;;  %v903_v56 = vmul.f32 %v1414_v45, %v1414_v45 }
  0xfc   : > { %v1415_v11 = vpop.f32.mrb[2].mxu0  ;;  %v901_v50 = vmul.f32 %v577_v46, %v577_v46 }
  0xfd   : > { %v1270_v47 = vpack.c.bf16 %v1415_v11, %v1414_v45  ;;  %v580_v49 = vpop.f32.mrb[3].mxu0  ;;  %v904_v62 = vmul.f32 %v1415_v11, %v1415_v11 }
  0xfe   : > { %v1265_v51 = vpack.c.bf16 %v580_v49, %v577_v46  ;;  %v864_v52 = vadd.f32 %v580_v49, %v577_v46  ;;  %v902_v53 = vmul.f32 %v580_v49, %v580_v49  ;;  %v1725_v54 = vpop.f32.mrb[0].mxu1 }
  0xff   : > { %1357 = vst [vmem:[%s1723_s27 + $0x8] sm:$0xff] %v1270_v47   ;;  %v1728_v55 = vpop.f32.mrb[1].mxu1 }
 0x100   : > { %1266 = vst [vmem:[%s1723_s27] sm:$0xff] %v1265_v51   ;;  %v865_v57 = vadd.f32 %v1414_v45, %v864_v52  ;;  %v933_v58 = vadd.f32 %v902_v53, %v901_v50  ;;  %v1731_v59 = vpop.f32.mrb[2].mxu1 }
 0x101   : > { %v1310_v60 = vpack.c.bf16 %v1731_v59, %v1725_v54  ;;  %v1735_v61 = vpop.f32.mrb[3].mxu1 }
 0x102   : > { %v934_v63 = vadd.f32 %v933_v58, %v903_v56  ;;  %v1418_v0 = vpop.f32.mrb[4].mxu0  ;;  %v866_v1 = vadd.f32 %v1415_v11, %v865_v57  ;;  %v1305_v2 = vpack.c.bf16 %v1735_v61, %v1728_v55 }
 0x103   : > { %v593_v3 = vpop.f32.mrb[5].mxu0  ;;  %1365 = vst [vmem:[%s1723_s27 + $0x48] sm:$0xff] %v1310_v60   ;;  %v907_v24 = vmul.f32 %v1418_v0, %v1418_v0 }
 0x104   : > { %v867_v6 = vadd.f32 %v866_v1, %v593_v3  ;;  %v905_v8 = vmul.f32 %v593_v3, %v593_v3  ;;  %v935_v9 = vadd.f32 %v934_v63, %v904_v62  ;;  %v1419_v14 = vpop.f32.mrb[6].mxu0  ;;  %1364 = vst [vmem:[%s1723_s27 + $0x40] sm:$0xff] %v1305_v2  }
 0x105   : > { %v1280_v17 = vpack.c.bf16 %v1419_v14, %v1418_v0  ;;  %v596_v18 = vpop.f32.mrb[7].mxu0  ;;  %v908_v7 = vmul.f32 %v1419_v14, %v1419_v14 }
 0x106   : > { %v936_v19 = vadd.f32 %v935_v9, %v905_v8  ;;  %v1275_v21 = vpack.c.bf16 %v596_v18, %v593_v3  ;;  %v868_v22 = vadd.f32 %v867_v6, %v596_v18  ;;  %v906_v15 = vmul.f32 %v596_v18, %v596_v18  ;;  %v1741_v23 = vpop.f32.mrb[4].mxu1 }
 0x107   : > { %1359 = vst [vmem:[%s1723_s27 + $0x18] sm:$0xff] %v1280_v17   ;;  %v1744_v12 = vpop.f32.mrb[5].mxu1  ;;  %v917_v17 = vmul.f32 %v1728_v55, %v1728_v55 }
 0x108   : > { %1358 = vst [vmem:[%s1723_s27 + $0x10] sm:$0xff] %v1275_v21   ;;  %v869_v25 = vadd.f32 %v1418_v0, %v868_v22  ;;  %v937_v10 = vadd.f32 %v936_v19, %v906_v15  ;;  %v1747_v26 = vpop.f32.mrb[6].mxu1 }
 0x109   : > { %v1320_v27 = vpack.c.bf16 %v1747_v26, %v1741_v23  ;;  %v1751_v48 = vpop.f32.mrb[7].mxu1 }
 0x10a   : > { %v938_v28 = vadd.f32 %v937_v10, %v907_v24  ;;  %v1422_v29 = vpop.f32.mrb[8].mxu0  ;;  %v870_v16 = vadd.f32 %v1419_v14, %v869_v25  ;;  %v1315_v20 = vpack.c.bf16 %v1751_v48, %v1744_v12 }
 0x10b   : > { %v609_v30 = vpop.f32.mrb[9].mxu0  ;;  %1367 = vst [vmem:[%s1723_s27 + $0x58] sm:$0xff] %v1320_v27   ;;  %v911_v41 = vmul.f32 %v1422_v29, %v1422_v29 }
 0x10c   : > { %v871_v4 = vadd.f32 %v870_v16, %v609_v30  ;;  %v909_v31 = vmul.f32 %v609_v30, %v609_v30  ;;  %v939_v32 = vadd.f32 %v938_v28, %v908_v7  ;;  %v1423_v33 = vpop.f32.mrb[10].mxu0  ;;  %1366 = vst [vmem:[%s1723_s27 + $0x50] sm:$0xff] %v1315_v20   ;;  %v918_v28 = vmul.f32 %v1735_v61, %v1735_v61 }
 0x10d   : > { %v1290_v34 = vpack.c.bf16 %v1423_v33, %v1422_v29  ;;  %v612_v35 = vpop.f32.mrb[11].mxu0  ;;  %v912_v46 = vmul.f32 %v1423_v33, %v1423_v33 }
 0x10e   : > { %v940_v36 = vadd.f32 %v939_v32, %v909_v31  ;;  %v1285_v37 = vpack.c.bf16 %v612_v35, %v609_v30  ;;  %v872_v38 = vadd.f32 %v871_v4, %v612_v35  ;;  %v910_v39 = vmul.f32 %v612_v35, %v612_v35  ;;  %v1757_v13 = vpop.f32.mrb[8].mxu1 }
 0x10f   : > { %1361 = vst [vmem:[%s1723_s27 + $0x28] sm:$0xff] %v1290_v34   ;;  %v1760_v40 = vpop.f32.mrb[9].mxu1  ;;  %v920_v30 = vmul.f32 %v1731_v59, %v1731_v59  ;;  %v921_v31 = vmul.f32 %v1744_v12, %v1744_v12  ;;  %v922_v35 = vmul.f32 %v1751_v48, %v1751_v48 }
 0x110   : > { %1360 = vst [vmem:[%s1723_s27 + $0x20] sm:$0xff] %v1285_v37   ;;  %v873_v42 = vadd.f32 %v1422_v29, %v872_v38  ;;  %v941_v43 = vadd.f32 %v940_v36, %v910_v39  ;;  %v1763_v44 = vpop.f32.mrb[10].mxu1  ;;  %v919_v29 = vmul.f32 %v1725_v54, %v1725_v54 }
 0x111   : > { %v1330_v5 = vpack.c.bf16 %v1763_v44, %v1757_v13  ;;  %v1767_v45 = vpop.f32.mrb[11].mxu1 }
 0x112   : > { %v942_v11 = vadd.f32 %v941_v43, %v911_v41  ;;  %v1426_v47 = vpop.f32.mrb[12].mxu0  ;;  %v874_v49 = vadd.f32 %v1423_v33, %v873_v42  ;;  %v1325_v50 = vpack.c.bf16 %v1767_v45, %v1760_v40 }
 0x113   : > { %v625_v51 = vpop.f32.mrb[13].mxu0  ;;  %1369 = vst [vmem:[%s1723_s27 + $0x68] sm:$0xff] %v1330_v5   ;;  %v915_v6 = vmul.f32 %v1426_v47, %v1426_v47  ;;  %v926_v5 = vmul.f32 %v1767_v45, %v1767_v45 }
 0x114   : > { %v875_v52 = vadd.f32 %v874_v49, %v625_v51  ;;  %v913_v53 = vmul.f32 %v625_v51, %v625_v51  ;;  %v943_v56 = vadd.f32 %v942_v11, %v912_v46  ;;  %v1427_v57 = vpop.f32.mrb[14].mxu0  ;;  %1368 = vst [vmem:[%s1723_s27 + $0x60] sm:$0xff] %v1325_v50  }
 0x115   : > { %v1300_v58 = vpack.c.bf16 %v1427_v57, %v1426_v47  ;;  %v628_v60 = vpop.f32.mrb[15].mxu0  ;;  %v916_v21 = vmul.f32 %v1427_v57, %v1427_v57 }
 0x116   : > { %v944_v62 = vadd.f32 %v943_v56, %v913_v53  ;;  %v1295_v63 = vpack.c.bf16 %v628_v60, %v625_v51  ;;  %v876_v0 = vadd.f32 %v875_v52, %v628_v60  ;;  %v914_v1 = vmul.f32 %v628_v60, %v628_v60  ;;  %v1442_v2 = vpop.f32.mrb[12].mxu1 }
 0x117   : > { %1363 = vst [vmem:[%s1723_s27 + $0x38] sm:$0xff] %v1300_v58   ;;  %v689_v3 = vpop.f32.mrb[13].mxu1 }
 0x118   : > { %1362 = vst [vmem:[%s1723_s27 + $0x30] sm:$0xff] %v1295_v63   ;;  %v877_v8 = vadd.f32 %v1426_v47, %v876_v0  ;;  %v945_v9 = vadd.f32 %v944_v62, %v914_v1  ;;  %v1443_v14 = vpop.f32.mrb[14].mxu1 }
 0x119   : > { %v1340_v18 = vpack.c.bf16 %v1443_v14, %v1442_v2  ;;  %v692_v19 = vpop.f32.mrb[15].mxu1  ;;  %v932_v60 = vmul.f32 %v1443_v14, %v1443_v14 }
 0x11a   : > { %v946_v22 = vadd.f32 %v945_v9, %v915_v6  ;;  %v878_v15 = vadd.f32 %v1427_v57, %v877_v8  ;;  %v1335_v24 = vpack.c.bf16 %v692_v19, %v689_v3  ;;  %v930_v56 = vmul.f32 %v692_v19, %v692_v19 }
 0x11b   : > { %1371 = vst [vmem:[%s1723_s27 + $0x78] sm:$0xff] %v1340_v18   ;;  %v931_v57 = vmul.f32 %v1442_v2, %v1442_v2 }
 0x11c   : > { %v879_v25 = vadd.f32 %v878_v15, %v1728_v55  ;;  %v947_v10 = vadd.f32 %v946_v22, %v916_v21  ;;  %1370 = vst [vmem:[%s1723_s27 + $0x70] sm:$0xff] %v1335_v24  }
 0x11e   : > { %v948_v27 = vadd.f32 %v947_v10, %v917_v17  ;;  %v880_v7 = vadd.f32 %v879_v25, %v1735_v61 }
 0x120   : > { %v881_v16 = vadd.f32 %v1725_v54, %v880_v7  ;;  %v949_v20 = vadd.f32 %v948_v27, %v918_v28  ;;  %v923_v54 = vmul.f32 %v1741_v23, %v1741_v23 }
 0x122   : > { %v950_v4 = vadd.f32 %v949_v20, %v919_v29  ;;  %v882_v55 = vadd.f32 %v1731_v59, %v881_v16  ;;  %v924_v59 = vmul.f32 %v1747_v26, %v1747_v26 }
 0x124   : > { %v883_v32 = vadd.f32 %v882_v55, %v1744_v12  ;;  %v951_v33 = vadd.f32 %v950_v4, %v920_v30  ;;  %v925_v12 = vmul.f32 %v1760_v40, %v1760_v40 }
 0x126   : > { %v952_v34 = vadd.f32 %v951_v33, %v921_v31  ;;  %v884_v61 = vadd.f32 %v883_v32, %v1751_v48 }
 0x128   : > { %v885_v36 = vadd.f32 %v1741_v23, %v884_v61  ;;  %v953_v37 = vadd.f32 %v952_v34, %v922_v35  ;;  %v927_v23 = vmul.f32 %v1757_v13, %v1757_v13 }
 0x12a   : > { %v954_v38 = vadd.f32 %v953_v37, %v923_v54  ;;  %v886_v39 = vadd.f32 %v1747_v26, %v885_v36  ;;  %v928_v26 = vmul.f32 %v1763_v44, %v1763_v44 }
 0x12c   : > { %v887_v41 = vadd.f32 %v886_v39, %v1760_v40  ;;  %v955_v42 = vadd.f32 %v954_v38, %v924_v59  ;;  %v929_v40 = vmul.f32 %v689_v3, %v689_v3 }
 0x12e   : > { %v956_v43 = vadd.f32 %v955_v42, %v925_v12  ;;  %v888_v48 = vadd.f32 %v887_v41, %v1767_v45 }
 0x130   : > { %v889_v46 = vadd.f32 %v1757_v13, %v888_v48  ;;  %v957_v11 = vadd.f32 %v956_v43, %v926_v5 }
 0x132   : > { %v958_v47 = vadd.f32 %v957_v11, %v927_v23  ;;  %v890_v49 = vadd.f32 %v1763_v44, %v889_v46 }
 0x134   : > { %v891_v50 = vadd.f32 %v890_v49, %v689_v3  ;;  %v959_v51 = vadd.f32 %v958_v47, %v928_v26 }
 0x136   : > { %v960_v52 = vadd.f32 %v959_v51, %v929_v40  ;;  %v892_v53 = vadd.f32 %v891_v50, %v692_v19 }
 0x138   : > { %v893_v45 = vadd.f32 %v1442_v2, %v892_v53  ;;  %v961_v58 = vadd.f32 %v960_v52, %v930_v56 }
 0x13a   : > { %v894_v62 = vadd.f32 %v1443_v14, %v893_v45  ;;  %v962_v13 = vadd.f32 %v961_v58, %v931_v57 }
 0x13c   : > { %v895_v63 = vrot.slane %v894_v62, 4  ;;  %v963_v0 = vadd.f32 %v962_v13, %v932_v60 }
 0x13e   : > { %v896_v1 = vadd.f32 %v895_v63, %v894_v62  ;;  %v964_v6 = vrot.slane %v963_v0, 4 }
 0x140   : > { %v897_v8 = vrot.slane %v896_v1, 2  ;;  %v965_v9 = vadd.f32 %v964_v6, %v963_v0 }
 0x142   : > { %v898_v44 = vadd.f32 %v897_v8, %v896_v1  ;;  %v966_v17 = vrot.slane %v965_v9, 2 }
 0x144   : > { %v899_v3 = vrot.slane %v898_v44, 1  ;;  %v967_v18 = vadd.f32 %v966_v17, %v965_v9 }
 0x146   : > { %v968_v21 = vrot.slane %v967_v18, 1  ;;  %v900_v2 = vadd.f32 %v899_v3, %v898_v44 }
 0x148   : > { %v969_v14 = vadd.f32 %v968_v21, %v967_v18 }
 0x14a   : > { %v971_v19 = vsel %vm970_vm0, %v900_v2, %v969_v14 }
 0x14b   : > { %972 = vst [vmem:[%s287_s6] sm:$0x3] %v971_v19 }
 0x14c PF: > { %s16_s20 = sadd.s32 1, %s1514_s20   ;;  %s1832_s18 = smov %s1510_s19 }
 0x14d   : > { %p13_p5 = scmp.ge.s32.totalorder %s16_s20, 4   ;;  %s1833_s19 = smov %s1835_s21 }
 0x14f   :  { %15 = sbr.rel (!%p13_p5) target bundleno = 2 (0x2), region = 78 }

// kernel: bottleneck_forward.5
= control target key start
LH: loop header
LB: loop body
LE: loop exit
PB: predicated region body
PF: predicated region fallthrough
CT: control target
= control target key end

     0   :  { %s5854_s18 = smov 0   ;;  %s7189_s0 = inlined_call_operand.vmem [shape: bf16[2,16,16,128], index: 0, kind: input, shape index: {}]   ;;  %s7190_s1 = inlined_call_operand.vmem [shape: f32[1,128], index: 1, kind: input, shape index: {}]   ;;  %s7191_s2 = inlined_call_operand.vmem [shape: f32[1,128], index: 2, kind: input, shape index: {}]   ;;  %s7192_s3 = inlined_call_operand.vmem [shape: bf16[1152,128], index: 3, kind: input, shape index: {}]   ;;  %s7193_s4 = inlined_call_operand.vmem [shape: bf16[2,16,16,128], index: 4, kind: output, shape index: {0}]   ;;  %s7194_s5 = inlined_call_operand.vmem [shape: f32[2,2,128], index: 5, kind: output, shape index: {1}]  }
   0x1 LB: > { %s4388_s19 = sadd.s32 4294967295, %s5821_s18   ;;  %p4392_p0 = scmp.ge.s32.totalorder %s5821_s18, 1  ;;  %s5821_s18 = sphi %s5854_s18, %s16_s18  }
   0x2   : > { %p190_p1 = scmp.lt.s32.totalorder %s5821_s18, 3 }
   0x4   : > { %p191_p2 = pnand %p4392_p0, %p190_p1 }
   0x6   : > { %194 = sbr.rel (%p191_p2) target bundleno = 639 (0x27f), region = 36 }
   0xd   : > { %v5865_v0 = vld [vmem:[%s7192_s3 + $0x140] sm:$0xff]   ;;  %v5878_v3 = vld [vmem:[%s7192_s3 + $0x148] sm:$0xff]   ;;  %v5890_v6 = vld [vmem:[%s7192_s3 + $0x150] sm:$0xff]   ;;  %v5823_v8 = vmov 0   ;;  %p222_p3 = scmp.lt.s32.totalorder %s4388_s19, 1  ;;  %vm434_vm0 = vcmask 1040384  }
   0xe   : > { %v5612_v1 = vld [vmem:[%s7192_s3 + $0x100] sm:$0xff]   ;;  %5426 = vmatprep.subr.bf16.mxu1 %v5865_v0  ;;  %v5615_v4 = vld [vmem:[%s7192_s3 + $0x108] sm:$0xff]   ;;  %v5618_v7 = vld [vmem:[%s7192_s3 + $0x110] sm:$0xff]   ;;  %427 = vst [vmem:[#allocation2] sm:$0xf] %v5823_v8  ;;  %vm950_vm6 = vcmask 1043456  }
   0xf   : > { %v5613_v2 = vld [vmem:[%s7192_s3 + $0xc0] sm:$0xff]   ;;  %5434 = vmatpush3.bf16.msra.mxu1 %v5865_v0  ;;  %4874 = vmatprep.subr.bf16.mxu0 %v5612_v1  ;;  %v5616_v5 = vld [vmem:[%s7192_s3 + $0xc8] sm:$0xff]   ;;  %428 = vst [vmem:[#allocation2 + $0x4] sm:$0xf] %v5823_v8  ;;  %429 = vst [vmem:[#allocation2 + $0x8] sm:$0x1] %v5823_v8 }
  0x10   : > { %4875 = vmatpush3.bf16.msra.mxu0 %v5613_v2  ;;  %5427 = vmatprep.subr.bf16.mxu1 %v5878_v3  ;;  %431 = vst [vmem:[#allocation2 + $0xcc] sm:$0xf] %v5823_v8  ;;  %432 = vst [vmem:[#allocation2 + $0xd0] sm:$0xf] %v5823_v8  ;;  %v5619_v9 = vld [vmem:[%s7192_s3 + $0xd0] sm:$0xff]   ;;  %v5903_v10 = vld [vmem:[%s7192_s3 + $0x158] sm:$0xff]  }
  0x11   : > { %4876 = vmatprep.subr.bf16.mxu0 %v5615_v4  ;;  %433 = vst [vmem:[#allocation2 + $0xd4] sm:$0x1] %v5823_v8  ;;  %v5621_v11 = vld [vmem:[%s7192_s3 + $0x118] sm:$0xff]   ;;  %v5918_v13 = vld [vmem:[%s7192_s3 + $0x160] sm:$0xff]   ;;  %s7208_s19 = smov (!%p222_p3, %s4388_s19), 1  ;;  %v5626_v16 = vld [vmem:[%s7192_s3 + $0x168] sm:$0xff]  }
  0x12   : > { %v5622_v12 = vld [vmem:[%s7192_s3 + $0xd8] sm:$0xff]   ;;  %v5624_v14 = vld [vmem:[%s7192_s3 + $0x120] sm:$0xff]   ;;  %v5627_v17 = vld [vmem:[%s7192_s3 + $0x128] sm:$0xff]   ;;  %s4634_s6 = sshll.u32 %s7208_s19, 7  ;;  %vm435_vm1 = vsmask.f32 256 }
  0x13   : > { %5435 = vmatpush3.bf16.msra.mxu1 %v5878_v3  ;;  %v5625_v15 = vld [vmem:[%s7192_s3 + $0xe0] sm:$0xff]   ;;  %v5628_v18 = vld [vmem:[%s7192_s3 + $0xe8] sm:$0xff]   ;;  %v5629_v19 = vld [vmem:[%s7192_s3 + $0x170] sm:$0xff]   ;;  %s5951_s13 = scalar_lea.vmem %s7189_s0, %s4634_s6  ;;  %vm491_vm2 = vsmask.f32 7938  ;;  %vm1465_vm9 = vcmask 1046528   ;;  %s7133_s8 = scalar_lea.vmem %s7193_s4, %s4634_s6 }
  0x14   : > { %4877 = vmatpush3.bf16.msra.mxu0 %v5616_v5  ;;  %5428 = vmatprep.subr.bf16.mxu1 %v5890_v6  ;;  %v5630_v20 = vld [vmem:[%s7192_s3 + $0x130] sm:$0xff]   ;;  %v5632_v22 = vld [vmem:[%s7192_s3 + $0x178] sm:$0xff]   ;;  %v4851_v24 = vld [vmem:[%s5951_s13 + $0x40] sm:$0xff]   ;;  %vm627_vm5 = vsmask.f32 4368  ;;  %s4397_s6 = sshll.u32 %s7208_s19, 1 }
  0x15   : > { %4878 = vmatprep.subr.bf16.mxu0 %v5618_v7  ;;  %v5631_v21 = vld [vmem:[%s7192_s3 + $0xf0] sm:$0xff]   ;;  %v5633_v23 = vld [vmem:[%s7192_s3 + $0x138] sm:$0xff]   ;;  %v5969_v25 = vld [vmem:[%s7190_s1] ss:$0 sm:$0xff]  ;;  %v4734_v27 = vunpack.c.l.bf16 %v4851_v24  ;;  %v4735_v28 = vunpack.c.h.bf16 %v4851_v24  ;;  %vm1256_vm10 = vsmask.f32 7424  ;;  %s235_s11 = scalar_lea.vmem %s7194_s5, %s4397_s6 }
  0x16   : > { %v5974_v26 = vld [vmem:[%s7191_s2] ss:$0 sm:$0xff]  ;;  %v464_v29 = vld [vmem:[#allocation2 + $0x6c] sm:$0x1]  ;;  %vm5978_vm3 = vmand %vm434_vm0, %vm435_vm1 }
  0x17   : > { %5436 = vmatpush3.bf16.msra.mxu1 %v5890_v6  ;;  %v520_v31 = vld [vmem:[#allocation2 + $0x74] sm:$0x1]  ;;  %v324_v32 = vmul.f32 %v4734_v27, %v5969_v25  ;;  %v325_v33 = vmul.f32 %v4735_v28, %v5969_v25  ;;  %v465_v34 = vsel %vm5978_vm3, 0, %v464_v29  ;;  %vm5988_vm4 = vmand %vm434_vm0, %vm491_vm2  ;;  %v4852_v37 = vld [vmem:[%s5951_s13 + $0x48] sm:$0xff]  }
  0x18   : > { %4879 = vmatpush3.bf16.msra.mxu0 %v5619_v9  ;;  %5429 = vmatprep.subr.bf16.mxu1 %v5903_v10  ;;  %466 = vst [vmem:[#allocation2 + $0x6c] sm:$0x1] %v465_v34  ;;  %v521_v36 = vsel %vm5988_vm4, 0, %v520_v31  ;;  %v467_v38 = vld [vmem:[#allocation2 + $0x78] sm:$0x1]  ;;  %v4738_v42 = vunpack.c.l.bf16 %v4852_v37  ;;  %v4739_v43 = vunpack.c.h.bf16 %v4852_v37  ;;  %v5639_v47 = vld [vmem:[%s7192_s3 + $0x40] sm:$0xff]   ;;  %vm6022_vm7 = vmor %vm435_vm1, %vm627_vm5 }
  0x19   : > { %4880 = vmatprep.subr.bf16.mxu0 %v5621_v11  ;;  %v363_v39 = vadd.f32 %v5974_v26, %v324_v32  ;;  %v364_v40 = vadd.f32 %v5974_v26, %v325_v33  ;;  %522 = vst [vmem:[#allocation2 + $0x74] sm:$0x1] %v521_v36  ;;  %v5636_v41 = vld [vmem:[%s7192_s3 + $0xf8] sm:$0xff]   ;;  %v523_v44 = vld [vmem:[#allocation2 + $0x80] sm:$0x1]  ;;  %v468_v45 = vsel %vm5978_vm3, 0, %v467_v38  ;;  %vm6028_vm8 = vmand %vm950_vm6, %vm491_vm2 }
  0x1a   : > { %v524_v46 = vsel %vm5988_vm4, 0, %v523_v44  ;;  %v326_v50 = vmul.f32 %v4738_v42, %v5969_v25  ;;  %v327_v51 = vmul.f32 %v4739_v43, %v5969_v25  ;;  %469 = vst [vmem:[#allocation2 + $0x78] sm:$0x1] %v468_v45  ;;  %v4701_v52 = vld [vmem:[%s5951_s13] sm:$0xff]   ;;  %v440_v53 = vld [vmem:[#allocation2 + $0xc] sm:$0x1] }
  0x1b   : > { %5437 = vmatpush3.bf16.msra.mxu1 %v5903_v10  ;;  %v395_v48 = vmax.f32 %v363_v39, 0.0  ;;  %v396_v49 = vmax.f32 %v364_v40, 0.0  ;;  %525 = vst [vmem:[#allocation2 + $0x80] sm:$0x1] %v524_v46  ;;  %v496_v54 = vld [vmem:[#allocation2 + $0x14] sm:$0x1]  ;;  %v4702_v59 = vunpack.c.l.bf16 %v4701_v52  ;;  %v4703_v60 = vunpack.c.h.bf16 %v4701_v52 }
  0x1c   : > { %4881 = vmatpush3.bf16.msra.mxu0 %v5622_v12  ;;  %5430 = vmatprep.subr.bf16.mxu1 %v5918_v13  ;;  %v365_v57 = vadd.f32 %v5974_v26, %v326_v50  ;;  %v366_v58 = vadd.f32 %v5974_v26, %v327_v51  ;;  %v441_v61 = vsel %vm5978_vm3, 0, %v440_v53  ;;  %v497_v62 = vsel %vm5988_vm4, 0, %v496_v54  ;;  %v4853_v11 = vld [vmem:[%s5951_s13 + $0x50] sm:$0xff]   ;;  %v470_v32 = vld [vmem:[#allocation2 + $0x84] sm:$0x1]  ;;  %v5733_v30 = vld [vmem:[%s7192_s3 + $0x1e8] sm:$0xff]  }
  0x1d   : > { %4882 = vmatprep.subr.bf16.mxu0 %v5624_v14  ;;  %v4652_v55 = vpack.c.bf16 %v395_v48, %v395_v48  ;;  %v4653_v56 = vpack.c.bf16 %v396_v49, %v396_v49  ;;  %442 = vst [vmem:[#allocation2 + $0xc] sm:$0x1] %v441_v61  ;;  %498 = vst [vmem:[#allocation2 + $0x14] sm:$0x1] %v497_v62  ;;  %v308_v8 = vmul.f32 %v4702_v59, %v5969_v25  ;;  %v526_v33 = vld [vmem:[#allocation2 + $0x8c] sm:$0x1] }
  0x1e   : > { %v397_v5 = vmax.f32 %v365_v57, 0.0  ;;  %v398_v7 = vmax.f32 %v366_v58, 0.0  ;;  %v309_v9 = vmul.f32 %v4703_v60, %v5969_v25  ;;  %v471_v51 = vsel %vm5978_vm3, 0, %v470_v32  ;;  %v473_v57 = vld [vmem:[#allocation2 + $0x90] sm:$0x1]  ;;  %v4854_v62 = vld [vmem:[%s5951_s13 + $0x58] sm:$0xff]  }
  0x1f   : > { %5438 = vmatpush3.bf16.msra.mxu1 %v5918_v13  ;;  %v766_v63 = vshrl.u32 %v4652_v55, 16  ;;  %v769_v1 = vshll.u32 %v4652_v55, 16  ;;  %v774_v2 = vshrl.u32 %v4653_v56, 16  ;;  %v777_v4 = vshll.u32 %v4653_v56, 16  ;;  %472 = vst [vmem:[#allocation2 + $0x84] sm:$0x1] %v471_v51 }
  0x20   : > { %4883 = vmatpush3.bf16.msra.mxu0 %v5625_v15  ;;  %5431 = vmatprep.subr.bf16.mxu1 %v5626_v16  ;;  %v348_v24 = vadd.f32 %v5974_v26, %v309_v9  ;;  %v527_v52 = vsel %vm5988_vm4, 0, %v526_v33 }
  0x21   : > { %4884 = vmatprep.subr.bf16.mxu0 %v5627_v17  ;;  %v768_v14 = vrot.slane %v766_v63, 7  ;;  %v776_v15 = vrot.slane %v774_v2, 7  ;;  %v4743_v17 = vunpack.c.h.bf16 %v4853_v11  ;;  %v1015_v45 = vld [vmem:[#allocation2 + $0x78] sm:$0xf]  ;;  %528 = vst [vmem:[#allocation2 + $0x8c] sm:$0x1] %v527_v52 }
  0x22   : > { %v380_v46 = vmax.f32 %v348_v24, 0.0  ;;  %v1019_v48 = vld [vmem:[#allocation2 + $0x80] sm:$0x1]  ;;  %v6049_v63 = vld [vmem:[%s5951_s13 + $0x8] sm:$0xff]  }
  0x23   : > { %5439 = vmatpush3.bf16.msra.mxu1 %v5626_v16  ;;  %v4742_v16 = vunpack.c.l.bf16 %v4853_v11  ;;  %v771_v27 = vor.u32 %v769_v1, %v768_v14  ;;  %v772_v28 = vrot.slane %v768_v14, 4  ;;  %v779_v29 = vor.u32 %v777_v4, %v776_v15 }
  0x24   : > { %4885 = vmatpush3.bf16.msra.mxu0 %v5628_v18  ;;  %5432 = vmatprep.subr.bf16.mxu1 %v5629_v19  ;;  %v781_v31 = vrot.slane %v776_v15, 4  ;;  %v329_v50 = vmul.f32 %v4743_v17, %v5969_v25  ;;  %v4637_v58 = vpack.c.bf16 %v380_v46, %v380_v46  ;;  %v952_v14 = vld [vmem:[#allocation2 + $0xc] sm:$0xf]  ;;  %v4747_v17 = vunpack.c.h.bf16 %v4854_v62 }
  0x25   : > { %4886 = vmatprep.subr.bf16.mxu0 %v5630_v20  ;;  %v1012_v20 = vld [vmem:[#allocation2 + $0x74] sm:$0x1]  ;;  %v780_v39 = vsel %vm6022_vm7, %v772_v28, %v779_v29 }
  0x26   : > { %1011 = vst [vmem:[#allocation2 + $0x70] sm:$0xf] %v780_v39  ;;  %v641_v9 = vshll.u32 %v4637_v58, 16 }
  0x27   : > { %5440 = vmatpush3.bf16.msra.mxu1 %v5629_v19  ;;  %v1008_v19 = vld [vmem:[#allocation2 + $0x6c] sm:$0xf] }
  0x28   : > { %4887 = vmatpush3.bf16.msra.mxu0 %v5631_v21  ;;  %5433 = vmatprep.subr.bf16.mxu1 %v5632_v22  ;;  %v4654_v21 = vpack.c.bf16 %v397_v5, %v397_v5  ;;  %v1009_v40 = vsel %vm6028_vm8, %v771_v27, %v1008_v19  ;;  %v368_v5 = vadd.f32 %v5974_v26, %v329_v50  ;;  %v474_v19 = vsel %vm5978_vm3, 0, %v473_v57 }
  0x29   : > { %4888 = vmatprep.subr.bf16.mxu0 %v5633_v23  ;;  %v347_v23 = vadd.f32 %v5974_v26, %v308_v8  ;;  %1010 = vst [vmem:[#allocation2 + $0x6c] sm:$0xf] %v1009_v40  ;;  %v638_v8 = vshrl.u32 %v4637_v58, 16  ;;  %475 = vst [vmem:[#allocation2 + $0x90] sm:$0x1] %v474_v19 }
  0x2a   : > { %v783_v34 = vshrl.u32 %v4654_v21, 16  ;;  %v786_v36 = vshll.u32 %v4654_v21, 16  ;;  %v400_v15 = vmax.f32 %v368_v5, 0.0  ;;  %v499_v5 = vld [vmem:[#allocation2 + $0x20] sm:$0x1] }
  0x2b   : > { %5441 = vmatpush3.bf16.msra.mxu1 %v5632_v22  ;;  %v4655_v22 = vpack.c.bf16 %v398_v7, %v398_v7  ;;  %v379_v42 = vmax.f32 %v347_v23, 0.0  ;;  %v4707_v23 = vunpack.c.h.bf16 %v6049_v63  ;;  %v640_v29 = vrot.slane %v638_v8, 7 }
  0x2c   : > { %4889 = vmatpush3.bf16.msra.mxu0 %v5636_v41  ;;  %5010 = vmatprep.subr.bf16.mxu1 %v5639_v47  ;;  %v1013_v41 = vsel %vm5978_vm3, %v781_v31, %v1012_v20  ;;  %v785_v43 = vrot.slane %v783_v34, 7  ;;  %v328_v47 = vmul.f32 %v4742_v16, %v5969_v25  ;;  %v4746_v16 = vunpack.c.l.bf16 %v4854_v62  ;;  %v956_v34 = vld [vmem:[#allocation2 + $0x14] sm:$0x1] }
  0x2d   : > { %5282 = vmatprep.subr.bf16.mxu0 %v5865_v0  ;;  %v791_v37 = vshrl.u32 %v4655_v22, 16  ;;  %v794_v38 = vshll.u32 %v4655_v22, 16  ;;  %1014 = vst [vmem:[#allocation2 + $0x74] sm:$0x1] %v1013_v41  ;;  %v4636_v49 = vpack.c.bf16 %v379_v42, %v379_v42  ;;  %v4706_v22 = vunpack.c.l.bf16 %v6049_v63 }
  0x2e   : > { %v788_v53 = vor.u32 %v786_v36, %v785_v43  ;;  %v789_v54 = vrot.slane %v785_v43, 4  ;;  %v367_v61 = vadd.f32 %v5974_v26, %v328_v47  ;;  %v4657_v31 = vpack.c.bf16 %v400_v15, %v400_v15  ;;  %v529_v43 = vld [vmem:[#allocation2 + $0x98] sm:$0x1]  ;;  %v1022_v47 = vld [vmem:[#allocation2 + $0x84] sm:$0xf] }
  0x2f   : > { %v793_v44 = vrot.slane %v791_v37, 7  ;;  %v630_v59 = vshrl.u32 %v4636_v49, 16  ;;  %v633_v60 = vshll.u32 %v4636_v49, 16  ;;  %v330_v32 = vmul.f32 %v4746_v16, %v5969_v25 }
  0x30   : > { %v1016_v2 = vsel %vm6028_vm8, %v788_v53, %v1015_v45  ;;  %v399_v11 = vmax.f32 %v367_v61, 0.0  ;;  %v5634_v24 = vld [vmem:[#allocation2 + $0x6c] sm:$0xff]   ;;  %v643_v41 = vor.u32 %v641_v9, %v640_v29  ;;  %v645_v42 = vrot.slane %v640_v29, 4 }
  0x31   : > { %v796_v55 = vor.u32 %v794_v38, %v793_v44  ;;  %v798_v56 = vrot.slane %v793_v44, 4  ;;  %1017 = vst [vmem:[#allocation2 + $0x78] sm:$0xf] %v1016_v2  ;;  %v632_v7 = vrot.slane %v630_v59, 7  ;;  %v331_v38 = vmul.f32 %v4747_v17, %v5969_v25  ;;  %v1026_v61 = vld [vmem:[#allocation2 + $0x8c] sm:$0x1] }
  0x32   : > { %v4656_v21 = vpack.c.bf16 %v399_v11, %v399_v11  ;;  %v2002_v39 = vrot.slane %v5634_v24, 1  ;;  %v808_v45 = vshrl.u32 %v4657_v31, 16  ;;  %v811_v46 = vshll.u32 %v4657_v31, 16 }
  0x33   : > { %v797_v1 = vsel %vm6022_vm7, %v789_v54, %v796_v55  ;;  %v1020_v4 = vsel %vm5978_vm3, %v798_v56, %v1019_v48  ;;  %v635_v20 = vor.u32 %v633_v60, %v632_v7  ;;  %v636_v28 = vrot.slane %v632_v7, 4  ;;  %v5640_v55 = vld [vmem:[%s7192_s3] sm:$0xff]   ;;  %v5643_v60 = vld [vmem:[%s7192_s3 + $0x48] sm:$0xff]  }
  0x34   : > { %1018 = vst [vmem:[#allocation2 + $0x7c] sm:$0xf] %v797_v1  ;;  %1021 = vst [vmem:[#allocation2 + $0x80] sm:$0x1] %v1020_v4  ;;  %v800_v36 = vshrl.u32 %v4656_v21, 16  ;;  %v803_v37 = vshll.u32 %v4656_v21, 16  ;;  %v369_v48 = vadd.f32 %v5974_v26, %v330_v32  ;;  %v957_v51 = vsel %vm5978_vm3, %v645_v42, %v956_v34 }
  0x35   : > { %v5635_v27 = vld [vmem:[#allocation2 + $0x74] ss:$0 sps:$4 sm:$0x11]   ;;  %v953_v33 = vsel %vm6028_vm8, %v635_v20, %v952_v14  ;;  %v644_v50 = vsel %vm6022_vm7, %v636_v28, %v643_v41  ;;  %v370_v52 = vadd.f32 %v5974_v26, %v331_v38  ;;  %958 = vst [vmem:[#allocation2 + $0x14] sm:$0x1] %v957_v51  ;;  %v810_v58 = vrot.slane %v808_v45, 7 }
  0x36   : > { %v2003_v40 = vrot.slane %v5635_v27, 1  ;;  %954 = vst [vmem:[#allocation2 + $0xc] sm:$0xf] %v953_v33  ;;  %v802_v44 = vrot.slane %v800_v36, 7  ;;  %955 = vst [vmem:[#allocation2 + $0x10] sm:$0xf] %v644_v50  ;;  %v310_v59 = vmul.f32 %v4706_v22, %v5969_v25  ;;  %v311_v2 = vmul.f32 %v4707_v23, %v5969_v25 }
  0x37   : > { %v401_v62 = vmax.f32 %v369_v48, 0.0  ;;  %v402_v63 = vmax.f32 %v370_v52, 0.0  ;;  %v530_v1 = vsel %vm5988_vm4, 0, %v529_v43  ;;  %v443_v4 = vld [vmem:[#allocation2 + $0x18] sm:$0x1]  ;;  %v813_v9 = vor.u32 %v811_v46, %v810_v58  ;;  %v6084_v14 = vld [vmem:[%s5951_s13 + $0x60] sm:$0xff]  }
  0x38   : > { %v2004_v49 = vsel %vm1465_vm9, %v2002_v39, %v2003_v40  ;;  %v805_v56 = vor.u32 %v803_v37, %v802_v44  ;;  %v806_v57 = vrot.slane %v802_v44, 4  ;;  %v815_v11 = vrot.slane %v810_v58, 4  ;;  %531 = vst [vmem:[#allocation2 + $0x98] sm:$0x1] %v530_v1  ;;  %v5644_v21 = vld [vmem:[%s7192_s3 + $0x8] sm:$0xff]   ;;  %v5649_v34 = vld [vmem:[%s7192_s3 + $0x50] sm:$0xff]  }
  0x39   : > { %5314 = vmatprep.mubr.bf16.mxu1 %v2004_v49  ;;  %v4658_v16 = vpack.c.bf16 %v401_v62, %v401_v62  ;;  %v4659_v17 = vpack.c.bf16 %v402_v63, %v402_v63  ;;  %v349_v19 = vadd.f32 %v5974_v26, %v310_v59  ;;  %v350_v24 = vadd.f32 %v5974_v26, %v311_v2  ;;  %v476_v27 = vld [vmem:[#allocation2 + $0x9c] sm:$0x1]  ;;  %v6099_v28 = vld [vmem:[%s5951_s13 + $0x68] sm:$0xff]   ;;  %v1029_v36 = vld [vmem:[#allocation2 + $0x90] sm:$0xf] }
  0x3a   : > { %v1023_v15 = vsel %vm6028_vm8, %v805_v56, %v1022_v47  ;;  %v814_v22 = vsel %vm6022_vm7, %v806_v57, %v813_v9  ;;  %v1027_v23 = vsel %vm5978_vm3, %v815_v11, %v1026_v61  ;;  %v444_v39 = vsel %vm5978_vm3, 0, %v443_v4  ;;  %v532_v56 = vld [vmem:[#allocation2 + $0xa4] sm:$0x1]  ;;  %v5653_v4 = vld [vmem:[%s7192_s3 + $0x58] sm:$0xff]  }
  0x3b   : > { %v5637_v53 = vld [vmem:[#allocation2 + $0x78] sm:$0xff]   ;;  %v5638_v54 = vld [vmem:[#allocation2 + $0x80] ss:$0 sps:$4 sm:$0x11]   ;;  %1024 = vst [vmem:[#allocation2 + $0x84] sm:$0xf] %v1023_v15  ;;  %v4750_v43 = vunpack.c.l.bf16 %v6084_v14  ;;  %v4751_v44 = vunpack.c.h.bf16 %v6084_v14  ;;  %v4754_v45 = vunpack.c.l.bf16 %v6099_v28 }
  0x3c   : > { %v2005_v7 = vrot.slane %v5637_v53, 1  ;;  %v2006_v8 = vrot.slane %v5638_v54, 1  ;;  %1025 = vst [vmem:[#allocation2 + $0x88] sm:$0xf] %v814_v22  ;;  %1028 = vst [vmem:[#allocation2 + $0x8c] sm:$0x1] %v1027_v23 }
  0x3d   : > { %v817_v29 = vshrl.u32 %v4658_v16, 16  ;;  %v820_v31 = vshll.u32 %v4658_v16, 16  ;;  %v825_v32 = vshrl.u32 %v4659_v17, 16  ;;  %v828_v33 = vshll.u32 %v4659_v17, 16  ;;  %v6108_v41 = vld [vmem:[#allocation2 + $0xc] sm:$0xff]  }
  0x3e   : > { %v2007_v20 = vsel %vm1465_vm9, %v2005_v7, %v2006_v8  ;;  %v381_v37 = vmax.f32 %v349_v19, 0.0  ;;  %v382_v38 = vmax.f32 %v350_v24, 0.0  ;;  %v500_v40 = vsel %vm5988_vm4, 0, %v499_v5  ;;  %445 = vst [vmem:[#allocation2 + $0x18] sm:$0x1] %v444_v39 }
  0x3f   : > { %5315 = vmatmul.mubr.bf16.vlgmr.msra.gmra.mrb[0].mxu1 %v2007_v20  ;;  %v819_v42 = vrot.slane %v817_v29, 7  ;;  %501 = vst [vmem:[#allocation2 + $0x20] sm:$0x1] %v500_v40  ;;  %v5642_v46 = vld [vmem:[#allocation2 + $0x14] ss:$0 sps:$4 sm:$0x11]   ;;  %v332_v11 = vmul.f32 %v4750_v43, %v5969_v25  ;;  %v333_v23 = vmul.f32 %v4751_v44, %v5969_v25 }
  0x40   : > { %5011 = vmatpush3.bf16.msra.mxu1 %v5640_v55  ;;  %v827_v47 = vrot.slane %v825_v32, 7  ;;  %v4638_v48 = vpack.c.bf16 %v381_v37, %v381_v37  ;;  %v4639_v49 = vpack.c.bf16 %v382_v38, %v382_v38  ;;  %v477_v50 = vsel %vm5978_vm3, 0, %v476_v27  ;;  %v1033_v55 = vld [vmem:[#allocation2 + $0x98] sm:$0x1]  ;;  %v479_v29 = vld [vmem:[#allocation2 + $0xa8] sm:$0x1] }
  0x41   : > { %5012 = vmatprep.subr.bf16.mxu1 %v5643_v60  ;;  %v1771_v51 = vshrl.u32 %v6108_v41, 16  ;;  %v1773_v52 = vshll.u32 %v6108_v41, 16  ;;  %v822_v53 = vor.u32 %v820_v31, %v819_v42  ;;  %v823_v54 = vrot.slane %v819_v42, 4  ;;  %478 = vst [vmem:[#allocation2 + $0x9c] sm:$0x1] %v477_v50  ;;  %v5650_v60 = vld [vmem:[%s7192_s3 + $0x10] sm:$0xff]  }
  0x42   : > { %v1778_v57 = vshll.u32 %v5642_v46, 16  ;;  %v830_v58 = vor.u32 %v828_v33, %v827_v47  ;;  %v832_v59 = vrot.slane %v827_v47, 4  ;;  %v647_v61 = vshrl.u32 %v4638_v48, 16  ;;  %v5654_v20 = vld [vmem:[%s7192_s3 + $0x18] sm:$0xff]   ;;  %v535_v42 = vld [vmem:[#allocation2 + $0xb0] sm:$0x1] }
  0x43   : > { %v1775_v62 = vrot.slane %v1773_v52, 1  ;;  %v1030_v63 = vsel %vm6028_vm8, %v822_v53, %v1029_v36  ;;  %v650_v1 = vshll.u32 %v4638_v48, 16  ;;  %v655_v2 = vshrl.u32 %v4639_v49, 16  ;;  %v5645_v7 = vld [vmem:[#allocation2 + $0x84] sm:$0xff]   ;;  %v4845_v50 = vld [vmem:[%s5951_s13 + $0x10] sm:$0xff]  }
  0x44   : > { %5013 = vmatpush3.bf16.msra.mxu1 %v5644_v21  ;;  %v1780_v5 = vrot.slane %v1778_v57, 1  ;;  %v831_v8 = vsel %vm6022_vm7, %v823_v54, %v830_v58  ;;  %1031 = vst [vmem:[#allocation2 + $0x90] sm:$0xf] %v1030_v63  ;;  %v1034_v9 = vsel %vm5978_vm3, %v832_v59, %v1033_v55  ;;  %v5646_v15 = vld [vmem:[#allocation2 + $0x8c] ss:$0 sps:$4 sm:$0x11]   ;;  %v371_v24 = vadd.f32 %v5974_v26, %v332_v11 }
  0x45   : > { %5014 = vmatprep.subr.bf16.mxu1 %v5649_v34  ;;  %v1776_v14 = vor.u32 %v1775_v62, %v1771_v51  ;;  %1032 = vst [vmem:[#allocation2 + $0x94] sm:$0xf] %v831_v8  ;;  %1035 = vst [vmem:[#allocation2 + $0x98] sm:$0x1] %v1034_v9  ;;  %v649_v16 = vrot.slane %v647_v61, 7  ;;  %v657_v17 = vrot.slane %v655_v2, 7  ;;  %v372_v39 = vadd.f32 %v5974_v26, %v333_v23 }
  0x46   : > { %v658_v19 = vshll.u32 %v4639_v49, 16  ;;  %v2008_v21 = vrot.slane %v5645_v7, 1  ;;  %v959_v22 = vld [vmem:[#allocation2 + $0x18] sm:$0xf]  ;;  %v533_v27 = vsel %vm5988_vm4, 0, %v532_v56  ;;  %v2009_v32 = vrot.slane %v5646_v15, 1 }
  0x47   : > { %v1781_v31 = vsel %vm1256_vm10, %v1776_v14, %v1780_v5  ;;  %v652_v33 = vor.u32 %v650_v1, %v649_v16  ;;  %v653_v34 = vrot.slane %v649_v16, 4  ;;  %v963_v36 = vld [vmem:[#allocation2 + $0x20] sm:$0x1]  ;;  %534 = vst [vmem:[#allocation2 + $0xa4] sm:$0x1] %v533_v27  ;;  %v662_v38 = vrot.slane %v657_v17, 4 }
  0x48   : > { %5015 = vmatpush3.bf16.msra.mxu1 %v5650_v60  ;;  %2266 = vmatprep.mubr.bf16.mxu0 %v1781_v31  ;;  %v660_v37 = vor.u32 %v658_v19, %v657_v17  ;;  %v403_v40 = vmax.f32 %v371_v24, 0.0  ;;  %v5659_v43 = vld [vmem:[%s7192_s3 + $0x60] sm:$0xff]   ;;  %v2010_v44 = vsel %vm1465_vm9, %v2008_v21, %v2009_v32  ;;  %v4755_v47 = vunpack.c.h.bf16 %v6099_v28  ;;  %v5663_v28 = vld [vmem:[%s7192_s3 + $0x68] sm:$0xff]   ;;  %v1036_v14 = vld [vmem:[#allocation2 + $0x9c] sm:$0xf] }
  0x49   : > { %5016 = vmatprep.subr.bf16.mxu1 %v5653_v4  ;;  %2267 = vmatmul.mubr.bf16.vlgmr.msra.gmra.mrb[0].mxu0 %v6108_v41  ;;  %v960_v46 = vsel %vm6028_vm8, %v652_v33, %v959_v22  ;;  %v334_v48 = vmul.f32 %v4754_v45, %v5969_v25  ;;  %v5660_v49 = vld [vmem:[%s7192_s3 + $0x20] sm:$0xff]   ;;  %v964_v52 = vsel %vm5978_vm3, %v662_v38, %v963_v36  ;;  %v404_v53 = vmax.f32 %v372_v39, 0.0  ;;  %v5664_v19 = vld [vmem:[%s7192_s3 + $0x28] sm:$0xff]  }
  0x4a   : > { %v446_v51 = vld [vmem:[#allocation2 + $0x24] sm:$0x1]  ;;  %5283 = vmatpush3.bf16.msra.mxu0 %v5865_v0  ;;  %5318 = vmatprep.mubr.bf16.mxu1 %v2010_v44  ;;  %v661_v41 = vsel %vm6022_vm7, %v653_v34, %v660_v37  ;;  %961 = vst [vmem:[#allocation2 + $0x18] sm:$0xf] %v960_v46  ;;  %v4660_v54 = vpack.c.bf16 %v403_v40, %v403_v40  ;;  %965 = vst [vmem:[#allocation2 + $0x20] sm:$0x1] %v964_v52  ;;  %v4710_v60 = vunpack.c.l.bf16 %v4845_v50 }
  0x4b   : > { %962 = vst [vmem:[#allocation2 + $0x1c] sm:$0xf] %v661_v41  ;;  %v335_v45 = vmul.f32 %v4755_v47, %v5969_v25  ;;  %v373_v0 = vadd.f32 %v5974_v26, %v334_v48  ;;  %v480_v55 = vsel %vm5978_vm3, 0, %v479_v29  ;;  %v536_v56 = vsel %vm5988_vm4, 0, %v535_v42  ;;  %5284 = vmatprep.subr.bf16.mxu0 %v5878_v3  ;;  %v502_v33 = vld [vmem:[#allocation2 + $0x2c] sm:$0x1] }
  0x4c   : > { %5017 = vmatpush3.bf16.msra.mxu1 %v5654_v20  ;;  %v5647_v57 = vld [vmem:[#allocation2 + $0x90] sm:$0xff]   ;;  %v4661_v58 = vpack.c.bf16 %v404_v53, %v404_v53  ;;  %v834_v59 = vshrl.u32 %v4660_v54, 16  ;;  %481 = vst [vmem:[#allocation2 + $0xa8] sm:$0x1] %v480_v55  ;;  %537 = vst [vmem:[#allocation2 + $0xb0] sm:$0x1] %v536_v56  ;;  %v4711_v61 = vunpack.c.h.bf16 %v4845_v50  ;;  %v312_v17 = vmul.f32 %v4710_v60, %v5969_v25 }
  0x4d   : > { %5018 = vmatprep.subr.bf16.mxu1 %v5659_v43  ;;  %v5648_v62 = vld [vmem:[#allocation2 + $0x98] ss:$0 sps:$4 sm:$0x11]   ;;  %v837_v63 = vshll.u32 %v4660_v54, 16  ;;  %v374_v1 = vadd.f32 %v5974_v26, %v335_v45  ;;  %v405_v2 = vmax.f32 %v373_v0, 0.0  ;;  %v447_v4 = vsel %vm5978_vm3, 0, %v446_v51 }
  0x4e   : > { %v2011_v5 = vrot.slane %v5647_v57, 1  ;;  %v836_v7 = vrot.slane %v834_v59, 7  ;;  %v842_v8 = vshrl.u32 %v4661_v58, 16  ;;  %v845_v9 = vshll.u32 %v4661_v58, 16  ;;  %448 = vst [vmem:[#allocation2 + $0x24] sm:$0x1] %v447_v4  ;;  %5285 = vmatpush3.bf16.msra.mxu0 %v5878_v3 }
  0x4f   : > { %v2012_v11 = vrot.slane %v5648_v62, 1  ;;  %v406_v15 = vmax.f32 %v374_v1, 0.0  ;;  %v4662_v16 = vpack.c.bf16 %v405_v2, %v405_v2  ;;  %v5669_v20 = vld [vmem:[%s7192_s3 + $0x70] sm:$0xff]   ;;  %5286 = vmatprep.subr.bf16.mxu0 %v5890_v6  ;;  %v1040_v23 = vld [vmem:[#allocation2 + $0xa4] sm:$0x1]  ;;  %v313_v24 = vmul.f32 %v4711_v61, %v5969_v25  ;;  %v5673_v55 = vld [vmem:[%s7192_s3 + $0x78] sm:$0xff]  }
  0x50   : > { %5019 = vmatpush3.bf16.msra.mxu1 %v5660_v49  ;;  %v839_v21 = vor.u32 %v837_v63, %v836_v7  ;;  %v840_v22 = vrot.slane %v836_v7, 4  ;;  %v844_v3 = vrot.slane %v842_v8, 7  ;;  %v5670_v34 = vld [vmem:[%s7192_s3 + $0x30] sm:$0xff]   ;;  %v351_v40 = vadd.f32 %v5974_v26, %v312_v17  ;;  %v5674_v1 = vld [vmem:[%s7192_s3 + $0x38] sm:$0xff]   ;;  %v6226_v17 = vld [vmem:[%s7192_s3 + $0x80] sm:$0xff]  }
  0x51   : > { %5020 = vmatprep.subr.bf16.mxu1 %v5663_v28  ;;  %v2013_v27 = vsel %vm1465_vm9, %v2011_v5, %v2012_v11  ;;  %v4663_v29 = vpack.c.bf16 %v406_v15, %v406_v15  ;;  %v851_v31 = vshrl.u32 %v4662_v16, 16  ;;  %v854_v32 = vshll.u32 %v4662_v16, 16  ;;  %v5652_v42 = vld [vmem:[#allocation2 + $0x20] ss:$0 sps:$4 sm:$0x11]   ;;  %v4857_v48 = vld [vmem:[%s5951_s13 + $0x70] sm:$0xff]  }
  0x52   : > { %5319 = vmatmul.mubr.bf16.gmra.mrb[4].mxu1 %v2013_v27  ;;  %v6186_v36 = vld [vmem:[#allocation2 + $0x18] sm:$0xff]   ;;  %v847_v37 = vor.u32 %v845_v9, %v844_v3  ;;  %v849_v38 = vrot.slane %v844_v3, 4  ;;  %v1037_v39 = vsel %vm6028_vm8, %v839_v21, %v1036_v14  ;;  %5287 = vmatpush3.bf16.msra.mxu0 %v5890_v6  ;;  %v352_v47 = vadd.f32 %v5974_v26, %v313_v24  ;;  %v482_v52 = vld [vmem:[#allocation2 + $0xb4] sm:$0x1]  ;;  %v485_v16 = vld [vmem:[#allocation2 + $0xc0] sm:$0x1] }
  0x53   : > { %1038 = vst [vmem:[#allocation2 + $0x9c] sm:$0xf] %v1037_v39  ;;  %v853_v43 = vrot.slane %v851_v31, 7  ;;  %v859_v44 = vshrl.u32 %v4663_v29, 16  ;;  %v862_v46 = vshll.u32 %v4663_v29, 16  ;;  %5288 = vmatprep.subr.bf16.mxu0 %v5903_v10  ;;  %v1783_v49 = vshrl.u32 %v6186_v36, 16 }
  0x54   : > { %5021 = vmatpush3.bf16.msra.mxu1 %v5664_v19  ;;  %v1785_v50 = vshll.u32 %v6186_v36, 16  ;;  %v848_v51 = vsel %vm6022_vm7, %v840_v22, %v847_v37  ;;  %v1041_v6 = vsel %vm5978_vm3, %v849_v38, %v1040_v23  ;;  %v1043_v41 = vld [vmem:[#allocation2 + $0xa8] sm:$0xf]  ;;  %v1790_v53 = vshll.u32 %v5652_v42, 16  ;;  %v1047_v0 = vld [vmem:[#allocation2 + $0xb0] sm:$0x1] }
  0x55   : > { %5022 = vmatprep.subr.bf16.mxu1 %v5669_v20  ;;  %1039 = vst [vmem:[#allocation2 + $0xa0] sm:$0xf] %v848_v51  ;;  %1042 = vst [vmem:[#allocation2 + $0xa4] sm:$0x1] %v1041_v6  ;;  %v856_v54 = vor.u32 %v854_v32, %v853_v43  ;;  %v857_v28 = vrot.slane %v853_v43, 4  ;;  %v861_v45 = vrot.slane %v859_v44, 7  ;;  %v4759_v14 = vunpack.c.h.bf16 %v4857_v48 }
  0x56   : > { %v1787_v56 = vrot.slane %v1785_v50, 1  ;;  %v383_v57 = vmax.f32 %v351_v40, 0.0  ;;  %v384_v58 = vmax.f32 %v352_v47, 0.0  ;;  %v503_v59 = vsel %vm5988_vm4, 0, %v502_v33  ;;  %5289 = vmatpush3.bf16.msra.mxu0 %v5903_v10  ;;  %v538_v7 = vld [vmem:[#allocation2 + $0xbc] sm:$0x1] }
  0x57   : > { %v1792_v60 = vrot.slane %v1790_v53, 1  ;;  %v864_v61 = vor.u32 %v862_v46, %v861_v45  ;;  %v866_v62 = vrot.slane %v861_v45, 4  ;;  %v1044_v63 = vsel %vm6028_vm8, %v856_v54, %v1043_v41  ;;  %504 = vst [vmem:[#allocation2 + $0x2c] sm:$0x1] %v503_v59  ;;  %5290 = vmatprep.subr.bf16.mxu0 %v5918_v13  ;;  %v4858_v8 = vld [vmem:[%s5951_s13 + $0x78] sm:$0xff]   ;;  %v5779_v3 = vld [vmem:[%s7192_s3 + $0x160] sm:$0xff]  }
  0x58   : > { %5023 = vmatpush3.bf16.msra.mxu1 %v5670_v34  ;;  %v1788_v2 = vor.u32 %v1787_v56, %v1783_v49  ;;  %1045 = vst [vmem:[#allocation2 + $0xa8] sm:$0xf] %v1044_v63  ;;  %v4640_v4 = vpack.c.bf16 %v383_v57, %v383_v57  ;;  %v4641_v5 = vpack.c.bf16 %v384_v58, %v384_v58  ;;  %v4758_v10 = vunpack.c.l.bf16 %v4857_v48  ;;  %v6221_v13 = vld [vmem:[%s5951_s13 + $0x18] sm:$0xff]   ;;  %v966_v24 = vld [vmem:[#allocation2 + $0x24] sm:$0xf]  ;;  %v5781_v53 = vld [vmem:[%s7192_s3 + $0x170] sm:$0xff]  }
  0x59   : > { %5024 = vmatprep.subr.bf16.mxu1 %v5673_v55  ;;  %v865_v9 = vsel %vm6022_vm7, %v857_v28, %v864_v61  ;;  %v1048_v11 = vsel %vm5978_vm3, %v866_v62, %v1047_v0  ;;  %v483_v15 = vsel %vm5978_vm3, 0, %v482_v52  ;;  %v337_v29 = vmul.f32 %v4759_v14, %v5969_v25  ;;  %v541_v51 = vld [vmem:[#allocation2 + $0xc8] sm:$0x1]  ;;  %v6261_v0 = vld [vmem:[%s7191_s2] ss:$0 sm:$0xff] }
  0x5a   : > { %v1793_v19 = vsel %vm1256_vm10, %v1788_v2, %v1792_v60  ;;  %1046 = vst [vmem:[#allocation2 + $0xac] sm:$0xf] %v865_v9  ;;  %1049 = vst [vmem:[#allocation2 + $0xb0] sm:$0x1] %v1048_v11  ;;  %v664_v20 = vshrl.u32 %v4640_v4, 16  ;;  %v667_v21 = vshll.u32 %v4640_v4, 16  ;;  %5291 = vmatpush3.bf16.msra.mxu0 %v5779_v3  ;;  %v336_v27 = vmul.f32 %v4758_v10, %v5969_v25 }
  0x5b   : > { %v672_v22 = vshrl.u32 %v4641_v5, 16  ;;  %484 = vst [vmem:[#allocation2 + $0xb4] sm:$0x1] %v483_v15  ;;  %2274 = vmatprep.mubr.bf16.mxu0 %v1793_v19  ;;  %v675_v23 = vshll.u32 %v4641_v5, 16  ;;  %v539_v31 = vsel %vm5988_vm4, 0, %v538_v7  ;;  %v4762_v34 = vunpack.c.l.bf16 %v4858_v8  ;;  %v5784_v9 = vld [vmem:[%s7192_s3 + $0x178] sm:$0xff]  }
  0x5c   : > { %5025 = vmatpush3.bf16.msra.mxu1 %v5674_v1  ;;  %2275 = vmatmul.mubr.bf16.gmra.mrb[4].mxu0 %v6186_v36  ;;  %v5655_v32 = vld [vmem:[#allocation2 + $0x9c] sm:$0xff]   ;;  %v666_v33 = vrot.slane %v664_v20, 7  ;;  %540 = vst [vmem:[#allocation2 + $0xbc] sm:$0x1] %v539_v31  ;;  %v4763_v37 = vunpack.c.h.bf16 %v4858_v8  ;;  %v4714_v38 = vunpack.c.l.bf16 %v6221_v13  ;;  %v375_v42 = vadd.f32 %v5974_v26, %v336_v27  ;;  %v5780_v36 = vld [vmem:[%s7192_s3 + $0x168] sm:$0xff]  }
  0x5d   : > { %5330 = vmatprep.subr.bf16.mxu1 %v6226_v17  ;;  %v5656_v39 = vld [vmem:[#allocation2 + $0xa4] ss:$0 sps:$4 sm:$0x11]   ;;  %v674_v40 = vrot.slane %v672_v22, 7  ;;  %v376_v43 = vadd.f32 %v5974_v26, %v337_v29  ;;  %v486_v44 = vsel %vm5978_vm3, 0, %v485_v16  ;;  %5292 = vmatprep.subr.bf16.mxu0 %v5780_v36  ;;  %v2014_v46 = vrot.slane %v5655_v32, 1 }
  0x5e   : > { %v669_v47 = vor.u32 %v667_v21, %v666_v33  ;;  %v670_v48 = vrot.slane %v666_v33, 4  ;;  %v970_v49 = vld [vmem:[#allocation2 + $0x2c] sm:$0x1]  ;;  %v338_v50 = vmul.f32 %v4762_v34, %v5969_v25  ;;  %487 = vst [vmem:[#allocation2 + $0xc0] sm:$0x1] %v486_v44  ;;  %5293 = vmatpush3.bf16.msra.mxu0 %v5780_v36  ;;  %v2015_v6 = vrot.slane %v5656_v39, 1 }
  0x5f   : > { %v677_v41 = vor.u32 %v675_v23, %v674_v40  ;;  %v679_v26 = vrot.slane %v674_v40, 4  ;;  %v407_v52 = vmax.f32 %v375_v42, 0.0  ;;  %5294 = vmatprep.subr.bf16.mxu0 %v5781_v53  ;;  %v408_v28 = vmax.f32 %v376_v43, 0.0  ;;  %v6255_v25 = vld [vmem:[%s7190_s1] ss:$0 sm:$0xff] }
  0x60   : > { %v967_v54 = vsel %vm6028_vm8, %v669_v47, %v966_v24  ;;  %v339_v45 = vmul.f32 %v6255_v25, %v4763_v37  ;;  %v377_v55 = vadd.f32 %v6261_v0, %v338_v50  ;;  %v2016_v56 = vsel %vm1465_vm9, %v2014_v46, %v2015_v6  ;;  %v449_v8 = vld [vmem:[#allocation2 + $0x30] sm:$0x1]  ;;  %v505_v3 = vld [vmem:[#allocation2 + $0x38] sm:$0x1]  ;;  %v437_v44 = vld [vmem:[#allocation2] sm:$0x1] }
  0x61   : > { %v5657_v57 = vld [vmem:[#allocation2 + $0xa8] sm:$0xff]   ;;  %v678_v58 = vsel %vm6022_vm7, %v670_v48, %v677_v41  ;;  %968 = vst [vmem:[#allocation2 + $0x24] sm:$0xf] %v967_v54  ;;  %v971_v59 = vsel %vm5978_vm3, %v679_v26, %v970_v49  ;;  %v4664_v60 = vpack.c.bf16 %v407_v52, %v407_v52  ;;  %5322 = vmatprep.mubr.bf16.mxu1 %v2016_v56  ;;  %v5658_v61 = vld [vmem:[#allocation2 + $0xb0] ss:$0 sps:$4 sm:$0x11]   ;;  %v4715_v2 = vunpack.c.h.bf16 %v6221_v13 }
  0x62   : > { %969 = vst [vmem:[#allocation2 + $0x28] sm:$0xf] %v678_v58  ;;  %972 = vst [vmem:[#allocation2 + $0x2c] sm:$0x1] %v971_v59  ;;  %v4665_v62 = vpack.c.bf16 %v408_v28, %v408_v28  ;;  %v378_v63 = vadd.f32 %v6261_v0, %v339_v45  ;;  %v409_v1 = vmax.f32 %v377_v55, 0.0  ;;  %5295 = vmatpush3.bf16.msra.mxu0 %v5781_v53  ;;  %v2017_v4 = vrot.slane %v5657_v57, 1 }
  0x63   : > { %v868_v5 = vshrl.u32 %v4664_v60, 16  ;;  %v871_v10 = vshll.u32 %v4664_v60, 16  ;;  %v542_v7 = vsel %vm5988_vm4, 0, %v541_v51  ;;  %5296 = vmatprep.subr.bf16.mxu0 %v5784_v9  ;;  %v2018_v11 = vrot.slane %v5658_v61, 1  ;;  %v1050_v13 = vld [vmem:[#allocation2 + $0xb4] sm:$0xf] }
  0x64   : > { %v876_v14 = vshrl.u32 %v4665_v62, 16  ;;  %v879_v15 = vshll.u32 %v4665_v62, 16  ;;  %v410_v16 = vmax.f32 %v378_v63, 0.0  ;;  %543 = vst [vmem:[#allocation2 + $0xc8] sm:$0x1] %v542_v7  ;;  %v4666_v20 = vpack.c.bf16 %v409_v1, %v409_v1  ;;  %v4847_v60 = vld [vmem:[%s5951_s13 + $0x20] sm:$0xff]  }
  0x65   : > { %v870_v19 = vrot.slane %v868_v5, 7  ;;  %v314_v21 = vmul.f32 %v6255_v25, %v4714_v38  ;;  %v315_v22 = vmul.f32 %v6255_v25, %v4715_v2  ;;  %v2019_v23 = vsel %vm1465_vm9, %v2017_v4, %v2018_v11  ;;  %v1054_v27 = vld [vmem:[#allocation2 + $0xbc] sm:$0x1]  ;;  %v1057_v43 = vld [vmem:[#allocation2 + $0xc0] sm:$0xf] }
  0x66   : > { %v878_v24 = vrot.slane %v876_v14, 7  ;;  %v4667_v29 = vpack.c.bf16 %v410_v16, %v410_v16  ;;  %v450_v31 = vsel %vm5978_vm3, 0, %v449_v8  ;;  %5297 = vmatpush3.bf16.msra.mxu0 %v5784_v9  ;;  %5323 = vmatmul.mubr.bf16.gmra.mrb[8].mxu1 %v2019_v23  ;;  %v885_v34 = vshrl.u32 %v4666_v20, 16  ;;  %v493_v52 = vld [vmem:[#allocation2 + $0x8] sm:$0x1] }
  0x67   : > { %v873_v32 = vor.u32 %v871_v10, %v870_v19  ;;  %v874_v33 = vrot.slane %v870_v19, 4  ;;  %v888_v37 = vshll.u32 %v4666_v20, 16  ;;  %451 = vst [vmem:[#allocation2 + $0x30] sm:$0x1] %v450_v31  ;;  %v353_v48 = vadd.f32 %v6261_v0, %v314_v21  ;;  %v452_v2 = vld [vmem:[#allocation2 + $0x3c] sm:$0x1] }
  0x68   : > { %v881_v39 = vor.u32 %v879_v15, %v878_v24  ;;  %v883_v38 = vrot.slane %v878_v24, 4  ;;  %v893_v40 = vshrl.u32 %v4667_v29, 16  ;;  %v896_v42 = vshll.u32 %v4667_v29, 16  ;;  %v4848_v15 = vld [vmem:[%s5951_s13 + $0x28] sm:$0xff]   ;;  %v6306_v21 = vld [vmem:[%s5951_s13 + $0x30] sm:$0xff]  }
  0x69   : > { %v5661_v36 = vld [vmem:[#allocation2 + $0x24] sm:$0xff]   ;;  %v1051_v46 = vsel %vm6028_vm8, %v873_v32, %v1050_v13  ;;  %v887_v47 = vrot.slane %v885_v34, 7  ;;  %v354_v49 = vadd.f32 %v6261_v0, %v315_v22  ;;  %v5662_v50 = vld [vmem:[#allocation2 + $0x2c] ss:$0 sps:$4 sm:$0x11]   ;;  %v506_v26 = vsel %vm5988_vm4, 0, %v505_v3 }
  0x6a   : > { %v882_v51 = vsel %vm6022_vm7, %v874_v33, %v881_v39  ;;  %1052 = vst [vmem:[#allocation2 + $0xb4] sm:$0xf] %v1051_v46  ;;  %v1055_v6 = vsel %vm5978_vm3, %v883_v38, %v1054_v27  ;;  %v895_v41 = vrot.slane %v893_v40, 7  ;;  %v1795_v53 = vshrl.u32 %v5661_v36, 16  ;;  %507 = vst [vmem:[#allocation2 + $0x38] sm:$0x1] %v506_v26 }
  0x6b   : > { %v1797_v54 = vshll.u32 %v5661_v36, 16  ;;  %1053 = vst [vmem:[#allocation2 + $0xb8] sm:$0xf] %v882_v51  ;;  %1056 = vst [vmem:[#allocation2 + $0xbc] sm:$0x1] %v1055_v6  ;;  %v890_v28 = vor.u32 %v888_v37, %v887_v47  ;;  %v891_v45 = vrot.slane %v887_v47, 4  ;;  %v4718_v14 = vunpack.c.l.bf16 %v4847_v60 }
  0x6c   : > { %v1061_v55 = vld [vmem:[#allocation2 + $0xc8] sm:$0x1]  ;;  %v1802_v56 = vshll.u32 %v5662_v50, 16  ;;  %v898_v57 = vor.u32 %v896_v42, %v895_v41  ;;  %v900_v58 = vrot.slane %v895_v41, 4  ;;  %v385_v59 = vmax.f32 %v353_v48, 0.0  ;;  %v6315_v41 = vld [vmem:[#allocation2 + $0xc] sm:$0xff]  }
  0x6d   : > { %v1799_v61 = vrot.slane %v1797_v54, 1  ;;  %v1058_v62 = vsel %vm6028_vm8, %v890_v28, %v1057_v43  ;;  %v386_v63 = vmax.f32 %v354_v49, 0.0  ;;  %v438_v1 = vsel %vm5978_vm3, 0, %v437_v44  ;;  %v508_v42 = vld [vmem:[#allocation2 + $0x44] sm:$0x1] }
  0x6e   : > { %v1804_v4 = vrot.slane %v1802_v56, 1  ;;  %v899_v5 = vsel %vm6022_vm7, %v891_v45, %v898_v57  ;;  %1059 = vst [vmem:[#allocation2 + $0xc0] sm:$0xf] %v1058_v62  ;;  %v1062_v10 = vsel %vm5978_vm3, %v900_v58, %v1061_v55  ;;  %v4642_v7 = vpack.c.bf16 %v385_v59, %v385_v59  ;;  %439 = vst [vmem:[#allocation2] sm:$0x1] %v438_v1 }
  0x6f   : > { %v1800_v8 = vor.u32 %v1799_v61, %v1795_v53  ;;  %1060 = vst [vmem:[#allocation2 + $0xc4] sm:$0xf] %v899_v5  ;;  %1063 = vst [vmem:[#allocation2 + $0xc8] sm:$0x1] %v1062_v10  ;;  %v4643_v9 = vpack.c.bf16 %v386_v63, %v386_v63  ;;  %v494_v11 = vsel %vm5988_vm4, 0, %v493_v52  ;;  %v4719_v13 = vunpack.c.h.bf16 %v4847_v60 }
  0x70   : > { %v681_v16 = vshrl.u32 %v4642_v7, 16  ;;  %v684_v19 = vshll.u32 %v4642_v7, 16  ;;  %495 = vst [vmem:[#allocation2 + $0x8] sm:$0x1] %v494_v11  ;;  %v453_v20 = vsel %vm5978_vm3, 0, %v452_v2  ;;  %v316_v27 = vmul.f32 %v6255_v25, %v4718_v14 }
  0x71   : > { %v1805_v22 = vsel %vm1256_vm10, %v1800_v8, %v1804_v4  ;;  %v689_v3 = vshrl.u32 %v4643_v9, 16  ;;  %v692_v23 = vshll.u32 %v4643_v9, 16  ;;  %v973_v24 = vld [vmem:[#allocation2 + $0x30] sm:$0xf]  ;;  %454 = vst [vmem:[#allocation2 + $0x3c] sm:$0x1] %v453_v20  ;;  %v317_v32 = vmul.f32 %v6255_v25, %v4719_v13 }
  0x72   : > { %2282 = vmatprep.mubr.bf16.mxu0 %v1805_v22  ;;  %v5665_v29 = vld [vmem:[#allocation2 + $0xb4] sm:$0xff]   ;;  %v683_v31 = vrot.slane %v681_v16, 7  ;;  %v4722_v33 = vunpack.c.l.bf16 %v4848_v15  ;;  %v4723_v34 = vunpack.c.h.bf16 %v4848_v15  ;;  %v5666_v37 = vld [vmem:[#allocation2 + $0xbc] ss:$0 sps:$4 sm:$0x11]   ;;  %v355_v40 = vadd.f32 %v6261_v0, %v316_v27 }
  0x73   : > { %2283 = vmatmul.mubr.bf16.gmra.mrb[8].mxu0 %v5661_v36  ;;  %v691_v39 = vrot.slane %v689_v3, 7  ;;  %v977_v38 = vld [vmem:[#allocation2 + $0x38] sm:$0x1]  ;;  %v4726_v43 = vunpack.c.l.bf16 %v6306_v21  ;;  %v4727_v44 = vunpack.c.h.bf16 %v6306_v21  ;;  %v2020_v46 = vrot.slane %v5665_v29, 1  ;;  %v455_v27 = vld [vmem:[#allocation2 + $0x48] sm:$0x1] }
  0x74   : > { %v686_v47 = vor.u32 %v684_v19, %v683_v31  ;;  %v687_v48 = vrot.slane %v683_v31, 4  ;;  %v356_v49 = vadd.f32 %v6261_v0, %v317_v32  ;;  %v2021_v50 = vrot.slane %v5666_v37, 1  ;;  %v5681_v36 = vld [vmem:[#allocation2 + $0x14] ss:$0 sps:$4 sm:$0x11]  }
  0x75   : > { %v694_v51 = vor.u32 %v692_v23, %v691_v39  ;;  %v696_v6 = vrot.slane %v691_v39, 4  ;;  %v318_v26 = vmul.f32 %v6255_v25, %v4722_v33  ;;  %v387_v54 = vmax.f32 %v355_v40, 0.0  ;;  %v6329_v59 = vld [vmem:[#allocation2] sm:$0xff]  }
  0x76   : > { %v5667_v52 = vld [vmem:[#allocation2 + $0xc0] sm:$0xff]   ;;  %v974_v53 = vsel %vm6028_vm8, %v686_v47, %v973_v24  ;;  %v319_v28 = vmul.f32 %v6255_v25, %v4723_v34  ;;  %v6322_v45 = vmul.f32 %v6255_v25, %v4726_v43  ;;  %v2022_v55 = vsel %vm1465_vm9, %v2020_v46, %v2021_v50  ;;  %v5668_v56 = vld [vmem:[#allocation2 + $0xc8] ss:$0 sps:$4 sm:$0x11]   ;;  %v511_v34 = vld [vmem:[#allocation2 + $0x50] sm:$0x1] }
  0x77   : > { %v695_v57 = vsel %vm6022_vm7, %v687_v48, %v694_v51  ;;  %975 = vst [vmem:[#allocation2 + $0x30] sm:$0xf] %v974_v53  ;;  %v978_v58 = vsel %vm5978_vm3, %v696_v6, %v977_v38  ;;  %v357_v60 = vadd.f32 %v6261_v0, %v318_v26  ;;  %5326 = vmatprep.mubr.bf16.mxu1 %v2022_v55  ;;  %v2023_v61 = vrot.slane %v5667_v52, 1  ;;  %v5676_v62 = vld [vmem:[#allocation2 + $0x8] ss:$0 sps:$4 sm:$0x11]  }
  0x78   : > { %976 = vst [vmem:[#allocation2 + $0x34] sm:$0xf] %v695_v57  ;;  %979 = vst [vmem:[#allocation2 + $0x38] sm:$0x1] %v978_v58  ;;  %v388_v63 = vmax.f32 %v356_v49, 0.0  ;;  %v509_v1 = vsel %vm5988_vm4, 0, %v508_v42  ;;  %v4644_v2 = vpack.c.bf16 %v387_v54, %v387_v54  ;;  %v358_v33 = vadd.f32 %v6261_v0, %v319_v28 }
  0x79   : > { %v2024_v4 = vrot.slane %v5668_v56, 1  ;;  %v1258_v5 = vshrl.u32 %v6329_v59, 16  ;;  %v1260_v10 = vshll.u32 %v6329_v59, 16  ;;  %510 = vst [vmem:[#allocation2 + $0x44] sm:$0x1] %v509_v1  ;;  %v1270_v7 = vshrl.u32 %v6315_v41, 16 }
  0x7a   : > { %v1265_v8 = vshll.u32 %v5676_v62, 16  ;;  %v4645_v9 = vpack.c.bf16 %v388_v63, %v388_v63  ;;  %v698_v11 = vshrl.u32 %v4644_v2, 16  ;;  %v701_v14 = vshll.u32 %v4644_v2, 16  ;;  %v980_v24 = vld [vmem:[#allocation2 + $0x3c] sm:$0xf] }
  0x7b   : > { %v2025_v15 = vsel %vm1465_vm9, %v2023_v61, %v2024_v4  ;;  %v1262_v16 = vrot.slane %v1260_v10, 1  ;;  %v1272_v19 = vshll.u32 %v6315_v41, 16  ;;  %v1277_v13 = vshll.u32 %v5681_v36, 16  ;;  %v6340_v42 = vld [vmem:[#allocation2 + $0x18] sm:$0xff]   ;;  %v458_v2 = vld [vmem:[#allocation2 + $0x54] sm:$0x1] }
  0x7c   : > { %5327 = vmatmul.mubr.bf16.gmra.mrb[12].mxu1 %v2025_v15  ;;  %v1267_v20 = vrot.slane %v1265_v8, 1  ;;  %v700_v22 = vrot.slane %v698_v11, 7  ;;  %v706_v3 = vshrl.u32 %v4645_v9, 16  ;;  %v709_v23 = vshll.u32 %v4645_v9, 16  ;;  %v514_v8 = vld [vmem:[#allocation2 + $0x5c] sm:$0x1] }
  0x7d   : > { %v1263_v29 = vor.u32 %v1262_v16, %v1258_v5  ;;  %v1274_v31 = vrot.slane %v1272_v19, 1  ;;  %v1279_v32 = vrot.slane %v1277_v13, 1  ;;  %v389_v40 = vmax.f32 %v357_v60, 0.0  ;;  %v5685_v43 = vld [vmem:[#allocation2 + $0x20] ss:$0 sps:$4 sm:$0x11]  }
  0x7e   : > { %v703_v37 = vor.u32 %v701_v14, %v700_v22  ;;  %v704_v39 = vrot.slane %v700_v22, 4  ;;  %v708_v38 = vrot.slane %v706_v3, 7  ;;  %v390_v49 = vmax.f32 %v358_v33, 0.0  ;;  %v6371_v16 = vld [vmem:[#allocation2 + $0x24] sm:$0xff]   ;;  %v4850_v3 = vld [vmem:[%s5951_s13 + $0x38] sm:$0xff]  }
  0x7f   : > { %v6342_v46 = vld [vmem:[#allocation2 + $0x30] sm:$0xff]   ;;  %v1268_v47 = vsel %vm1256_vm10, %v1263_v29, %v1267_v20  ;;  %v1275_v48 = vor.u32 %v1274_v31, %v1270_v7  ;;  %v321_v50 = vmul.f32 %v6255_v25, %v4727_v44  ;;  %v6348_v51 = vld [vmem:[#allocation2 + $0x38] ss:$0 sps:$4 sm:$0x11]   ;;  %v4646_v53 = vpack.c.bf16 %v389_v40, %v389_v40  ;;  %v5688_v44 = vld [vmem:[%s7192_s3 + $0x88] sm:$0xff]  }
  0x80   : > { %2732 = vmatprep.mubr.bf16.mxu1 %v1268_v47  ;;  %v711_v6 = vor.u32 %v709_v23, %v708_v38  ;;  %v713_v36 = vrot.slane %v708_v38, 4  ;;  %v981_v26 = vsel %vm6028_vm8, %v703_v37, %v980_v24  ;;  %v984_v52 = vld [vmem:[#allocation2 + $0x44] sm:$0x1]  ;;  %v1807_v54 = vshrl.u32 %v6342_v46, 16 }
  0x81   : > { %v1809_v28 = vshll.u32 %v6342_v46, 16  ;;  %982 = vst [vmem:[#allocation2 + $0x3c] sm:$0xf] %v981_v26  ;;  %v1280_v55 = vsel %vm1256_vm10, %v1275_v48, %v1279_v32  ;;  %v456_v21 = vsel %vm5978_vm3, 0, %v455_v27  ;;  %v1814_v56 = vshll.u32 %v6348_v51, 16  ;;  %v5716_v47 = vld [vmem:[%s7192_s3 + $0x1c0] sm:$0xff]  }
  0x82   : > { %v712_v57 = vsel %vm6022_vm7, %v704_v39, %v711_v6  ;;  %v985_v58 = vsel %vm5978_vm3, %v713_v36, %v984_v52  ;;  %457 = vst [vmem:[#allocation2 + $0x48] sm:$0x1] %v456_v21  ;;  %v512_v60 = vsel %vm5988_vm4, 0, %v511_v34  ;;  %v4647_v62 = vpack.c.bf16 %v390_v49, %v390_v49  ;;  %v5690_v34 = vld [vmem:[#allocation2 + $0x2c] ss:$0 sps:$4 sm:$0x11]   ;;  %5146 = vmatprep.subr.bf16.mxu0 %v5716_v47 }
  0x83   : > { %v1811_v61 = vrot.slane %v1809_v28, 1  ;;  %983 = vst [vmem:[#allocation2 + $0x40] sm:$0xf] %v712_v57  ;;  %986 = vst [vmem:[#allocation2 + $0x44] sm:$0x1] %v985_v58  ;;  %v715_v63 = vshrl.u32 %v4646_v53, 16  ;;  %v359_v20 = vadd.f32 %v6261_v0, %v6322_v45  ;;  %v360_v22 = vadd.f32 %v6261_v0, %v321_v50 }
  0x84   : > { %513 = vst [vmem:[#allocation2 + $0x50] sm:$0x1] %v512_v60  ;;  %v718_v1 = vshll.u32 %v4646_v53, 16  ;;  %v1816_v4 = vrot.slane %v1814_v56, 1  ;;  %2733 = vmatmul.mubr.bf16.vlgmr.msra.gmra.mrb[16].mxu1 %v6329_v59  ;;  %v1282_v5 = vshrl.u32 %v6340_v42, 16  ;;  %v1284_v10 = vshll.u32 %v6340_v42, 16 }
  0x85   : > { %v1289_v7 = vshll.u32 %v5685_v43, 16  ;;  %v1812_v9 = vor.u32 %v1811_v61, %v1807_v54  ;;  %5331 = vmatpush3.bf16.msra.mxu1 %v6226_v17  ;;  %2740 = vmatprep.mubr.bf16.mxu1 %v1280_v55  ;;  %v717_v11 = vrot.slane %v715_v63, 7  ;;  %v723_v14 = vshrl.u32 %v4647_v62, 16  ;;  %v5695_v59 = vld [vmem:[%s7192_s3 + $0x90] sm:$0xff]   ;;  %v5700_v45 = vld [vmem:[%s7192_s3 + $0x98] sm:$0xff]   ;;  %v5705_v58 = vld [vmem:[%s7192_s3 + $0xa0] sm:$0xff]  }
  0x86   : > { %v726_v15 = vshll.u32 %v4647_v62, 16  ;;  %v1286_v19 = vrot.slane %v1284_v10, 1  ;;  %5332 = vmatprep.subr.bf16.mxu1 %v5688_v44  ;;  %v391_v31 = vmax.f32 %v359_v20, 0.0  ;;  %v392_v32 = vmax.f32 %v360_v22, 0.0  ;;  %v517_v20 = vld [vmem:[#allocation2 + $0x68] sm:$0x1] }
  0x87   : > { %v1291_v13 = vrot.slane %v1289_v7, 1  ;;  %v1817_v17 = vsel %vm1256_vm10, %v1812_v9, %v1816_v4  ;;  %v720_v23 = vor.u32 %v718_v1, %v717_v11  ;;  %v721_v24 = vrot.slane %v717_v11, 4  ;;  %v461_v9 = vld [vmem:[#allocation2 + $0x60] sm:$0x1] }
  0x88   : > { %v725_v27 = vrot.slane %v723_v14, 7  ;;  %2290 = vmatprep.mubr.bf16.mxu0 %v1817_v17  ;;  %v1287_v29 = vor.u32 %v1286_v19, %v1282_v5  ;;  %v459_v33 = vsel %vm5978_vm3, 0, %v458_v2  ;;  %v515_v40 = vsel %vm5988_vm4, 0, %v514_v8 }
  0x89   : > { %2291 = vmatmul.mubr.bf16.gmra.mrb[12].mxu0 %v6342_v46  ;;  %v987_v38 = vld [vmem:[#allocation2 + $0x48] sm:$0xf]  ;;  %460 = vst [vmem:[#allocation2 + $0x54] sm:$0x1] %v459_v33  ;;  %5333 = vmatpush3.bf16.msra.mxu1 %v5688_v44  ;;  %v1294_v43 = vshrl.u32 %v6371_v16, 16  ;;  %v4648_v6 = vpack.c.bf16 %v391_v31, %v391_v31  ;;  %v4649_v36 = vpack.c.bf16 %v392_v32, %v392_v32  ;;  %v1296_v54 = vshll.u32 %v6371_v16, 16 }
  0x8a   : > { %v728_v37 = vor.u32 %v726_v15, %v725_v27  ;;  %v730_v39 = vrot.slane %v725_v27, 4  ;;  %v6393_v48 = vld [vmem:[#allocation2 + $0x3c] sm:$0xff]   ;;  %v988_v49 = vsel %vm6028_vm8, %v720_v23, %v987_v38  ;;  %v1292_v50 = vsel %vm1256_vm10, %v1287_v29, %v1291_v13  ;;  %516 = vst [vmem:[#allocation2 + $0x5c] sm:$0x1] %v515_v40  ;;  %5334 = vmatprep.subr.bf16.mxu1 %v5695_v59  ;;  %v6426_v33 = vld [vmem:[#allocation2 + $0x30] sm:$0xff]  }
  0x8b   : > { %v6398_v26 = vld [vmem:[#allocation2 + $0x44] ss:$0 sps:$4 sm:$0x11]   ;;  %989 = vst [vmem:[#allocation2 + $0x48] sm:$0xf] %v988_v49  ;;  %v4730_v28 = vunpack.c.l.bf16 %v4850_v3  ;;  %v4731_v55 = vunpack.c.h.bf16 %v4850_v3  ;;  %v1819_v21 = vshrl.u32 %v6393_v48, 16 }
  0x8c   : > { %v729_v52 = vsel %vm6022_vm7, %v721_v24, %v728_v37  ;;  %v991_v53 = vld [vmem:[#allocation2 + $0x50] sm:$0x1]  ;;  %v1821_v44 = vshll.u32 %v6393_v48, 16  ;;  %2741 = vmatmul.mubr.bf16.gmra.mrb[20].mxu1 %v6315_v41  ;;  %v732_v57 = vshrl.u32 %v4648_v6, 16  ;;  %v1826_v60 = vshll.u32 %v6398_v26, 16 }
  0x8d   : > { %990 = vst [vmem:[#allocation2 + $0x4c] sm:$0xf] %v729_v52  ;;  %v992_v56 = vsel %vm5978_vm3, %v730_v39, %v991_v53  ;;  %2748 = vmatprep.mubr.bf16.mxu1 %v1292_v50  ;;  %v735_v61 = vshll.u32 %v4648_v6, 16  ;;  %v740_v62 = vshrl.u32 %v4649_v36, 16  ;;  %v743_v63 = vshll.u32 %v4649_v36, 16  ;;  %5335 = vmatpush3.bf16.msra.mxu1 %v5695_v59  ;;  %v5710_v59 = vld [vmem:[%s7192_s3 + $0xa8] sm:$0xff]  }
  0x8e   : > { %993 = vst [vmem:[#allocation2 + $0x50] sm:$0x1] %v992_v56  ;;  %v1823_v1 = vrot.slane %v1821_v44, 1  ;;  %v734_v2 = vrot.slane %v732_v57, 7  ;;  %v1298_v41 = vrot.slane %v1296_v54, 1  ;;  %v1301_v4 = vshll.u32 %v5690_v34, 16  ;;  %5336 = vmatprep.subr.bf16.mxu1 %v5700_v45 }
  0x8f   : > { %v1828_v5 = vrot.slane %v1826_v60, 1  ;;  %v742_v10 = vrot.slane %v740_v62, 7  ;;  %v322_v7 = vmul.f32 %v6255_v25, %v4730_v28  ;;  %v323_v8 = vmul.f32 %v6255_v25, %v4731_v55  ;;  %v6418_v27 = vld [vmem:[#allocation2 + $0x38] ss:$0 sps:$4 sm:$0x11]   ;;  %v5715_v53 = vld [vmem:[%s7192_s3 + $0xb0] sm:$0xff]  }
  0x90   : > { %v1824_v11 = vor.u32 %v1823_v1, %v1819_v21  ;;  %v737_v14 = vor.u32 %v735_v61, %v734_v2  ;;  %v738_v15 = vrot.slane %v734_v2, 4  ;;  %v994_v19 = vld [vmem:[#allocation2 + $0x54] sm:$0xf]  ;;  %v1299_v13 = vor.u32 %v1298_v41, %v1294_v43  ;;  %v6450_v41 = vld [vmem:[#allocation2 + $0x3c] sm:$0xff]  }
  0x91   : > { %v745_v22 = vor.u32 %v743_v63, %v742_v10  ;;  %v747_v3 = vrot.slane %v742_v10, 4  ;;  %v998_v17 = vld [vmem:[#allocation2 + $0x5c] sm:$0x1]  ;;  %v1303_v23 = vrot.slane %v1301_v4, 1  ;;  %v361_v24 = vadd.f32 %v6261_v0, %v322_v7  ;;  %5337 = vmatpush3.bf16.msra.mxu1 %v5700_v45 }
  0x92   : > { %v1829_v25 = vsel %vm1256_vm10, %v1824_v11, %v1828_v5  ;;  %v995_v29 = vsel %vm6028_vm8, %v737_v14, %v994_v19  ;;  %v362_v31 = vadd.f32 %v6261_v0, %v323_v8  ;;  %v462_v32 = vsel %vm5978_vm3, 0, %v461_v9  ;;  %5338 = vmatprep.subr.bf16.mxu1 %v5705_v58  ;;  %v6452_v4 = vld [vmem:[#allocation2 + $0x44] ss:$0 sps:$4 sm:$0x11]  }
  0x93   : > { %2298 = vmatprep.mubr.bf16.mxu0 %v1829_v25  ;;  %v746_v37 = vsel %vm6022_vm7, %v738_v15, %v745_v22  ;;  %996 = vst [vmem:[#allocation2 + $0x54] sm:$0xf] %v995_v29  ;;  %v999_v45 = vsel %vm5978_vm3, %v747_v3, %v998_v17  ;;  %v1304_v39 = vsel %vm1256_vm10, %v1299_v13, %v1303_v23  ;;  %v393_v38 = vmax.f32 %v361_v24, 0.0 }
  0x94   : > { %v6428_v34 = vld [vmem:[#allocation2 + $0x48] sm:$0xff]   ;;  %463 = vst [vmem:[#allocation2 + $0x60] sm:$0x1] %v462_v32  ;;  %2299 = vmatmul.mubr.bf16.gmra.mrb[16].mxu0 %v6393_v48  ;;  %2749 = vmatmul.mubr.bf16.gmra.mrb[24].mxu1 %v6340_v42  ;;  %997 = vst [vmem:[#allocation2 + $0x58] sm:$0xf] %v746_v37  ;;  %v394_v40 = vmax.f32 %v362_v31, 0.0 }
  0x95   : > { %v6436_v0 = vld [vmem:[#allocation2 + $0x50] ss:$0 sps:$4 sm:$0x11]   ;;  %1000 = vst [vmem:[#allocation2 + $0x5c] sm:$0x1] %v999_v45  ;;  %v1831_v43 = vshrl.u32 %v6428_v34, 16  ;;  %2756 = vmatprep.mubr.bf16.mxu1 %v1304_v39  ;;  %v4650_v50 = vpack.c.bf16 %v393_v38, %v393_v38  ;;  %5339 = vmatpush3.bf16.msra.mxu1 %v5705_v58 }
  0x96   : > { %v1833_v47 = vshll.u32 %v6428_v34, 16  ;;  %v518_v49 = vsel %vm5988_vm4, 0, %v517_v20  ;;  %v1838_v6 = vshll.u32 %v6436_v0, 16  ;;  %v4651_v36 = vpack.c.bf16 %v394_v40, %v394_v40  ;;  %5340 = vmatprep.subr.bf16.mxu1 %v5710_v59  ;;  %v6466_v22 = vld [vmem:[#allocation2 + $0x50] ss:$0 sps:$4 sm:$0x11]  }
  0x97   : > { %519 = vst [vmem:[#allocation2 + $0x68] sm:$0x1] %v518_v49  ;;  %v1306_v52 = vshrl.u32 %v6426_v33, 16  ;;  %v1308_v42 = vshll.u32 %v6426_v33, 16  ;;  %v749_v28 = vshrl.u32 %v4650_v50, 16  ;;  %v752_v55 = vshll.u32 %v4650_v50, 16 }
  0x98   : > { %v1835_v54 = vrot.slane %v1833_v47, 1  ;;  %v1313_v21 = vshll.u32 %v6418_v27, 16  ;;  %v1840_v44 = vrot.slane %v1838_v6, 1  ;;  %v757_v56 = vshrl.u32 %v4651_v36, 16  ;;  %v6473_v23 = vld [vmem:[#allocation2 + $0x48] sm:$0xff]  }
  0x99   : > { %v760_v57 = vshll.u32 %v4651_v36, 16  ;;  %v1310_v58 = vrot.slane %v1308_v42, 1  ;;  %v751_v61 = vrot.slane %v749_v28, 7  ;;  %5341 = vmatpush3.bf16.msra.mxu1 %v5710_v59  ;;  %v1318_v18 = vshrl.u32 %v6450_v41, 16  ;;  %v6477_v31 = vld [vmem:[#allocation2 + $0x6c] sm:$0xff]  }
  0x9a   : > { %v1836_v60 = vor.u32 %v1835_v54, %v1831_v43  ;;  %v1315_v62 = vrot.slane %v1313_v21, 1  ;;  %v759_v63 = vrot.slane %v757_v56, 7  ;;  %5342 = vmatprep.subr.bf16.mxu1 %v5715_v53  ;;  %v1320_v25 = vshll.u32 %v6450_v41, 16  ;;  %v5786_v42 = vld [vmem:[#allocation2 + $0x74] ss:$0 sps:$4 sm:$0x11]  }
  0x9b   : > { %v1001_v1 = vld [vmem:[#allocation2 + $0x60] sm:$0xf]  ;;  %v1311_v2 = vor.u32 %v1310_v58, %v1306_v52  ;;  %v6455_v10 = vld [vmem:[#allocation2 + $0x54] sm:$0xff]   ;;  %v754_v7 = vor.u32 %v752_v55, %v751_v61  ;;  %v755_v8 = vrot.slane %v751_v61, 4  ;;  %v1869_v12 = vshll.u32 %v6477_v31, 16 }
  0x9c   : > { %v1841_v5 = vsel %vm1256_vm10, %v1836_v60, %v1840_v44  ;;  %v6457_v9 = vld [vmem:[#allocation2 + $0x5c] ss:$0 sps:$4 sm:$0x11]   ;;  %2757 = vmatmul.mubr.bf16.gmra.mrb[28].mxu1 %v6371_v16  ;;  %v762_v11 = vor.u32 %v760_v57, %v759_v63  ;;  %v764_v14 = vrot.slane %v759_v63, 4  ;;  %v1843_v19 = vshrl.u32 %v6455_v10, 16  ;;  %v6485_v50 = vld [vmem:[#allocation2 + $0x54] sm:$0xff]  }
  0x9d   : > { %2306 = vmatprep.mubr.bf16.mxu0 %v1841_v5  ;;  %v1316_v15 = vsel %vm1256_vm10, %v1311_v2, %v1315_v62  ;;  %v1845_v13 = vshll.u32 %v6455_v10, 16  ;;  %v1002_v20 = vsel %vm6028_vm8, %v754_v7, %v1001_v1  ;;  %v1850_v3 = vshll.u32 %v6457_v9, 16  ;;  %5343 = vmatpush3.bf16.msra.mxu1 %v5715_v53  ;;  %v6491_v28 = vld [vmem:[#allocation2 + $0x5c] ss:$0 sps:$4 sm:$0x11]  }
  0x9e   : > { %2307 = vmatmul.mubr.bf16.gmra.mrb[20].mxu0 %v6428_v34  ;;  %v1005_v59 = vld [vmem:[#allocation2 + $0x68] sm:$0x1]  ;;  %2764 = vmatprep.mubr.bf16.mxu1 %v1316_v15  ;;  %v763_v16 = vsel %vm6022_vm7, %v755_v8, %v762_v11  ;;  %1003 = vst [vmem:[#allocation2 + $0x60] sm:$0xf] %v1002_v20  ;;  %v1325_v32 = vshll.u32 %v6452_v4, 16  ;;  %v1322_v45 = vrot.slane %v1320_v25, 1 }
  0x9f   : > { %v1006_v17 = vsel %vm5978_vm3, %v764_v14, %v1005_v59  ;;  %v1847_v24 = vrot.slane %v1845_v13, 1  ;;  %1004 = vst [vmem:[#allocation2 + $0x64] sm:$0xf] %v763_v16  ;;  %v1852_v29 = vrot.slane %v1850_v3, 1  ;;  %v1330_v38 = vshrl.u32 %v6473_v23, 16  ;;  %v6501_v1 = vld [vmem:[#allocation2 + $0x78] sm:$0xff]  }
  0xa0   : > { %1007 = vst [vmem:[#allocation2 + $0x68] sm:$0x1] %v1006_v17  ;;  %v1327_v39 = vrot.slane %v1325_v32, 1  ;;  %v1332_v40 = vshll.u32 %v6473_v23, 16  ;;  %v1323_v47 = vor.u32 %v1322_v45, %v1318_v18  ;;  %v1337_v49 = vshll.u32 %v6466_v22, 16  ;;  %v5728_v20 = vld [vmem:[%s7192_s3 + $0xb8] sm:$0xff]  }
  0xa1   : > { %v1848_v37 = vor.u32 %v1847_v24, %v1843_v19  ;;  %v1867_v6 = vshrl.u32 %v6477_v31, 16  ;;  %v1871_v36 = vrot.slane %v1869_v12, 1  ;;  %v1874_v53 = vshll.u32 %v5786_v42, 16  ;;  %v5788_v17 = vld [vmem:[#allocation2 + $0x80] ss:$0 sps:$4 sm:$0x11]   ;;  %5344 = vmatprep.subr.bf16.mxu1 %v5728_v20 }
  0xa2   : > { %v1334_v52 = vrot.slane %v1332_v40, 1  ;;  %v1328_v54 = vsel %vm1256_vm10, %v1323_v47, %v1327_v39  ;;  %v1339_v44 = vrot.slane %v1337_v49, 1  ;;  %v1344_v57 = vshll.u32 %v6485_v50, 16  ;;  %5345 = vmatpush3.bf16.msra.mxu1 %v5728_v20  ;;  %v6520_v39 = vld [vmem:[#allocation2 + $0x84] sm:$0xff]  }
  0xa3   : > { %v1853_v43 = vsel %vm1256_vm10, %v1848_v37, %v1852_v29  ;;  %v1872_v61 = vor.u32 %v1871_v36, %v1867_v6  ;;  %v1876_v63 = vrot.slane %v1874_v53, 1  ;;  %v1881_v2 = vshll.u32 %v6501_v1, 16  ;;  %v6526_v6 = vld [vmem:[#allocation2 + $0x6c] sm:$0xff]   ;;  %v6529_v36 = vld [vmem:[#allocation2 + $0x74] ss:$0 sps:$4 sm:$0x11]  }
  0xa4   : > { %2314 = vmatprep.mubr.bf16.mxu0 %v1853_v43  ;;  %2765 = vmatmul.mubr.bf16.gmra.mrb[32].mxu1 %v6426_v33  ;;  %v1335_v21 = vor.u32 %v1334_v52, %v1330_v38  ;;  %v1342_v5 = vshrl.u32 %v6485_v50, 16  ;;  %v1346_v11 = vrot.slane %v1344_v57, 1  ;;  %v1349_v14 = vshll.u32 %v6491_v28, 16  ;;  %v5790_v53 = vld [vmem:[#allocation2 + $0x8c] ss:$0 sps:$4 sm:$0x11]  }
  0xa5   : > { %2772 = vmatprep.mubr.bf16.mxu1 %v1328_v54  ;;  %v1877_v59 = vsel %vm1256_vm10, %v1872_v61, %v1876_v63  ;;  %v1879_v3 = vshrl.u32 %v6501_v1, 16  ;;  %v1883_v16 = vrot.slane %v1881_v2, 1  ;;  %v1886_v24 = vshll.u32 %v5788_v17, 16  ;;  %v6535_v61 = vld [vmem:[#allocation2 + $0x90] sm:$0xff]   ;;  %v6539_v2 = vld [vmem:[#allocation2 + $0x78] sm:$0xff]  }
  0xa6   : > { %2315 = vmatmul.mubr.bf16.gmra.mrb[24].mxu0 %v6455_v10  ;;  %v6493_v55 = vld [vmem:[#allocation2 + $0x60] sm:$0xff]   ;;  %v1340_v8 = vsel %vm1256_vm10, %v1335_v21, %v1339_v44  ;;  %v1347_v29 = vor.u32 %v1346_v11, %v1342_v5  ;;  %v1351_v12 = vrot.slane %v1349_v14, 1  ;;  %v1893_v38 = vshll.u32 %v6520_v39, 16 }
  0xa7   : > { %v6495_v56 = vld [vmem:[#allocation2 + $0x68] ss:$0 sps:$4 sm:$0x11]   ;;  %v1855_v58 = vshrl.u32 %v6493_v55, 16  ;;  %v1857_v60 = vshll.u32 %v6493_v55, 16  ;;  %v6507_v15 = vld [vmem:[#allocation2 + $0x60] sm:$0xff]   ;;  %v1884_v37 = vor.u32 %v1883_v16, %v1879_v3 }
  0xa8   : > { %v1862_v62 = vshll.u32 %v6495_v56, 16  ;;  %v6515_v18 = vld [vmem:[#allocation2 + $0x68] ss:$0 sps:$4 sm:$0x11]   ;;  %v1356_v32 = vshll.u32 %v6507_v15, 16  ;;  %v1888_v45 = vrot.slane %v1886_v24, 1  ;;  %v1352_v40 = vsel %vm1256_vm10, %v1347_v29, %v1351_v12 }
  0xa9   : > { %v1859_v7 = vrot.slane %v1857_v60, 1  ;;  %v1354_v43 = vshrl.u32 %v6507_v15, 16  ;;  %v1361_v49 = vshll.u32 %v6515_v18, 16  ;;  %v1891_v42 = vshrl.u32 %v6520_v39, 16 }
  0xaa   : > { %v1864_v19 = vrot.slane %v1862_v62, 1  ;;  %v1358_v47 = vrot.slane %v1356_v32, 1  ;;  %v1889_v52 = vsel %vm1256_vm10, %v1884_v37, %v1888_v45  ;;  %v1898_v54 = vshll.u32 %v5790_v53, 16  ;;  %v6543_v14 = vld [vmem:[#allocation2 + $0x80] ss:$0 sps:$4 sm:$0x11]  }
  0xab   : > { %v1860_v13 = vor.u32 %v1859_v7, %v1855_v58  ;;  %v1895_v21 = vrot.slane %v1893_v38, 1  ;;  %v1363_v57 = vrot.slane %v1361_v49, 1  ;;  %v1368_v58 = vshll.u32 %v6526_v6, 16  ;;  %v6556_v45 = vld [vmem:[#allocation2 + $0x84] sm:$0xff]  }
  0xac   : > { %2773 = vmatmul.mubr.bf16.gmra.mrb[36].mxu1 %v6450_v41  ;;  %v1359_v44 = vor.u32 %v1358_v47, %v1354_v43  ;;  %v1900_v60 = vrot.slane %v1898_v54, 1  ;;  %v1905_v62 = vshll.u32 %v6535_v61, 16  ;;  %v1366_v63 = vshrl.u32 %v6526_v6, 16  ;;  %v6565_v54 = vld [vmem:[#allocation2 + $0x8c] ss:$0 sps:$4 sm:$0x11]  }
  0xad   : > { %2780 = vmatprep.mubr.bf16.mxu1 %v1340_v8  ;;  %v1865_v25 = vsel %vm1256_vm10, %v1860_v13, %v1864_v19  ;;  %v1896_v5 = vor.u32 %v1895_v21, %v1891_v42  ;;  %v1370_v8 = vrot.slane %v1368_v58, 1  ;;  %v1373_v11 = vshll.u32 %v6529_v36, 16  ;;  %v5792_v19 = vld [vmem:[#allocation2 + $0x98] ss:$0 sps:$4 sm:$0x11]  }
  0xae   : > { %2322 = vmatprep.mubr.bf16.mxu0 %v1865_v25  ;;  %v1364_v7 = vsel %vm1256_vm10, %v1359_v44, %v1363_v57  ;;  %v1910_v13 = vshll.u32 %v5792_v19, 16  ;;  %v1907_v20 = vrot.slane %v1905_v62, 1  ;;  %v1380_v25 = vshll.u32 %v6539_v2, 16  ;;  %v5794_v42 = vld [vmem:[#allocation2 + $0xa4] ss:$0 sps:$4 sm:$0x11]  }
  0xaf   : > { %2323 = vmatmul.mubr.bf16.gmra.mrb[28].mxu0 %v6493_v55  ;;  %v1901_v16 = vsel %vm1256_vm10, %v1896_v5, %v1900_v60  ;;  %v1371_v17 = vor.u32 %v1370_v8, %v1366_v63  ;;  %v1375_v24 = vrot.slane %v1373_v11, 1  ;;  %v1987_v29 = vrot.slane %v6342_v46, 1  ;;  %v6576_v5 = vld [vmem:[#allocation2 + $0xa8] sm:$0xff]   ;;  %v6580_v8 = vld [vmem:[#allocation2 + $0x90] sm:$0xff]  }
  0xb0   : > { %2330 = vmatprep.mubr.bf16.mxu0 %v1877_v59  ;;  %v6547_v59 = vld [vmem:[#allocation2 + $0x9c] sm:$0xff]   ;;  %v1912_v12 = vrot.slane %v1910_v13, 1  ;;  %v1385_v37 = vshll.u32 %v6543_v14, 16  ;;  %v1988_v38 = vrot.slane %v6348_v51, 1  ;;  %v1378_v47 = vshrl.u32 %v6539_v2, 16 }
  0xb1   : > { %v1917_v3 = vshll.u32 %v6547_v59, 16  ;;  %v1915_v32 = vshrl.u32 %v6547_v59, 16  ;;  %v1376_v49 = vsel %vm1256_vm10, %v1371_v17, %v1375_v24  ;;  %v1922_v53 = vshll.u32 %v5794_v42, 16  ;;  %v6592_v17 = vld [vmem:[#allocation2 + $0x98] ss:$0 sps:$4 sm:$0x11]  }
  0xb2   : > { %v6562_v46 = vsel %vm1465_vm9, %v1987_v29, %v1988_v38  ;;  %v1991_v21 = vrot.slane %v6398_v26, 1  ;;  %v1387_v51 = vrot.slane %v1385_v37, 1  ;;  %v1993_v44 = vrot.slane %v6428_v34, 1  ;;  %v6605_v38 = vld [vmem:[#allocation2 + $0xb4] sm:$0xff]   ;;  %v6615_v42 = vld [vmem:[#allocation2 + $0x9c] sm:$0xff]  }
  0xb3   : > { %v1919_v43 = vrot.slane %v1917_v3, 1  ;;  %v1392_v57 = vshll.u32 %v6556_v45, 16  ;;  %v1994_v60 = vrot.slane %v6436_v0, 1  ;;  %v1924_v63 = vrot.slane %v1922_v53, 1 }
  0xb4   : > { %2781 = vmatmul.mubr.bf16.gmra.mrb[40].mxu1 %v6473_v23  ;;  %v1929_v26 = vshll.u32 %v6576_v5, 16  ;;  %v1397_v0 = vshll.u32 %v6565_v54, 16  ;;  %v1997_v19 = vrot.slane %v6457_v9, 1  ;;  %v1999_v3 = vrot.slane %v6493_v55, 1 }
  0xb5   : > { %2788 = vmatprep.mubr.bf16.mxu1 %v1352_v40  ;;  %v6583_v34 = vsel %vm1465_vm9, %v1993_v44, %v1994_v60  ;;  %v1394_v11 = vrot.slane %v1392_v57, 1  ;;  %v1920_v13 = vor.u32 %v1919_v43, %v1915_v32  ;;  %v1404_v55 = vshll.u32 %v6580_v8, 16  ;;  %v6611_v43 = vld [vmem:[%s7192_s3 + $0x200] sm:$0xff]   ;;  %v5798_v53 = vld [vmem:[#allocation2 + $0xbc] ss:$0 sps:$4 sm:$0x11]  }
  0xb6   : > { %5378 = vmatprep.subr.bf16.mxu1 %v6611_v43  ;;  %v1939_v44 = vshrl.u32 %v6605_v38, 16  ;;  %v1478_v60 = vrot.slane %v6426_v33, 1  ;;  %v6636_v33 = vld [vmem:[#allocation2 + $0xc0] sm:$0xff]  }
  0xb7   : > { %2331 = vmatmul.mubr.bf16.gmra.mrb[32].mxu0 %v6477_v31  ;;  %v1903_v31 = vshrl.u32 %v6535_v61, 16 }
  0xb8   : > { %2338 = vmatprep.mubr.bf16.mxu0 %v1889_v52  ;;  %v1382_v52 = vrot.slane %v1380_v25, 1  ;;  %v1931_v25 = vrot.slane %v1929_v26, 1  ;;  %v1482_v26 = vrot.slane %v6452_v4, 1  ;;  %v1484_v4 = vrot.slane %v6473_v23, 1 }
  0xb9   : > { %v1908_v40 = vor.u32 %v1907_v20, %v1903_v31  ;;  %v1996_v31 = vrot.slane %v6455_v10, 1  ;;  %v5796_v10 = vld [vmem:[#allocation2 + $0xb0] ss:$0 sps:$4 sm:$0x11]  }
  0xba   : > { %v1383_v62 = vor.u32 %v1382_v52, %v1378_v47  ;;  %v1934_v29 = vshll.u32 %v5796_v10, 16  ;;  %v1406_v52 = vrot.slane %v1404_v55, 1  ;;  %v1414_v10 = vshrl.u32 %v6615_v42, 16  ;;  %v5800_v55 = vld [vmem:[#allocation2 + $0xc8] ss:$0 sps:$4 sm:$0x11]  }
  0xbb   : > { %v6595_v24 = vsel %vm1465_vm9, %v1996_v31, %v1997_v19 }
  0xbc   : > { %2789 = vmatmul.mubr.bf16.gmra.mrb[44].mxu1 %v6485_v50  ;;  %v1388_v20 = vsel %vm1256_vm10, %v1383_v62, %v1387_v51  ;;  %v1936_v37 = vrot.slane %v1934_v29, 1  ;;  %v6619_v51 = vld [vmem:[#allocation2 + $0xa4] ss:$0 sps:$4 sm:$0x11]  }
  0xbd   : > { %2796 = vmatprep.mubr.bf16.mxu1 %v1364_v7  ;;  %v1390_v7 = vshrl.u32 %v6556_v45, 16 }
  0xbf   : > { %2339 = vmatmul.mubr.bf16.gmra.mrb[36].mxu0 %v6501_v1  ;;  %v1990_v1 = vrot.slane %v6393_v48, 1  ;;  %v1913_v48 = vsel %vm1256_vm10, %v1908_v40, %v1912_v12  ;;  %v1399_v12 = vrot.slane %v1397_v0, 1  ;;  %v1395_v32 = vor.u32 %v1394_v11, %v1390_v7 }
  0xc0   : > { %2346 = vmatprep.mubr.bf16.mxu0 %v1901_v16  ;;  %v2000_v16 = vrot.slane %v6495_v56, 1  ;;  %v1925_v56 = vsel %vm1256_vm10, %v1920_v13, %v1924_v63  ;;  %v1941_v40 = vshll.u32 %v6605_v38, 16  ;;  %v1481_v63 = vrot.slane %v6450_v41, 1 }
  0xc1   : > { %v6572_v58 = vsel %vm1465_vm9, %v1990_v1, %v1991_v21  ;;  %v1409_v1 = vshll.u32 %v6592_v17, 16  ;;  %v1946_v21 = vshll.u32 %v5798_v53, 16  ;;  %v1416_v0 = vshll.u32 %v6615_v42, 16 }
  0xc2   : > { %v6600_v9 = vsel %vm1465_vm9, %v1999_v3, %v2000_v16  ;;  %v1943_v57 = vrot.slane %v1941_v40, 1  ;;  %v6633_v13 = vsel %vm1465_vm9, %v1481_v63, %v1482_v26  ;;  %v1953_v41 = vshll.u32 %v6636_v33, 16 }
  0xc3   : > { %v1411_v11 = vrot.slane %v1409_v1, 1  ;;  %v1948_v19 = vrot.slane %v1946_v21, 1  ;;  %v1421_v3 = vshll.u32 %v6619_v51, 16  ;;  %v1485_v16 = vrot.slane %v6466_v22, 1 }
  0xc4   : > { %2797 = vmatmul.mubr.bf16.gmra.mrb[48].mxu1 %v6507_v15  ;;  %v1418_v29 = vrot.slane %v1416_v0, 1  ;;  %v1955_v40 = vrot.slane %v1953_v41, 1  ;;  %v1496_v21 = vrot.slane %v6539_v2, 1  ;;  %v1505_v0 = vrot.slane %v6615_v42, 1 }
  0xc5   : > { %2804 = vmatprep.mubr.bf16.mxu1 %v1376_v49  ;;  %v1402_v49 = vshrl.u32 %v6580_v8, 16  ;;  %v6650_v23 = vsel %vm1465_vm9, %v1484_v4, %v1485_v16 }
  0xc6   : > { %v1419_v1 = vor.u32 %v1418_v29, %v1414_v10 }
  0xc7   : > { %2347 = vmatmul.mubr.bf16.gmra.mrb[40].mxu0 %v6520_v39  ;;  %v1927_v39 = vshrl.u32 %v6576_v5, 16  ;;  %v1407_v7 = vor.u32 %v1406_v52, %v1402_v49  ;;  %v1493_v49 = vrot.slane %v6526_v6, 1  ;;  %v1494_v52 = vrot.slane %v6529_v36, 1  ;;  %v6671_v36 = vld [vmem:[#allocation2 + $0xb4] sm:$0xff]  }
  0xc8   : > { %2354 = vmatprep.mubr.bf16.mxu0 %v1913_v48  ;;  %v1479_v48 = vrot.slane %v6418_v27, 1  ;;  %v1944_v27 = vor.u32 %v1943_v57, %v1939_v44  ;;  %v1440_v41 = vshll.u32 %v6671_v36, 16  ;;  %v1511_v10 = vrot.slane %v6671_v36, 1 }
  0xc9   : > { %v1932_v47 = vor.u32 %v1931_v25, %v1927_v39  ;;  %v1487_v39 = vrot.slane %v6485_v50, 1  ;;  %v1488_v25 = vrot.slane %v6491_v28, 1  ;;  %v1490_v50 = vrot.slane %v6507_v15, 1 }
  0xca   : > { %v6630_v31 = vsel %vm1465_vm9, %v1478_v60, %v1479_v48  ;;  %v1949_v22 = vsel %vm1256_vm10, %v1944_v27, %v1948_v19  ;;  %v1491_v28 = vrot.slane %v6515_v18, 1  ;;  %v6667_v44 = vsel %vm1465_vm9, %v1493_v49, %v1494_v52  ;;  %v5804_v49 = vld [vmem:[#allocation2 + $0x20] ss:$0 sps:$4 sm:$0x11]  }
  0xcb   : > { %v1937_v62 = vsel %vm1256_vm10, %v1932_v47, %v1936_v37  ;;  %v6653_v37 = vsel %vm1465_vm9, %v1487_v39, %v1488_v25  ;;  %v1423_v47 = vrot.slane %v1421_v3, 1  ;;  %v1497_v18 = vrot.slane %v6543_v14, 1  ;;  %v5732_v14 = vld [vmem:[#allocation2 + $0xbc] ss:$0 sps:$4 sm:$0x11]  }
  0xcc   : > { %2805 = vmatmul.mubr.bf16.gmra.mrb[52].mxu1 %v6526_v6  ;;  %v6663_v53 = vsel %vm1465_vm9, %v1490_v50, %v1491_v28  ;;  %v1499_v60 = vrot.slane %v6556_v45, 1  ;;  %v1500_v48 = vrot.slane %v6565_v54, 1  ;;  %v1506_v19 = vrot.slane %v6619_v51, 1  ;;  %v5802_v25 = vld [vmem:[#allocation2 + $0x14] ss:$0 sps:$4 sm:$0x11]  }
  0xcd   : > { %2812 = vmatprep.mubr.bf16.mxu1 %v1388_v20  ;;  %v6639_v20 = vld [vmem:[#allocation2 + $0xa8] sm:$0xff]   ;;  %v6678_v26 = vsel %vm1465_vm9, %v1496_v21, %v1497_v18  ;;  %v1438_v51 = vshrl.u32 %v6671_v36, 16  ;;  %v1512_v29 = vrot.slane %v5732_v14, 1  ;;  %v1982_v52 = vrot.slane %v5804_v49, 1 }
  0xce   : > { %v1508_v3 = vrot.slane %v6639_v20, 1  ;;  %v5806_v21 = vld [vmem:[#allocation2 + $0x2c] ss:$0 sps:$4 sm:$0x11]  }
  0xcf   : > { %2355 = vmatmul.mubr.bf16.gmra.mrb[44].mxu0 %v6535_v61  ;;  %v1400_v61 = vsel %vm1256_vm10, %v1395_v32, %v1399_v12  ;;  %v1951_v12 = vshrl.u32 %v6636_v33, 16  ;;  %v5725_v32 = vld [vmem:[#allocation2 + $0xb0] ss:$0 sps:$4 sm:$0x11]  }
  0xd0   : > { %2362 = vmatprep.mubr.bf16.mxu0 %v1925_v56  ;;  %v1958_v56 = vshll.u32 %v5800_v55, 16  ;;  %v1433_v57 = vshll.u32 %v5725_v32, 16  ;;  %v1509_v39 = vrot.slane %v5725_v32, 1  ;;  %v1442_v55 = vrot.slane %v1440_v41, 1  ;;  %v5811_v41 = vld [vmem:[#allocation2 + $0x18] sm:$0xff]  }
  0xd1   : > { %v1956_v6 = vor.u32 %v1955_v40, %v1951_v12  ;;  %v5803_v40 = vld [vmem:[#allocation2 + $0x18] sm:$0xff]  }
  0xd2   : > { %v1960_v15 = vrot.slane %v1958_v56, 1  ;;  %v1445_v56 = vshll.u32 %v5732_v14, 16  ;;  %v1443_v50 = vor.u32 %v1442_v55, %v1438_v51  ;;  %v6745_v51 = vld [vmem:[#allocation2 + $0x20] ss:$0 sps:$4 sm:$0x11]  }
  0xd3   : > { %v3223_v49 = vshll.u32 %v6745_v51, 16 }
  0xd4   : > { %2813 = vmatmul.mubr.bf16.gmra.mrb[56].mxu1 %v6539_v2  ;;  %v1426_v2 = vshrl.u32 %v6639_v20, 16  ;;  %v1961_v54 = vsel %vm1256_vm10, %v1956_v6, %v1960_v15  ;;  %v1447_v28 = vrot.slane %v1445_v56, 1  ;;  %v1985_v15 = vrot.slane %v5806_v21, 1  ;;  %v5717_v6 = vld [vmem:[%s7192_s3 + $0x180] sm:$0xff]   ;;  %v5735_v21 = vld [vmem:[%s7192_s3 + $0x1f0] sm:$0xff]  }
  0xd5   : > { %2820 = vmatprep.mubr.bf16.mxu1 %v1400_v61  ;;  %v1428_v61 = vshll.u32 %v6639_v20, 16  ;;  %v5730_v56 = vld [vmem:[%s7192_s3 + $0x1a0] sm:$0xff]  }
  0xd6   : > { %v1448_v18 = vsel %vm1256_vm10, %v1443_v50, %v1447_v28  ;;  %v5814_v28 = vld [vmem:[#allocation2 + $0x2c] ss:$0 sps:$4 sm:$0x11]  }
  0xd7   : > { %2363 = vmatmul.mubr.bf16.gmra.mrb[48].mxu0 %v6547_v59  ;;  %v1412_v59 = vsel %vm1256_vm10, %v1407_v7, %v1411_v11  ;;  %v1430_v63 = vrot.slane %v1428_v61, 1  ;;  %v1502_v7 = vrot.slane %v6580_v8, 1  ;;  %v1435_v11 = vrot.slane %v1433_v57, 1 }
  0xd8   : > { %2370 = vmatprep.mubr.bf16.mxu0 %v1937_v62  ;;  %v1424_v62 = vsel %vm1256_vm10, %v1419_v1, %v1423_v47  ;;  %v1981_v47 = vrot.slane %v5803_v40, 1  ;;  %v5805_v1 = vld [vmem:[#allocation2 + $0x24] sm:$0xff]   ;;  %v1476_v40 = vrot.slane %v5814_v28, 1 }
  0xd9   : > { %v1431_v27 = vor.u32 %v1430_v63, %v1426_v2  ;;  %v1984_v61 = vrot.slane %v5805_v1, 1  ;;  %v5722_v63 = vld [vmem:[%s7192_s3 + $0x1d0] sm:$0xff]   ;;  %v5734_v1 = vld [vmem:[%s7192_s3 + $0x1a8] sm:$0xff]  }
  0xdb   : > { %v1436_v12 = vsel %vm1256_vm10, %v1431_v27, %v1435_v11  ;;  %v1986_v57 = vsel %vm1465_vm9, %v1984_v61, %v1985_v15  ;;  %v5810_v11 = vld [vmem:[#allocation2 + $0x14] ss:$0 sps:$4 sm:$0x11]   ;;  %v6734_v27 = vld [vmem:[#allocation2 + $0x18] sm:$0xff]  }
  0xdc   : > { %2821 = vmatmul.mubr.bf16.gmra.mrb[60].mxu1 %v6556_v45  ;;  %v1503_v45 = vrot.slane %v6592_v17, 1  ;;  %v5801_v17 = vld [vmem:[#allocation2 + $0xc] sm:$0xff]   ;;  %v3216_v35 = vshrl.u32 %v6734_v27, 16 }
  0xdd   : > { %2828 = vmatprep.mubr.bf16.mxu1 %v1412_v59  ;;  %v1978_v16 = vrot.slane %v5801_v17, 1  ;;  %v1979_v59 = vrot.slane %v5802_v25, 1  ;;  %v5812_v17 = vld [vmem:[#allocation2 + $0x20] ss:$0 sps:$4 sm:$0x11]  }
  0xde   : > { %v6691_v4 = vsel %vm1465_vm9, %v1502_v7, %v1503_v45  ;;  %v5723_v7 = vld [vmem:[%s7192_s3 + $0x190] sm:$0xff]   ;;  %v488_v25 = vld [vmem:[#allocation2 + $0xcc] sm:$0x1] }
  0xdf   : > { %2371 = vmatmul.mubr.bf16.gmra.mrb[52].mxu0 %v6576_v5  ;;  %v6681_v5 = vsel %vm1465_vm9, %v1499_v60, %v1500_v48  ;;  %v1980_v32 = vsel %vm1465_vm9, %v1978_v16, %v1979_v59  ;;  %v5807_v60 = vld [vmem:[#allocation2] sm:$0xff]   ;;  %v5809_v45 = vld [vmem:[#allocation2 + $0xc] sm:$0xff]   ;;  %v1473_v16 = vrot.slane %v5812_v17, 1 }
  0xe0   : > { %2378 = vmatprep.mubr.bf16.mxu0 %v1949_v22  ;;  %v6702_v22 = vsel %vm1465_vm9, %v1508_v3, %v1509_v39  ;;  %v1466_v48 = vrot.slane %v5807_v60, 1  ;;  %v1472_v3 = vrot.slane %v5811_v41, 1  ;;  %v5729_v59 = vld [vmem:[%s7192_s3 + $0x1e0] sm:$0xff]  }
  0xe1   : > { %v6815_v41 = vld [vmem:[#allocation2 + $0x3c] sm:$0xff]   ;;  %v6821_v17 = vld [vmem:[#allocation2 + $0x44] ss:$0 sps:$4 sm:$0x11]  }
  0xe4   : > { %2829 = vmatmul.mubr.bf16.gmra.mrb[64].mxu1 %v6580_v8  ;;  %v6695_v8 = vsel %vm1465_vm9, %v1505_v0, %v1506_v19  ;;  %v1470_v0 = vrot.slane %v5810_v11, 1  ;;  %v5726_v19 = vld [vmem:[%s7192_s3 + $0x1d8] sm:$0xff]  }
  0xe5   : > { %2836 = vmatprep.mubr.bf16.mxu1 %v1424_v62  ;;  %v5808_v62 = vld [vmem:[#allocation2 + $0x8] ss:$0 sps:$4 sm:$0x11]  }
  0xe6   : > { %v1467_v2 = vrot.slane %v5808_v62, 1 }
  0xe7   : > { %2379 = vmatmul.mubr.bf16.gmra.mrb[56].mxu0 %v6605_v38  ;;  %v6705_v38 = vsel %vm1465_vm9, %v1511_v10, %v1512_v29  ;;  %v3218_v10 = vshll.u32 %v6734_v27, 16  ;;  %v5744_v29 = vld [vmem:[%s7192_s3 + $0x208] sm:$0xff]  }
  0xe8   : > { %2386 = vmatprep.mubr.bf16.mxu0 %v1961_v54  ;;  %v1468_v14 = vsel %vm1465_vm9, %v1466_v48, %v1467_v2  ;;  %v1469_v54 = vrot.slane %v5809_v45, 1  ;;  %v6795_v2 = vld [vmem:[#allocation2 + $0x30] sm:$0xff]  }
  0xe9   : > { %v3242_v45 = vshll.u32 %v6795_v2, 16  ;;  %v3240_v11 = vshrl.u32 %v6795_v2, 16 }
  0xea   : > { %v1471_v39 = vsel %vm1465_vm9, %v1469_v54, %v1470_v0  ;;  %v5756_v54 = vld [vmem:[%s7192_s3 + $0x228] sm:$0xff]  }
  0xeb   : > { %v3244_v0 = vrot.slane %v3242_v45, 1 }
  0xec   : > { %2837 = vmatmul.mubr.bf16.gmra.mrb[68].mxu1 %v6615_v42  ;;  %v1983_v42 = vsel %vm1465_vm9, %v1981_v47, %v1982_v52  ;;  %v3220_v47 = vrot.slane %v3218_v10, 1  ;;  %v6765_v52 = vld [vmem:[#allocation2 + $0x24] sm:$0xff]  }
  0xed   : > { %2844 = vmatprep.mubr.bf16.mxu1 %v1436_v12  ;;  %v544_v12 = vld [vmem:[#allocation2 + $0xd4] sm:$0x1]  ;;  %v3228_v60 = vshrl.u32 %v6765_v52, 16 }
  0xee   : > { %v545_v55 = vsel %vm5988_vm4, 0, %v544_v12  ;;  %v3221_v15 = vor.u32 %v3220_v47, %v3216_v35 }
  0xef   : > { %2387 = vmatmul.mubr.bf16.gmra.mrb[60].mxu0 %v6636_v33  ;;  %v5720_v33 = vld [vmem:[%s7192_s3 + $0x1c8] sm:$0xff]   ;;  %546 = vst [vmem:[#allocation2 + $0xd4] sm:$0x1] %v545_v55 }
  0xf0   : > { %5298 = vmatprep.mubr.bf16.mxu0 %v1980_v32  ;;  %v5813_v32 = vld [vmem:[#allocation2 + $0x24] sm:$0xff]  }
  0xf1   : > { %v1475_v50 = vrot.slane %v5813_v32, 1 }
  0xf3   : > { %v1477_v61 = vsel %vm1465_vm9, %v1475_v50, %v1476_v40  ;;  %v6839_v50 = vld [vmem:[#allocation2 + $0x50] ss:$0 sps:$4 sm:$0x11]   ;;  %v6844_v40 = vld [vmem:[#allocation2 + $0x54] sm:$0xff]  }
  0xf4   : > { %2845 = vmatmul.mubr.bf16.gmra.mrb[72].mxu1 %v6639_v20  ;;  %v5721_v20 = vld [vmem:[%s7192_s3 + $0x188] sm:$0xff]  }
  0xf5   : > { %2852 = vmatprep.mubr.bf16.mxu1 %v1448_v18  ;;  %v3225_v18 = vrot.slane %v3223_v49, 1  ;;  %v3271_v49 = vshll.u32 %v6839_v50, 16 }
  0xf7   : > { %5299 = vmatmul.mubr.bf16.vlgmr.msra.gmra.mrb[64].mxu0 %v1983_v42  ;;  %v6779_v42 = vld [vmem:[#allocation2 + $0x2c] ss:$0 sps:$4 sm:$0x11]  }
  0xf8   : > { %5147 = vmatpush3.bf16.msra.mxu0 %v5717_v6  ;;  %5302 = vmatprep.mubr.bf16.mxu0 %v1986_v57  ;;  %v5750_v6 = vld [vmem:[%s7192_s3 + $0x218] sm:$0xff]   ;;  %v3226_v57 = vsel %vm1256_vm10, %v3221_v15, %v3225_v18  ;;  %v3235_v62 = vshll.u32 %v6779_v42, 16 }
  0xf9   : > { %5148 = vmatprep.subr.bf16.mxu0 %v5720_v33  ;;  %v5737_v33 = vld [vmem:[%s7192_s3 + $0x1f8] sm:$0xff]  }
  0xfc   : > { %2853 = vmatmul.mubr.bf16.gmra.mrb[76].mxu1 %v6671_v36  ;;  %5149 = vmatpush3.bf16.msra.mxu0 %v5721_v20  ;;  %v5727_v36 = vld [vmem:[%s7192_s3 + $0x198] sm:$0xff]  }
  0xfd   : > { %5346 = vmatprep.mubr.bf16.mxu1 %v1468_v14  ;;  %5150 = vmatprep.subr.bf16.mxu0 %v5722_v63  ;;  %v5738_v20 = vld [vmem:[%s7192_s3 + $0x1b8] sm:$0xff]   ;;  %v3237_v14 = vrot.slane %v3235_v62, 1 }
  0xff   : > { %5303 = vmatmul.mubr.bf16.gmra.mrb[68].mxu0 %v6562_v46  ;;  %v1474_v46 = vsel %vm1465_vm9, %v1472_v3, %v1473_v16  ;;  %v5759_v3 = vld [vmem:[%s7192_s3 + $0x230] sm:$0xff]   ;;  %v3254_v16 = vshll.u32 %v6815_v41, 16 }
 0x100   : > { %5151 = vmatpush3.bf16.msra.mxu0 %v5723_v7  ;;  %5306 = vmatprep.mubr.bf16.mxu0 %v6572_v58  ;;  %v489_v58 = vsel %vm5978_vm3, 0, %v488_v25  ;;  %v6804_v7 = vld [vmem:[#allocation2 + $0x38] ss:$0 sps:$4 sm:$0x11]   ;;  %v3252_v25 = vshrl.u32 %v6815_v41, 16 }
 0x101   : > { %5152 = vmatprep.subr.bf16.mxu0 %v5726_v19  ;;  %490 = vst [vmem:[#allocation2 + $0xcc] sm:$0x1] %v489_v58  ;;  %v3247_v19 = vshll.u32 %v6804_v7, 16  ;;  %v6832_v58 = vld [vmem:[#allocation2 + $0x48] sm:$0xff]  }
 0x102   : > { %v3266_v28 = vshll.u32 %v6832_v58, 16  ;;  %v3264_v35 = vshrl.u32 %v6832_v58, 16 }
 0x104   : > { %5347 = vmatmul.mubr.bf16.vlgmr.msra.gmra.mrb[80].mxu1 %v1471_v39  ;;  %5153 = vmatpush3.bf16.msra.mxu0 %v5727_v36  ;;  %v5762_v36 = vld [vmem:[%s7192_s3 + $0x238] sm:$0xff]   ;;  %v3268_v47 = vrot.slane %v3266_v28, 1 }
 0x105   : > { %5379 = vmatpush3.bf16.msra.mxu1 %v6611_v43  ;;  %5154 = vmatprep.subr.bf16.mxu0 %v5729_v59  ;;  %v5747_v43 = vld [vmem:[%s7192_s3 + $0x210] sm:$0xff]  }
 0x106   : > { %5350 = vmatprep.mubr.bf16.mxu1 %v1474_v46  ;;  %5380 = vmatprep.subr.bf16.mxu1 %v5744_v29  ;;  %v3256_v46 = vrot.slane %v3254_v16, 1  ;;  %v3427_v16 = vrot.slane %v6779_v42, 1 }
 0x107   : > { %5307 = vmatmul.mubr.bf16.gmra.mrb[72].mxu0 %v6583_v34  ;;  %v3230_v34 = vshll.u32 %v6765_v52, 16 }
 0x108   : > { %5155 = vmatpush3.bf16.msra.mxu0 %v5730_v56  ;;  %5310 = vmatprep.mubr.bf16.mxu0 %v6595_v24  ;;  %v5736_v24 = vld [vmem:[%s7192_s3 + $0x1b0] sm:$0xff]  }
 0x109   : > { %5156 = vmatprep.subr.bf16.mxu0 %v5733_v30  ;;  %5381 = vmatpush3.bf16.msra.mxu1 %v5744_v29  ;;  %v3232_v48 = vrot.slane %v3230_v34, 1  ;;  %v3259_v29 = vshll.u32 %v6821_v17, 16  ;;  %v6858_v34 = vld [vmem:[#allocation2 + $0x60] sm:$0xff]  }
 0x10a   : > { %5382 = vmatprep.subr.bf16.mxu1 %v5747_v43  ;;  %v3290_v62 = vshll.u32 %v6858_v34, 16 }
 0x10b   : > { %v3233_v63 = vor.u32 %v3232_v48, %v3228_v60  ;;  %v3261_v32 = vrot.slane %v3259_v29, 1  ;;  %v6863_v48 = vld [vmem:[#allocation2 + $0x68] ss:$0 sps:$4 sm:$0x11]  }
 0x10c   : > { %5351 = vmatmul.mubr.bf16.gmra.mrb[84].mxu1 %v1477_v61  ;;  %5157 = vmatpush3.bf16.msra.mxu0 %v5734_v1  ;;  %v3278_v1 = vshll.u32 %v6844_v40, 16  ;;  %v3269_v61 = vor.u32 %v3268_v47, %v3264_v35  ;;  %v3292_v45 = vrot.slane %v3290_v62, 1  ;;  %v6894_v29 = vld [vmem:[#allocation2 + $0x80] ss:$0 sps:$4 sm:$0x11]   ;;  %v3435_v35 = vrot.slane %v6832_v58, 1 }
 0x10d   : > { %5354 = vmatprep.mubr.bf16.mxu1 %v6630_v31  ;;  %5158 = vmatprep.subr.bf16.mxu0 %v5735_v21  ;;  %v5753_v31 = vld [vmem:[%s7192_s3 + $0x220] sm:$0xff]   ;;  %v3319_v28 = vshll.u32 %v6894_v29, 16  ;;  %v3436_v47 = vrot.slane %v6839_v50, 1  ;;  %v6922_v62 = vld [vmem:[#allocation2 + $0x90] sm:$0xff]  }
 0x10e   : > { %5383 = vmatpush3.bf16.msra.mxu1 %v5747_v43  ;;  %v6850_v43 = vld [vmem:[#allocation2 + $0x5c] ss:$0 sps:$4 sm:$0x11]   ;;  %v3280_v21 = vrot.slane %v3278_v1, 1 }
 0x10f   : > { %5384 = vmatprep.subr.bf16.mxu1 %v5750_v6  ;;  %5311 = vmatmul.mubr.bf16.gmra.mrb[76].mxu0 %v6600_v9  ;;  %v3238_v9 = vsel %vm1256_vm10, %v3233_v63, %v3237_v14  ;;  %v3283_v15 = vshll.u32 %v6850_v43, 16  ;;  %v3288_v63 = vshrl.u32 %v6858_v34, 16  ;;  %v6872_v14 = vld [vmem:[#allocation2 + $0x6c] sm:$0xff]  }
 0x110   : > { %5159 = vmatpush3.bf16.msra.mxu0 %v5736_v24  ;;  %3711 = vmatprep.mubr.bf16.mxu0 %v3226_v57 }
 0x111   : > { %5160 = vmatprep.subr.bf16.mxu0 %v5737_v33  ;;  %v3285_v57 = vrot.slane %v3283_v15, 1 }
 0x112   : > { %5385 = vmatpush3.bf16.msra.mxu1 %v5750_v6 }
 0x113   : > { %5386 = vmatprep.subr.bf16.mxu1 %v5753_v31 }
 0x114   : > { %5355 = vmatmul.mubr.bf16.gmra.mrb[88].mxu1 %v6633_v13  ;;  %5161 = vmatpush3.bf16.msra.mxu0 %v5738_v20  ;;  %v3245_v13 = vor.u32 %v3244_v0, %v3240_v11  ;;  %v3424_v11 = vrot.slane %v6745_v51, 1  ;;  %v6878_v0 = vld [vmem:[#allocation2 + $0x74] ss:$0 sps:$4 sm:$0x11]   ;;  %v3426_v51 = vrot.slane %v6765_v52, 1 }
 0x115   : > { %5358 = vmatprep.mubr.bf16.mxu1 %v6650_v23  ;;  %v3249_v23 = vrot.slane %v3247_v19, 1  ;;  %v3293_v19 = vor.u32 %v3292_v45, %v3288_v63  ;;  %v5768_v45 = vld [vmem:[#allocation2 + $0x98] ss:$0 sps:$4 sm:$0x11]  }
 0x116   : > { %5387 = vmatpush3.bf16.msra.mxu1 %v5753_v31 }
 0x117   : > { %5388 = vmatprep.subr.bf16.mxu1 %v5756_v54  ;;  %3712 = vmatmul.mubr.bf16.vlgmr.msra.gmra.mrb[80].mxu0 %v6734_v27  ;;  %v3250_v10 = vsel %vm1256_vm10, %v3245_v13, %v3249_v23  ;;  %v3300_v13 = vshrl.u32 %v6872_v14, 16 }
 0x118   : > { %3719 = vmatprep.mubr.bf16.mxu0 %v3238_v9  ;;  %v3423_v9 = vrot.slane %v6734_v27, 1  ;;  %v3307_v27 = vshll.u32 %v6878_v0, 16 }
 0x11a   : > { %5389 = vmatpush3.bf16.msra.mxu1 %v5756_v54  ;;  %v3295_v54 = vshll.u32 %v6863_v48, 16 }
 0x11b   : > { %5390 = vmatprep.subr.bf16.mxu1 %v5759_v3 }
 0x11c   : > { %5359 = vmatmul.mubr.bf16.gmra.mrb[92].mxu1 %v6653_v37  ;;  %v4890_v39 = vpop.f32.mrb[0].mxu0 }
 0x11d   : > { %5362 = vmatprep.mubr.bf16.mxu1 %v6663_v53  ;;  %v4891_v59 = vpop.f32.mrb[1].mxu0  ;;  %v3257_v53 = vor.u32 %v3256_v46, %v3252_v25  ;;  %v3429_v25 = vrot.slane %v6795_v2, 1  ;;  %v3428_v46 = vsel %vm1465_vm9, %v3426_v51, %v3427_v16 }
 0x11e   : > { %5391 = vmatpush3.bf16.msra.mxu1 %v5759_v3  ;;  %v6834_v12 = vadd.f32 %v4891_v59, %v4890_v39  ;;  %v4893_v55 = vpop.f32.mrb[2].mxu0  ;;  %v3297_v3 = vrot.slane %v3295_v54, 1  ;;  %v6888_v39 = vld [vmem:[#allocation2 + $0x78] sm:$0xff]   ;;  %v3430_v59 = vrot.slane %v6804_v7, 1  ;;  %v3432_v7 = vrot.slane %v6815_v41, 1 }
 0x11f   : > { %v4894_v56 = vpop.f32.mrb[3].mxu0  ;;  %5392 = vmatprep.subr.bf16.mxu1 %v5762_v36  ;;  %3720 = vmatmul.mubr.bf16.gmra.mrb[84].mxu0 %v6765_v52  ;;  %v3262_v30 = vsel %vm1256_vm10, %v3257_v53, %v3261_v32  ;;  %v3314_v52 = vshll.u32 %v6888_v39, 16  ;;  %v6902_v53 = vld [vmem:[#allocation2 + $0x84] sm:$0xff]  }
 0x120   : > { %v6837_v37 = vadd.f32 %v4894_v56, %v4893_v55  ;;  %3727 = vmatprep.mubr.bf16.mxu0 %v3250_v10  ;;  %v3309_v10 = vrot.slane %v3307_v27, 1  ;;  %v3431_v42 = vsel %vm1465_vm9, %v3429_v25, %v3430_v59  ;;  %v3433_v56 = vrot.slane %v6821_v17, 1 }
 0x121   : > { %v3316_v32 = vrot.slane %v3314_v52, 1  ;;  %v3324_v50 = vshrl.u32 %v6902_v53, 16 }
 0x122   : > { %5393 = vmatpush3.bf16.msra.mxu1 %v5762_v36  ;;  %v3298_v36 = vsel %vm1256_vm10, %v3293_v19, %v3297_v3  ;;  %v6933_v19 = vld [vmem:[#allocation2 + $0x9c] sm:$0xff]  }
 0x123   : > { %v3350_v25 = vshll.u32 %v6933_v19, 16 }
 0x124   : > { %5363 = vmatmul.mubr.bf16.gmra.mrb[0].mxu1 %v6667_v44  ;;  %v3273_v44 = vrot.slane %v3271_v49, 1 }
 0x125   : > { %5366 = vmatprep.mubr.bf16.mxu1 %v6678_v26  ;;  %v3276_v26 = vshrl.u32 %v6844_v40, 16 }
 0x126   : > { %v3274_v18 = vsel %vm1256_vm10, %v3269_v61, %v3273_v44  ;;  %v3326_v44 = vshll.u32 %v6902_v53, 16 }
 0x127   : > { %3728 = vmatmul.mubr.bf16.gmra.mrb[88].mxu0 %v6795_v2  ;;  %v3281_v33 = vor.u32 %v3280_v21, %v3276_v26  ;;  %v3312_v2 = vshrl.u32 %v6888_v39, 16  ;;  %v3321_v21 = vrot.slane %v3319_v28, 1 }
 0x128   : > { %3735 = vmatprep.mubr.bf16.mxu0 %v3262_v30 }
 0x129   : > { %v3286_v20 = vsel %vm1256_vm10, %v3281_v33, %v3285_v57  ;;  %v3317_v26 = vor.u32 %v3316_v32, %v3312_v2  ;;  %v3439_v33 = vrot.slane %v6850_v43, 1  ;;  %v3338_v43 = vshll.u32 %v6922_v62, 16 }
 0x12b   : > { %v3322_v57 = vsel %vm1256_vm10, %v3317_v26, %v3321_v21 }
 0x12c   : > { %5367 = vmatmul.mubr.bf16.gmra.mrb[4].mxu1 %v6681_v5 }
 0x12d   : > { %5370 = vmatprep.mubr.bf16.mxu1 %v6691_v4 }
 0x12f   : > { %v4896_v6 = vpop.f32.mrb[4].mxu0  ;;  %3736 = vmatmul.mubr.bf16.gmra.mrb[92].mxu0 %v6815_v41  ;;  %v3434_v41 = vsel %vm1465_vm9, %v3432_v7, %v3433_v56  ;;  %v3450_v7 = vrot.slane %v6902_v53, 1 }
 0x130   : > { %v4897_v24 = vpop.f32.mrb[5].mxu0  ;;  %3743 = vmatprep.mubr.bf16.mxu0 %v3274_v18  ;;  %v6914_v18 = vld [vmem:[#allocation2 + $0x8c] ss:$0 sps:$4 sm:$0x11]  }
 0x131   : > { %v6861_v60 = vadd.f32 %v4897_v24, %v4896_v6  ;;  %v4899_v5 = vpop.f32.mrb[6].mxu0  ;;  %v3328_v6 = vrot.slane %v3326_v44, 1  ;;  %v3438_v24 = vrot.slane %v6844_v40, 1  ;;  %v3451_v56 = vrot.slane %v6914_v18, 1 }
 0x132   : > { %v4900_v31 = vpop.f32.mrb[7].mxu0 }
 0x133   : > { %v6866_v4 = vadd.f32 %v4900_v31, %v4899_v5  ;;  %v3331_v5 = vshll.u32 %v6914_v18, 16  ;;  %v3441_v31 = vrot.slane %v6858_v34, 1  ;;  %v3440_v63 = vsel %vm1465_vm9, %v3438_v24, %v3439_v33 }
 0x134   : > { %5371 = vmatmul.mubr.bf16.gmra.mrb[8].mxu1 %v6695_v8  ;;  %v3302_v8 = vshll.u32 %v6872_v14, 16  ;;  %v3329_v54 = vor.u32 %v3328_v6, %v3324_v50  ;;  %v3452_v18 = vsel %vm1465_vm9, %v3450_v7, %v3451_v56 }
 0x135   : > { %5374 = vmatprep.mubr.bf16.mxu1 %v6702_v22  ;;  %v3425_v22 = vsel %vm1465_vm9, %v3423_v9, %v3424_v11  ;;  %v3336_v11 = vshrl.u32 %v6922_v62, 16 }
 0x136   : > { %v3304_v23 = vrot.slane %v3302_v8, 1  ;;  %v3343_v8 = vshll.u32 %v5768_v45, 16 }
 0x137   : > { %3744 = vmatmul.mubr.bf16.gmra.mrb[96].mxu0 %v6832_v58  ;;  %v3437_v58 = vsel %vm1465_vm9, %v3435_v35, %v3436_v47  ;;  %v6952_v35 = vld [vmem:[#allocation2 + $0xa8] sm:$0xff]   ;;  %v3453_v47 = vrot.slane %v6922_v62, 1 }
 0x138   : > { %3751 = vmatprep.mubr.bf16.mxu0 %v3286_v20  ;;  %v3442_v20 = vrot.slane %v6863_v48, 1  ;;  %v3445_v48 = vrot.slane %v6878_v0, 1  ;;  %v5770_v0 = vld [vmem:[#allocation2 + $0xa4] ss:$0 sps:$4 sm:$0x11]   ;;  %v3362_v33 = vshll.u32 %v6952_v35, 16 }
 0x139   : > { %v3355_v2 = vshll.u32 %v5770_v0, 16 }
 0x13a   : > { %v3443_v9 = vsel %vm1465_vm9, %v3441_v31, %v3442_v20  ;;  %v3456_v20 = vrot.slane %v6933_v19, 1 }
 0x13b   : > { %v3357_v6 = vrot.slane %v3355_v2, 1 }
 0x13c   : > { %5375 = vmatmul.mubr.bf16.gmra.mrb[12].mxu1 %v6705_v38  ;;  %v3305_v38 = vor.u32 %v3304_v23, %v3300_v13  ;;  %v3447_v13 = vrot.slane %v6888_v39, 1  ;;  %v3448_v23 = vrot.slane %v6894_v29, 1 }
 0x13d   : > { %5394 = vmatprep.mubr.bf16.mxu1 %v3425_v22  ;;  %v3340_v22 = vrot.slane %v3338_v43, 1  ;;  %v3459_v43 = vrot.slane %v6952_v35, 1 }
 0x13e   : > { %v3310_v55 = vsel %vm1256_vm10, %v3305_v38, %v3309_v10  ;;  %v3345_v38 = vrot.slane %v3343_v8, 1 }
 0x13f   : > { %3752 = vmatmul.mubr.bf16.gmra.mrb[100].mxu0 %v6844_v40  ;;  %v3333_v40 = vrot.slane %v3331_v5, 1  ;;  %v3341_v59 = vor.u32 %v3340_v22, %v3336_v11 }
 0x140   : > { %3759 = vmatprep.mubr.bf16.mxu0 %v3298_v36 }
 0x141   : > { %v3334_v3 = vsel %vm1256_vm10, %v3329_v54, %v3333_v40  ;;  %v3364_v54 = vrot.slane %v3362_v33, 1  ;;  %v6968_v40 = vld [vmem:[#allocation2 + $0xb4] sm:$0xff]  }
 0x144   : > { %5395 = vmatmul.mubr.bf16.vlgmr.msra.gmra.mrb[80].mxu1 %v3428_v46  ;;  %v3449_v46 = vsel %vm1465_vm9, %v3447_v13, %v3448_v23 }
 0x145   : > { %5398 = vmatprep.mubr.bf16.mxu1 %v3431_v42 }
 0x146   : > { %v4902_v30 = vpop.f32.mrb[8].mxu0 }
 0x147   : > { %v4903_v49 = vpop.f32.mrb[9].mxu0  ;;  %3760 = vmatmul.mubr.bf16.gmra.mrb[104].mxu0 %v6858_v34  ;;  %v3444_v34 = vrot.slane %v6872_v14, 1 }
 0x148   : > { %v6908_v1 = vadd.f32 %v4903_v49, %v4902_v30  ;;  %v4905_v61 = vpop.f32.mrb[10].mxu0  ;;  %3767 = vmatprep.mubr.bf16.mxu0 %v3310_v55  ;;  %v3352_v55 = vrot.slane %v3350_v25, 1  ;;  %v3346_v30 = vsel %vm1256_vm10, %v3341_v59, %v3345_v38  ;;  %v3454_v49 = vrot.slane %v5768_v45, 1 }
 0x149   : > { %v4906_v17 = vpop.f32.mrb[11].mxu0  ;;  %v3374_v59 = vshll.u32 %v6968_v40, 16 }
 0x14a   : > { %v6912_v15 = vadd.f32 %v4906_v17, %v4905_v61 }
 0x14b   : > { %v3376_v56 = vrot.slane %v3374_v59, 1 }
 0x14c   : > { %5399 = vmatmul.mubr.bf16.gmra.mrb[84].mxu1 %v3434_v41 }
 0x14d   : > { %5402 = vmatprep.mubr.bf16.mxu1 %v3437_v58  ;;  %v5772_v58 = vld [vmem:[#allocation2 + $0xb0] ss:$0 sps:$4 sm:$0x11]  }
 0x14e   : > { %v3367_v31 = vshll.u32 %v5772_v58, 16 }
 0x14f   : > { %3768 = vmatmul.mubr.bf16.gmra.mrb[108].mxu0 %v6872_v14  ;;  %v3446_v14 = vsel %vm1465_vm9, %v3444_v34, %v3445_v48 }
 0x150   : > { %3775 = vmatprep.mubr.bf16.mxu0 %v3322_v57  ;;  %v3455_v57 = vsel %vm1465_vm9, %v3453_v47, %v3454_v49 }
 0x154   : > { %5403 = vmatmul.mubr.bf16.gmra.mrb[88].mxu1 %v3440_v63  ;;  %v3457_v63 = vrot.slane %v5770_v0, 1  ;;  %v3369_v0 = vrot.slane %v3367_v31, 1 }
 0x155   : > { %5406 = vmatprep.mubr.bf16.mxu1 %v3443_v9  ;;  %v3460_v9 = vrot.slane %v5772_v58, 1 }
 0x157   : > { %v5026_v27 = vpop.f32.mrb[16].mxu1  ;;  %3776 = vmatmul.mubr.bf16.gmra.mrb[112].mxu0 %v6888_v39  ;;  %v3348_v39 = vshrl.u32 %v6933_v19, 16 }
 0x158   : > { %v5027_v51 = vpop.f32.mrb[17].mxu1  ;;  %3783 = vmatprep.mubr.bf16.mxu0 %v3334_v3  ;;  %v5774_v3 = vld [vmem:[#allocation2 + $0xbc] ss:$0 sps:$4 sm:$0x11]  }
 0x159   : > { %v6939_v16 = vadd.f32 %v5027_v51, %v5026_v27  ;;  %v5029_v36 = vpop.f32.mrb[18].mxu1  ;;  %v3353_v50 = vor.u32 %v3352_v55, %v3348_v39  ;;  %v3458_v51 = vsel %vm1465_vm9, %v3456_v20, %v3457_v63  ;;  %v5776_v39 = vld [vmem:[#allocation2 + $0xc8] ss:$0 sps:$4 sm:$0x11]   ;;  %v3462_v55 = vrot.slane %v6968_v40, 1 }
 0x15a   : > { %v5030_v10 = vpop.f32.mrb[19].mxu1  ;;  %v3463_v2 = vrot.slane %v5774_v3, 1 }
 0x15b   : > { %v6944_v52 = vadd.f32 %v5030_v10, %v5029_v36  ;;  %v3358_v45 = vsel %vm1256_vm10, %v3353_v50, %v3357_v6  ;;  %v6993_v50 = vld [vmem:[#allocation2 + $0xcc] sm:$0xff]   ;;  %v5778_v6 = vld [vmem:[#allocation2 + $0xd4] ss:$0 sps:$4 sm:$0x11]  }
 0x15c   : > { %v4908_v29 = vpop.f32.mrb[12].mxu0  ;;  %5407 = vmatmul.mubr.bf16.gmra.mrb[92].mxu1 %v3446_v14  ;;  %v3464_v58 = vsel %vm1465_vm9, %v3462_v55, %v3463_v2 }
 0x15d   : > { %v4909_v42 = vpop.f32.mrb[13].mxu0  ;;  %5410 = vmatprep.mubr.bf16.mxu1 %v3449_v46  ;;  %v3379_v46 = vshll.u32 %v5774_v3, 16 }
 0x15e   : > { %v6949_v32 = vadd.f32 %v4909_v42, %v4908_v29  ;;  %v4911_v28 = vpop.f32.mrb[14].mxu0  ;;  %v6983_v29 = vld [vmem:[#allocation2 + $0xc0] sm:$0xff]   ;;  %v3372_v42 = vshrl.u32 %v6968_v40, 16 }
 0x15f   : > { %v4912_v61 = vpop.f32.mrb[15].mxu0  ;;  %v5032_v41 = vpop.f32.mrb[20].mxu1  ;;  %3784 = vmatmul.mubr.bf16.gmra.mrb[116].mxu0 %v6902_v53  ;;  %v3360_v53 = vshrl.u32 %v6952_v35, 16 }
 0x160   : > { %v6956_v17 = vadd.f32 %v4912_v61, %v4911_v28  ;;  %v5033_v44 = vpop.f32.mrb[21].mxu1  ;;  %3791 = vmatprep.mubr.bf16.mxu0 %v3346_v30  ;;  %v3465_v28 = vrot.slane %v6983_v29, 1  ;;  %v3466_v30 = vrot.slane %v5776_v39, 1  ;;  %v3381_v61 = vrot.slane %v3379_v46, 1 }
 0x161   : > { %v6958_v26 = vadd.f32 %v5033_v44, %v5032_v41  ;;  %v5035_v21 = vpop.f32.mrb[22].mxu1  ;;  %v3365_v14 = vor.u32 %v3364_v54, %v3360_v53  ;;  %v3468_v54 = vrot.slane %v6993_v50, 1 }
 0x162   : > { %v5036_v24 = vpop.f32.mrb[23].mxu1  ;;  %v3467_v31 = vsel %vm1465_vm9, %v3465_v28, %v3466_v30  ;;  %v3403_v28 = vshll.u32 %v5778_v6, 16 }
 0x163   : > { %v6963_v5 = vadd.f32 %v5036_v24, %v5035_v21  ;;  %v3370_v7 = vsel %vm1256_vm10, %v3365_v14, %v3369_v0 }
 0x164   : > { %5411 = vmatmul.mubr.bf16.gmra.mrb[0].mxu1 %v3452_v18 }
 0x165   : > { %5414 = vmatprep.mubr.bf16.mxu1 %v3455_v57  ;;  %v3377_v57 = vor.u32 %v3376_v56, %v3372_v42 }
 0x167   : > { %v4914_v11 = vpop.f32.mrb[16].mxu0  ;;  %v5038_v8 = vpop.f32.mrb[24].mxu1  ;;  %3792 = vmatmul.mubr.bf16.gmra.mrb[120].mxu0 %v6922_v62  ;;  %v3461_v62 = vsel %vm1465_vm9, %v3459_v43, %v3460_v9  ;;  %v3469_v43 = vrot.slane %v5778_v6, 1  ;;  %v3382_v9 = vsel %vm1256_vm10, %v3377_v57, %v3381_v61 }
 0x168   : > { %v4915_v34 = vpop.f32.mrb[17].mxu0  ;;  %v5039_v48 = vpop.f32.mrb[25].mxu1  ;;  %3799 = vmatprep.mubr.bf16.mxu0 %v3358_v45 }
 0x169   : > { %v6972_v22 = vadd.f32 %v4915_v34, %v4914_v11  ;;  %v4917_v13 = vpop.f32.mrb[18].mxu0  ;;  %v6974_v23 = vadd.f32 %v5039_v48, %v5038_v8  ;;  %v5041_v27 = vpop.f32.mrb[26].mxu1  ;;  %v3384_v11 = vshrl.u32 %v6983_v29, 16  ;;  %v3391_v34 = vshll.u32 %v5776_v39, 16 }
 0x16a   : > { %v4918_v36 = vpop.f32.mrb[19].mxu0  ;;  %v5042_v25 = vpop.f32.mrb[27].mxu1  ;;  %v3470_v14 = vsel %vm1465_vm9, %v3468_v54, %v3469_v43  ;;  %v3398_v39 = vshll.u32 %v6993_v50, 16 }
 0x16b   : > { %v6979_v38 = vadd.f32 %v4918_v36, %v4917_v13  ;;  %v6981_v10 = vadd.f32 %v5042_v25, %v5041_v27 }
 0x16c   : > { %5415 = vmatmul.mubr.bf16.gmra.mrb[4].mxu1 %v3458_v51  ;;  %v3400_v56 = vrot.slane %v3398_v39, 1 }
 0x16d   : > { %5418 = vmatprep.mubr.bf16.mxu1 %v3461_v62  ;;  %v3393_v62 = vrot.slane %v3391_v34, 1 }
 0x16f   : > { %v5044_v47 = vpop.f32.mrb[28].mxu1  ;;  %3800 = vmatmul.mubr.bf16.gmra.mrb[124].mxu0 %v6933_v19  ;;  %v3386_v19 = vshll.u32 %v6983_v29, 16 }
 0x170   : > { %v5045_v41 = vpop.f32.mrb[29].mxu1  ;;  %3807 = vmatprep.mubr.bf16.mxu0 %v3370_v7  ;;  %v3396_v7 = vshrl.u32 %v6993_v50, 16 }
 0x171   : > { %v4920_v49 = vpop.f32.mrb[20].mxu0  ;;  %v6990_v21 = vadd.f32 %v5045_v41, %v5044_v47  ;;  %v5047_v18 = vpop.f32.mrb[30].mxu1  ;;  %v3388_v8 = vrot.slane %v3386_v19, 1 }
 0x172   : > { %v4921_v44 = vpop.f32.mrb[21].mxu0  ;;  %v5048_v53 = vpop.f32.mrb[31].mxu1  ;;  %v3401_v41 = vor.u32 %v3400_v56, %v3396_v7 }
 0x173   : > { %v6995_v24 = vadd.f32 %v4921_v44, %v4920_v49  ;;  %v4923_v33 = vpop.f32.mrb[22].mxu0  ;;  %v6999_v63 = vadd.f32 %v5048_v53, %v5047_v18  ;;  %v3389_v59 = vor.u32 %v3388_v8, %v3384_v11  ;;  %v3405_v44 = vrot.slane %v3403_v28, 1 }
 0x174   : > { %v4924_v20 = vpop.f32.mrb[23].mxu0  ;;  %5419 = vmatmul.mubr.bf16.gmra.mrb[8].mxu1 %v3464_v58 }
 0x175   : > { %v7001_v45 = vadd.f32 %v4924_v20, %v4923_v33  ;;  %5422 = vmatprep.mubr.bf16.mxu1 %v3467_v31  ;;  %v3394_v2 = vsel %vm1256_vm10, %v3389_v59, %v3393_v62  ;;  %v3406_v6 = vsel %vm1256_vm10, %v3401_v41, %v3405_v44 }
 0x177   : > { %v5050_v48 = vpop.f32.mrb[32].mxu1  ;;  %3808 = vmatmul.mubr.bf16.gmra.mrb[128].mxu0 %v6952_v35 }
 0x178   : > { %v5051_v13 = vpop.f32.mrb[33].mxu1  ;;  %3815 = vmatprep.mubr.bf16.mxu0 %v3382_v9 }
 0x179   : > { %v4926_v3 = vpop.f32.mrb[24].mxu0  ;;  %v7007_v51 = vadd.f32 %v5051_v13, %v5050_v48  ;;  %v5053_v36 = vpop.f32.mrb[34].mxu1 }
 0x17a   : > { %v4927_v27 = vpop.f32.mrb[25].mxu0  ;;  %v5054_v46 = vpop.f32.mrb[35].mxu1 }
 0x17b   : > { %v7010_v0 = vadd.f32 %v4927_v27, %v4926_v3  ;;  %v4929_v25 = vpop.f32.mrb[26].mxu0  ;;  %v7013_v55 = vadd.f32 %v5054_v46, %v5053_v36 }
 0x17c   : > { %v4930_v42 = vpop.f32.mrb[27].mxu0  ;;  %5423 = vmatmul.mubr.bf16.gmra.mrb[12].mxu1 %v3470_v14 }
 0x17d   : > { %v7015_v35 = vadd.f32 %v4930_v42, %v4929_v25 }
 0x17f   : > { %v5056_v30 = vpop.f32.mrb[36].mxu1  ;;  %3816 = vmatmul.mubr.bf16.gmra.mrb[132].mxu0 %v6968_v40 }
 0x180   : > { %v5057_v47 = vpop.f32.mrb[37].mxu1  ;;  %3823 = vmatprep.mubr.bf16.mxu0 %v3394_v2 }
 0x181   : > { %v7020_v49 = vadd.f32 %v5057_v47, %v5056_v30  ;;  %v5059_v61 = vpop.f32.mrb[38].mxu1 }
 0x182   : > { %v5060_v18 = vpop.f32.mrb[39].mxu1  ;;  %v4932_v58 = vpop.f32.mrb[28].mxu0 }
 0x183   : > { %v7022_v33 = vadd.f32 %v5060_v18, %v5059_v61  ;;  %v4933_v57 = vpop.f32.mrb[29].mxu0 }
 0x184   : > { %v7024_v53 = vadd.f32 %v4933_v57, %v4932_v58  ;;  %v4935_v19 = vpop.f32.mrb[30].mxu0 }
 0x185   : > { %v4936_v31 = vpop.f32.mrb[31].mxu0 }
 0x186   : > { %v7027_v20 = vadd.f32 %v4936_v31, %v4935_v19 }
 0x187   : > { %v5062_v40 = vpop.f32.mrb[40].mxu1  ;;  %3824 = vmatmul.mubr.bf16.gmra.mrb[136].mxu0 %v6983_v29 }
 0x188   : > { %v5063_v54 = vpop.f32.mrb[41].mxu1  ;;  %3831 = vmatprep.mubr.bf16.mxu0 %v3406_v6 }
 0x189   : > { %v7030_v43 = vadd.f32 %v5063_v54, %v5062_v40  ;;  %v5065_v9 = vpop.f32.mrb[42].mxu1 }
 0x18a   : > { %v5066_v11 = vpop.f32.mrb[43].mxu1  ;;  %v4938_v8 = vpop.f32.mrb[32].mxu0 }
 0x18b   : > { %v7032_v34 = vadd.f32 %v5066_v11, %v5065_v9  ;;  %v4939_v48 = vpop.f32.mrb[33].mxu0 }
 0x18c   : > { %v4940_v3 = vadd.f32 %v4939_v48, %v4938_v8  ;;  %v4941_v13 = vpop.f32.mrb[34].mxu0 }
 0x18d   : > { %v4942_v27 = vpop.f32.mrb[35].mxu0 }
 0x18e   : > { %v4943_v36 = vadd.f32 %v4942_v27, %v4941_v13 }
 0x18f   : > { %v5068_v14 = vpop.f32.mrb[44].mxu1  ;;  %3832 = vmatmul.mubr.bf16.gmra.mrb[140].mxu0 %v6993_v50 }
 0x190   : > { %v5069_v25 = vpop.f32.mrb[45].mxu1 }
 0x191   : > { %v7035_v59 = vadd.f32 %v5069_v25, %v5068_v14  ;;  %v5071_v29 = vpop.f32.mrb[46].mxu1 }
 0x192   : > { %v5072_v62 = vpop.f32.mrb[47].mxu1  ;;  %v4944_v46 = vpop.f32.mrb[36].mxu0 }
 0x193   : > { %v7037_v39 = vadd.f32 %v5072_v62, %v5071_v29  ;;  %v4945_v42 = vpop.f32.mrb[37].mxu0 }
 0x194   : > { %v4946_v2 = vadd.f32 %v4945_v42, %v4944_v46  ;;  %v4947_v7 = vpop.f32.mrb[38].mxu0 }
 0x195   : > { %v4948_v56 = vpop.f32.mrb[39].mxu0 }
 0x196   : > { %v4949_v28 = vadd.f32 %v4948_v56, %v4947_v7 }
 0x197   : > { %v5074_v30 = vpop.f32.mrb[48].mxu1 }
 0x198   : > { %v5075_v47 = vpop.f32.mrb[49].mxu1 }
 0x199   : > { %v5076_v61 = vadd.f32 %v5075_v47, %v5074_v30  ;;  %v5077_v41 = vpop.f32.mrb[50].mxu1 }
 0x19a   : > { %v5078_v44 = vpop.f32.mrb[51].mxu1  ;;  %v4950_v18 = vpop.f32.mrb[40].mxu0 }
 0x19b   : > { %v7039_v50 = vadd.f32 %v5076_v61, %v4940_v3  ;;  %v5079_v58 = vadd.f32 %v5078_v44, %v5077_v41  ;;  %v4951_v57 = vpop.f32.mrb[41].mxu0 }
 0x19c   : > { %v4952_v19 = vadd.f32 %v4951_v57, %v4950_v18  ;;  %v4953_v31 = vpop.f32.mrb[42].mxu0 }
 0x19d   : > { %v7041_v6 = vadd.f32 %v5079_v58, %v4943_v36  ;;  %v4954_v40 = vpop.f32.mrb[43].mxu0 }
 0x19e   : > { %v4955_v54 = vadd.f32 %v4954_v40, %v4953_v31 }
 0x19f   : > { %v5080_v9 = vpop.f32.mrb[52].mxu1 }
 0x1a0   : > { %v5081_v11 = vpop.f32.mrb[53].mxu1 }
 0x1a1   : > { %v5082_v8 = vadd.f32 %v5081_v11, %v5080_v9  ;;  %v5083_v48 = vpop.f32.mrb[54].mxu1 }
 0x1a2   : > { %v5084_v13 = vpop.f32.mrb[55].mxu1  ;;  %v4956_v27 = vpop.f32.mrb[44].mxu0 }
 0x1a3   : > { %v7043_v14 = vadd.f32 %v5082_v8, %v4946_v2  ;;  %v5085_v25 = vadd.f32 %v5084_v13, %v5083_v48  ;;  %v4957_v29 = vpop.f32.mrb[45].mxu0 }
 0x1a4   : > { %v4958_v3 = vadd.f32 %v4957_v29, %v4956_v27  ;;  %v4959_v62 = vpop.f32.mrb[46].mxu0 }
 0x1a5   : > { %v7045_v46 = vadd.f32 %v5085_v25, %v4949_v28  ;;  %v4960_v42 = vpop.f32.mrb[47].mxu0 }
 0x1a6   : > { %v4961_v7 = vadd.f32 %v4960_v42, %v4959_v62 }
 0x1a7   : > { %v5086_v36 = vpop.f32.mrb[56].mxu1 }
 0x1a8   : > { %v5087_v56 = vpop.f32.mrb[57].mxu1 }
 0x1a9   : > { %v5088_v30 = vadd.f32 %v5087_v56, %v5086_v36  ;;  %v5089_v47 = vpop.f32.mrb[58].mxu1 }
 0x1aa   : > { %v5090_v61 = vpop.f32.mrb[59].mxu1  ;;  %v4962_v41 = vpop.f32.mrb[48].mxu0 }
 0x1ab   : > { %v7047_v44 = vadd.f32 %v5088_v30, %v4952_v19  ;;  %v5091_v18 = vadd.f32 %v5090_v61, %v5089_v47  ;;  %v4963_v58 = vpop.f32.mrb[49].mxu0 }
 0x1ac   : > { %v4964_v2 = vadd.f32 %v4963_v58, %v4962_v41  ;;  %v4965_v57 = vpop.f32.mrb[50].mxu0 }
 0x1ad   : > { %v7049_v31 = vadd.f32 %v5091_v18, %v4955_v54  ;;  %v4966_v40 = vpop.f32.mrb[51].mxu0 }
 0x1ae   : > { %v4967_v9 = vadd.f32 %v4966_v40, %v4965_v57 }
 0x1af   : > { %v5092_v28 = vpop.f32.mrb[60].mxu1 }
 0x1b0   : > { %v5093_v11 = vpop.f32.mrb[61].mxu1 }
 0x1b1   : > { %v5094_v8 = vadd.f32 %v5093_v11, %v5092_v28  ;;  %v5095_v48 = vpop.f32.mrb[62].mxu1 }
 0x1b2   : > { %v5096_v13 = vpop.f32.mrb[63].mxu1  ;;  %v4968_v27 = vpop.f32.mrb[52].mxu0 }
 0x1b3   : > { %v7051_v25 = vadd.f32 %v5094_v8, %v4958_v3  ;;  %v5097_v29 = vadd.f32 %v5096_v13, %v5095_v48  ;;  %v4969_v62 = vpop.f32.mrb[53].mxu0 }
 0x1b4   : > { %v4970_v19 = vadd.f32 %v4969_v62, %v4968_v27  ;;  %v4971_v42 = vpop.f32.mrb[54].mxu0 }
 0x1b5   : > { %v7053_v36 = vadd.f32 %v5097_v29, %v4961_v7  ;;  %v4972_v56 = vpop.f32.mrb[55].mxu0 }
 0x1b6   : > { %v4973_v30 = vadd.f32 %v4972_v56, %v4971_v42 }
 0x1b7   : > { %7203 = vst [vmem:[#allocation3_spill] sm:$0xff] %v7053_v36  ;;  %v5098_v54 = vpop.f32.mrb[64].mxu1 }
 0x1b8   : > { %v5099_v47 = vpop.f32.mrb[65].mxu1 }
 0x1b9   : > { %v5100_v61 = vadd.f32 %v5099_v47, %v5098_v54  ;;  %v5101_v41 = vpop.f32.mrb[66].mxu1 }
 0x1ba   : > { %v5102_v18 = vpop.f32.mrb[67].mxu1  ;;  %v4974_v58 = vpop.f32.mrb[56].mxu0 }
 0x1bb   : > { %v7055_v57 = vadd.f32 %v5100_v61, %v4964_v2  ;;  %v5103_v40 = vadd.f32 %v5102_v18, %v5101_v41  ;;  %v4975_v28 = vpop.f32.mrb[57].mxu0 }
 0x1bc   : > { %v4976_v3 = vadd.f32 %v4975_v28, %v4974_v58  ;;  %v4977_v11 = vpop.f32.mrb[58].mxu0 }
 0x1bd   : > { %v7057_v8 = vadd.f32 %v5103_v40, %v4967_v9  ;;  %v4978_v48 = vpop.f32.mrb[59].mxu0 }
 0x1be   : > { %v4979_v13 = vadd.f32 %v4978_v48, %v4977_v11 }
 0x1bf   : > { %7204 = vst [vmem:[#allocation4_spill] sm:$0xff] %v7057_v8  ;;  %v5104_v7 = vpop.f32.mrb[68].mxu1 }
 0x1c0   : > { %v5105_v27 = vpop.f32.mrb[69].mxu1 }
 0x1c1   : > { %v5106_v29 = vadd.f32 %v5105_v27, %v5104_v7  ;;  %v5107_v62 = vpop.f32.mrb[70].mxu1 }
 0x1c2   : > { %v5108_v42 = vpop.f32.mrb[71].mxu1  ;;  %v4980_v56 = vpop.f32.mrb[60].mxu0 }
 0x1c3   : > { %v7059_v54 = vadd.f32 %v5106_v29, %v4970_v19  ;;  %v5109_v47 = vadd.f32 %v5108_v42, %v5107_v62  ;;  %v4981_v36 = vpop.f32.mrb[61].mxu0 }
 0x1c4   : > { %v4982_v2 = vadd.f32 %v4981_v36, %v4980_v56  ;;  %v4983_v61 = vpop.f32.mrb[62].mxu0 }
 0x1c5   : > { %v7061_v41 = vadd.f32 %v5109_v47, %v4973_v30  ;;  %v4984_v18 = vpop.f32.mrb[63].mxu0 }
 0x1c6   : > { %v4985_v58 = vadd.f32 %v4984_v18, %v4983_v61 }
 0x1c7   : > { %v5110_v9 = vpop.f32.mrb[72].mxu1 }
 0x1c8   : > { %v5111_v40 = vpop.f32.mrb[73].mxu1 }
 0x1c9   : > { %v5112_v28 = vadd.f32 %v5111_v40, %v5110_v9  ;;  %v5113_v11 = vpop.f32.mrb[74].mxu1 }
 0x1ca   : > { %v5114_v48 = vpop.f32.mrb[75].mxu1  ;;  %v5300_v8 = vpop.f32.mrb[64].mxu0 }
 0x1cb   : > { %v7063_v7 = vadd.f32 %v5112_v28, %v4976_v3  ;;  %v5115_v27 = vadd.f32 %v5114_v48, %v5113_v11  ;;  %v2438_v19 = vadd.f32 %v5300_v8, %v6861_v60  ;;  %v2429_v29 = vpop.f32.mrb[65].mxu0 }
 0x1cc   : > { %v2430_v62 = vadd.f32 %v6834_v12, %v2429_v29  ;;  %v5301_v36 = vpop.f32.mrb[66].mxu0 }
 0x1cd   : > { %v7067_v42 = vadd.f32 %v5115_v27, %v4979_v13  ;;  %v7070_v30 = vadd.f32 %v6958_v26, %v2438_v19  ;;  %v2441_v56 = vadd.f32 %v5301_v36, %v6866_v4  ;;  %v2432_v47 = vpop.f32.mrb[67].mxu0 }
 0x1ce   : > { %v2735_v61 = vadd.f32 %v6939_v16, %v2430_v62  ;;  %v2433_v3 = vadd.f32 %v6837_v37, %v2432_v47 }
 0x1cf   : > { %v5116_v18 = vpop.f32.mrb[76].mxu1  ;;  %v2746_v9 = vadd.f32 %v6963_v5, %v2441_v56 }
 0x1d0   : > { %v5117_v60 = vpop.f32.mrb[77].mxu1  ;;  %v2738_v8 = vadd.f32 %v6944_v52, %v2433_v3 }
 0x1d1   : > { %v5118_v12 = vadd.f32 %v5117_v60, %v5116_v18  ;;  %v5119_v40 = vpop.f32.mrb[78].mxu1 }
 0x1d2   : > { %v5120_v13 = vpop.f32.mrb[79].mxu1  ;;  %v5304_v28 = vpop.f32.mrb[68].mxu0 }
 0x1d3   : > { %v7077_v11 = vadd.f32 %v5118_v12, %v4982_v2  ;;  %v5121_v26 = vadd.f32 %v5120_v13, %v5119_v40  ;;  %v2454_v4 = vadd.f32 %v5304_v28, %v6949_v32  ;;  %v2445_v48 = vpop.f32.mrb[69].mxu0 }
 0x1d4   : > { %v2446_v16 = vadd.f32 %v6908_v1, %v2445_v48  ;;  %v5305_v27 = vpop.f32.mrb[70].mxu0 }
 0x1d5   : > { %v7081_v37 = vadd.f32 %v5121_v26, %v4985_v58  ;;  %v2759_v5 = vadd.f32 %v6990_v21, %v2454_v4  ;;  %v2457_v19 = vadd.f32 %v5305_v27, %v6956_v17  ;;  %v2448_v52 = vpop.f32.mrb[71].mxu0 }
 0x1d6   : > { %v2751_v29 = vadd.f32 %v6974_v23, %v2446_v16  ;;  %v2449_v62 = vadd.f32 %v6912_v15, %v2448_v52 }
 0x1d7   : > { %v2762_v2 = vadd.f32 %v6999_v63, %v2457_v19 }
 0x1d8   : > { %v2754_v36 = vadd.f32 %v6981_v10, %v2449_v62 }
 0x1da   : > { %v5308_v32 = vpop.f32.mrb[72].mxu0 }
 0x1db   : > { %v2470_v56 = vadd.f32 %v5308_v32, %v6995_v24  ;;  %v2461_v1 = vpop.f32.mrb[73].mxu0 }
 0x1dc   : > { %v2462_v58 = vadd.f32 %v6972_v22, %v2461_v1  ;;  %v5309_v47 = vpop.f32.mrb[74].mxu0 }
 0x1dd   : > { %v7092_v21 = vadd.f32 %v7020_v49, %v2470_v56  ;;  %v2473_v17 = vadd.f32 %v5309_v47, %v7001_v45  ;;  %v2464_v3 = vpop.f32.mrb[75].mxu0 }
 0x1de   : > { %v2767_v23 = vadd.f32 %v7007_v51, %v2462_v58  ;;  %v2465_v15 = vadd.f32 %v6979_v38, %v2464_v3 }
 0x1df   : > { %v7098_v63 = vadd.f32 %v7022_v33, %v2473_v17 }
 0x1e0   : > { %v2770_v10 = vadd.f32 %v7013_v55, %v2465_v15 }
 0x1e2   : > { %v5312_v24 = vpop.f32.mrb[76].mxu0 }
 0x1e3   : > { %v2486_v18 = vadd.f32 %v5312_v24, %v7024_v53  ;;  %v2477_v22 = vpop.f32.mrb[77].mxu0 }
 0x1e4   : > { %v2478_v60 = vadd.f32 %v7010_v0, %v2477_v22  ;;  %v5313_v49 = vpop.f32.mrb[78].mxu0 }
 0x1e5   : > { %v7104_v12 = vadd.f32 %v7035_v59, %v2486_v18  ;;  %v2489_v45 = vadd.f32 %v5313_v49, %v7027_v20  ;;  %v2480_v51 = vpop.f32.mrb[79].mxu0 }
 0x1e6   : > { %v7108_v38 = vadd.f32 %v7030_v43, %v2478_v60  ;;  %v2481_v33 = vadd.f32 %v7015_v35, %v2480_v51 }
 0x1e7   : > { %v7112_v55 = vadd.f32 %v7037_v39, %v2489_v45 }
 0x1e8   : > { %v7115_v53 = vadd.f32 %v7032_v34, %v2481_v33 }
 0x1ea   : > { %v5162_v40 = vpop.f32.mrb[80].mxu0 }
 0x1eb   : > { %v5163_v0 = vpop.f32.mrb[81].mxu0 }
 0x1ec   : > { %v5164_v13 = vadd.f32 %v5163_v0, %v5162_v40  ;;  %v5165_v28 = vpop.f32.mrb[82].mxu0 }
 0x1ed   : > { %v5166_v59 = vpop.f32.mrb[83].mxu0 }
 0x1ee   : > { %v5167_v26 = vadd.f32 %v5166_v59, %v5165_v28  ;;  %v5448_v4 = vadd.f32 %v5164_v13, %v2735_v61 }
 0x1f0   : > { %v5456_v20 = vadd.f32 %v5167_v26, %v2738_v8 }
 0x1f2   : > { %v5168_v48 = vpop.f32.mrb[84].mxu0 }
 0x1f3   : > { %v5169_v16 = vpop.f32.mrb[85].mxu0 }
 0x1f4   : > { %v5170_v43 = vadd.f32 %v5169_v16, %v5168_v48  ;;  %v5171_v27 = vpop.f32.mrb[86].mxu0 }
 0x1f5   : > { %v5172_v19 = vpop.f32.mrb[87].mxu0 }
 0x1f6   : > { %v5173_v35 = vadd.f32 %v5172_v19, %v5171_v27  ;;  %v5444_v39 = vadd.f32 %v5170_v43, %v7070_v30 }
 0x1f8   : > { %v5452_v52 = vadd.f32 %v5173_v35, %v2746_v9 }
 0x1fa   : > { %v5174_v62 = vpop.f32.mrb[88].mxu0 }
 0x1fb   : > { %v5175_v34 = vpop.f32.mrb[89].mxu0 }
 0x1fc   : > { %v5176_v32 = vadd.f32 %v5175_v34, %v5174_v62  ;;  %v5177_v56 = vpop.f32.mrb[90].mxu0 }
 0x1fd   : > { %v5178_v1 = vpop.f32.mrb[91].mxu0 }
 0x1fe   : > { %v5179_v58 = vadd.f32 %v5178_v1, %v5177_v56  ;;  %v5464_v47 = vadd.f32 %v5176_v32, %v2751_v29 }
 0x200   : > { %v7118_v17 = vadd.f32 %v5179_v58, %v2754_v36 }
 0x202   : > { %v5180_v61 = vpop.f32.mrb[92].mxu0 }
 0x203   : > { %v5181_v8 = vpop.f32.mrb[93].mxu0 }
 0x204   : > { %v5182_v3 = vadd.f32 %v5181_v8, %v5180_v61  ;;  %v5183_v15 = vpop.f32.mrb[94].mxu0 }
 0x205   : > { %v5184_v24 = vpop.f32.mrb[95].mxu0 }
 0x206   : > { %v5185_v18 = vadd.f32 %v5184_v24, %v5183_v15  ;;  %v5460_v22 = vadd.f32 %v5182_v3, %v2759_v5 }
 0x208   : > { %v5468_v60 = vadd.f32 %v5185_v18, %v2762_v2 }
 0x20a   : > { %v5186_v49 = vpop.f32.mrb[96].mxu0 }
 0x20b   : > { %v5187_v30 = vpop.f32.mrb[97].mxu0 }
 0x20c   : > { %v5188_v9 = vadd.f32 %v5187_v30, %v5186_v49  ;;  %v5189_v45 = vpop.f32.mrb[98].mxu0 }
 0x20d   : > { %v5190_v51 = vpop.f32.mrb[99].mxu0 }
 0x20e   : > { %v5191_v33 = vadd.f32 %v5190_v51, %v5189_v45  ;;  %v7120_v40 = vadd.f32 %v5188_v9, %v2767_v23 }
 0x210   : > { %v7122_v0 = vadd.f32 %v5191_v33, %v2770_v10 }
 0x212   : > { %v5192_v29 = vpop.f32.mrb[100].mxu0 }
 0x213   : > { %v5193_v36 = vpop.f32.mrb[101].mxu0 }
 0x214   : > { %v5194_v13 = vadd.f32 %v5193_v36, %v5192_v29  ;;  %v5195_v28 = vpop.f32.mrb[102].mxu0 }
 0x215   : > { %v5196_v59 = vpop.f32.mrb[103].mxu0 }
 0x216   : > { %v5197_v26 = vadd.f32 %v5196_v59, %v5195_v28  ;;  %v5476_v5 = vadd.f32 %v5194_v13, %v7092_v21 }
 0x217   : > { %v5396_v48 = vpop.f32.mrb[80].mxu1 }
 0x218   : > { %v5445_v2 = vadd.f32 %v5444_v39, %v5396_v48  ;;  %v3874_v16 = vpop.f32.mrb[81].mxu1  ;;  %v7126_v19 = vadd.f32 %v5197_v26, %v7098_v63 }
 0x219   : > { %v5449_v43 = vadd.f32 %v5448_v4, %v3874_v16  ;;  %v5397_v27 = vpop.f32.mrb[82].mxu1 }
 0x21a   : > { %v5453_v23 = vadd.f32 %v5452_v52, %v5397_v27  ;;  %v3877_v10 = vpop.f32.mrb[83].mxu1  ;;  %v5198_v35 = vpop.f32.mrb[104].mxu0  ;;  %v4232_v58 = vmul.f32 %v5445_v2, %v5445_v2 }
 0x21b   : > { %v5457_v62 = vadd.f32 %v5456_v20, %v3877_v10  ;;  %v5199_v21 = vpop.f32.mrb[105].mxu0  ;;  %v4230_v39 = vmul.f32 %v5449_v43, %v5449_v43 }
 0x21c   : > { %v4772_v34 = vpack.c.bf16 %v5453_v23, %v5445_v2  ;;  %v5200_v4 = vadd.f32 %v5199_v21, %v5198_v35  ;;  %v5201_v32 = vpop.f32.mrb[106].mxu0  ;;  %v4233_v20 = vmul.f32 %v5453_v23, %v5453_v23 }
 0x21d   : > { %v4767_v56 = vpack.c.bf16 %v5457_v62, %v5449_v43  ;;  %v4193_v63 = vadd.f32 %v5457_v62, %v5449_v43  ;;  %v4231_v1 = vmul.f32 %v5457_v62, %v5457_v62  ;;  %v5202_v52 = vpop.f32.mrb[107].mxu0 }
 0x21e   : > { %4859 = vst [vmem:[%s7133_s8 + $0x8] sm:$0xff] %v4772_v34   ;;  %v5203_v61 = vadd.f32 %v5202_v52, %v5201_v32  ;;  %v7138_v24 = vadd.f32 %v5200_v4, %v7108_v38 }
 0x21f   : > { %4768 = vst [vmem:[%s7133_s8] sm:$0xff] %v4767_v56   ;;  %v4194_v8 = vadd.f32 %v5445_v2, %v4193_v63  ;;  %v4262_v3 = vadd.f32 %v4231_v1, %v4230_v39  ;;  %v5400_v15 = vpop.f32.mrb[84].mxu1 }
 0x220   : > { %v5461_v18 = vadd.f32 %v5460_v22, %v5400_v15  ;;  %v3890_v49 = vpop.f32.mrb[85].mxu1  ;;  %v7141_v33 = vadd.f32 %v5203_v61, %v7115_v53 }
 0x221   : > { %v4263_v30 = vadd.f32 %v4262_v3, %v4232_v58  ;;  %v5465_v9 = vadd.f32 %v5464_v47, %v3890_v49  ;;  %v4195_v45 = vadd.f32 %v5453_v23, %v4194_v8  ;;  %v5401_v51 = vpop.f32.mrb[86].mxu1 }
 0x222   : > { %v5469_v29 = vadd.f32 %v5468_v60, %v5401_v51  ;;  %v3893_v36 = vpop.f32.mrb[87].mxu1  ;;  %v5204_v13 = vpop.f32.mrb[108].mxu0  ;;  %v4236_v21 = vmul.f32 %v5461_v18, %v5461_v18 }
 0x223   : > { %v4196_v28 = vadd.f32 %v5465_v9, %v4195_v45  ;;  %v4234_v59 = vmul.f32 %v5465_v9, %v5465_v9  ;;  %v4264_v26 = vadd.f32 %v4263_v30, %v4233_v20  ;;  %v5473_v38 = vadd.f32 %v7118_v17, %v3893_v36  ;;  %v5205_v48 = vpop.f32.mrb[109].mxu0 }
 0x224   : > { %v4782_v22 = vpack.c.bf16 %v5469_v29, %v5461_v18  ;;  %v5206_v2 = vadd.f32 %v5205_v48, %v5204_v13  ;;  %v5207_v16 = vpop.f32.mrb[110].mxu0  ;;  %v4237_v1 = vmul.f32 %v5469_v29, %v5469_v29 }
 0x225   : > { %v4265_v47 = vadd.f32 %v4264_v26, %v4234_v59  ;;  %v4777_v43 = vpack.c.bf16 %v5473_v38, %v5465_v9  ;;  %v4197_v27 = vadd.f32 %v5473_v38, %v4196_v28  ;;  %v5208_v23 = vpop.f32.mrb[111].mxu0  ;;  %v4235_v53 = vmul.f32 %v5473_v38, %v5473_v38 }
 0x226   : > { %4861 = vst [vmem:[%s7133_s8 + $0x18] sm:$0xff] %v4782_v22   ;;  %v5209_v10 = vadd.f32 %v5208_v23, %v5207_v16  ;;  %v5492_v62 = vadd.f32 %v5206_v2, %v7104_v12 }
 0x227   : > { %4860 = vst [vmem:[%s7133_s8 + $0x10] sm:$0xff] %v4777_v43   ;;  %v4198_v60 = vadd.f32 %v5461_v18, %v4197_v27  ;;  %v5404_v35 = vpop.f32.mrb[88].mxu1  ;;  %v4266_v39 = vadd.f32 %v4265_v47, %v4235_v53 }
 0x228   : > { %v5477_v34 = vadd.f32 %v5476_v5, %v5404_v35  ;;  %v3906_v17 = vpop.f32.mrb[89].mxu1  ;;  %v5500_v63 = vadd.f32 %v5209_v10, %v7112_v55 }
 0x229   : > { %v5481_v4 = vadd.f32 %v7120_v40, %v3906_v17  ;;  %v4199_v32 = vadd.f32 %v5469_v29, %v4198_v60  ;;  %v5405_v56 = vpop.f32.mrb[90].mxu1  ;;  %v4267_v52 = vadd.f32 %v4266_v39, %v4236_v21 }
 0x22a   : > { %v5485_v58 = vadd.f32 %v7126_v19, %v5405_v56  ;;  %v3909_v61 = vpop.f32.mrb[91].mxu1  ;;  %v5210_v8 = vpop.f32.mrb[112].mxu0  ;;  %v4240_v28 = vmul.f32 %v5477_v34, %v5477_v34 }
 0x22b   : > { %v4200_v3 = vadd.f32 %v5481_v4, %v4199_v32  ;;  %v4238_v12 = vmul.f32 %v5481_v4, %v5481_v4  ;;  %v5489_v15 = vadd.f32 %v7122_v0, %v3909_v61  ;;  %v5211_v5 = vpop.f32.mrb[113].mxu0  ;;  %v4268_v20 = vadd.f32 %v4267_v52, %v4237_v1 }
 0x22c   : > { %v4792_v18 = vpack.c.bf16 %v5485_v58, %v5477_v34  ;;  %v5212_v40 = vadd.f32 %v5211_v5, %v5210_v8  ;;  %v5213_v49 = vpop.f32.mrb[114].mxu0  ;;  %v4241_v16 = vmul.f32 %v5485_v58, %v5485_v58 }
 0x22d   : > { %v4787_v30 = vpack.c.bf16 %v5489_v15, %v5481_v4  ;;  %v4201_v9 = vadd.f32 %v5489_v15, %v4200_v3  ;;  %v4239_v55 = vmul.f32 %v5489_v15, %v5489_v15  ;;  %v5214_v45 = vpop.f32.mrb[115].mxu0  ;;  %v4269_v51 = vadd.f32 %v4268_v20, %v4238_v12 }
 0x22e   : > { %4863 = vst [vmem:[%s7133_s8 + $0x28] sm:$0xff] %v4792_v18   ;;  %v5215_v19 = vadd.f32 %v5214_v45, %v5213_v49  ;;  %v5510_v13 = vadd.f32 %v7039_v50, %v5212_v40 }
 0x22f   : > { %4862 = vst [vmem:[%s7133_s8 + $0x20] sm:$0xff] %v4787_v30   ;;  %v4202_v29 = vadd.f32 %v5477_v34, %v4201_v9  ;;  %v5408_v36 = vpop.f32.mrb[92].mxu1  ;;  %v4270_v59 = vadd.f32 %v4269_v51, %v4239_v55 }
 0x230   : > { %v5493_v0 = vadd.f32 %v5492_v62, %v5408_v36  ;;  %v3922_v26 = vpop.f32.mrb[93].mxu1  ;;  %v5516_v2 = vadd.f32 %v7041_v6, %v5215_v19 }
 0x231   : > { %v5497_v38 = vadd.f32 %v7138_v24, %v3922_v26  ;;  %v4203_v48 = vadd.f32 %v5485_v58, %v4202_v29  ;;  %v5409_v22 = vpop.f32.mrb[94].mxu1  ;;  %v4271_v47 = vadd.f32 %v4270_v59, %v4240_v28 }
 0x232   : > { %v5501_v43 = vadd.f32 %v5500_v63, %v5409_v22  ;;  %v3925_v27 = vpop.f32.mrb[95].mxu1  ;;  %v5216_v23 = vpop.f32.mrb[116].mxu0  ;;  %v4244_v52 = vmul.f32 %v5493_v0, %v5493_v0 }
 0x233   : > { %v4204_v53 = vadd.f32 %v5497_v38, %v4203_v48  ;;  %v4242_v10 = vmul.f32 %v5497_v38, %v5497_v38  ;;  %v5505_v50 = vadd.f32 %v7141_v33, %v3925_v27  ;;  %v5217_v60 = vpop.f32.mrb[117].mxu0  ;;  %v4272_v35 = vadd.f32 %v4271_v47, %v4241_v16 }
 0x234   : > { %v4802_v62 = vpack.c.bf16 %v5501_v43, %v5493_v0  ;;  %v5218_v21 = vadd.f32 %v5217_v60, %v5216_v23  ;;  %v5219_v24 = vpop.f32.mrb[118].mxu0  ;;  %v4245_v5 = vmul.f32 %v5501_v43, %v5501_v43 }
 0x235   : > { %v4797_v39 = vpack.c.bf16 %v5505_v50, %v5497_v38  ;;  %v4205_v34 = vadd.f32 %v5505_v50, %v4204_v53  ;;  %v4243_v17 = vmul.f32 %v5505_v50, %v5505_v50  ;;  %v5220_v6 = vpop.f32.mrb[119].mxu0  ;;  %v4273_v4 = vadd.f32 %v4272_v35, %v4242_v10 }
 0x236   : > { %4865 = vst [vmem:[%s7133_s8 + $0x38] sm:$0xff] %v4802_v62   ;;  %v5221_v32 = vadd.f32 %v5220_v6, %v5219_v24  ;;  %v5507_v1 = vadd.f32 %v7043_v14, %v5218_v21 }
 0x237   : > { %4864 = vst [vmem:[%s7133_s8 + $0x30] sm:$0xff] %v4797_v39   ;;  %v4206_v56 = vadd.f32 %v5493_v0, %v4205_v34  ;;  %v5412_v63 = vpop.f32.mrb[0].mxu1  ;;  %v4274_v58 = vadd.f32 %v4273_v4, %v4243_v17 }
 0x238   : > { %v3938_v33 = vpop.f32.mrb[1].mxu1  ;;  %v5508_v61 = vadd.f32 %v5507_v1, %v5412_v63  ;;  %v5513_v15 = vadd.f32 %v7045_v46, %v5221_v32 }
 0x239   : > { %v5511_v8 = vadd.f32 %v5510_v13, %v3938_v33  ;;  %v4207_v3 = vadd.f32 %v5501_v43, %v4206_v56  ;;  %v5413_v12 = vpop.f32.mrb[2].mxu1  ;;  %v4275_v20 = vadd.f32 %v4274_v58, %v4244_v52 }
 0x23a   : > { %v3941_v18 = vpop.f32.mrb[3].mxu1  ;;  %v5222_v40 = vpop.f32.mrb[120].mxu0  ;;  %v5514_v9 = vadd.f32 %v5513_v15, %v5413_v12  ;;  %v4248_v48 = vmul.f32 %v5508_v61, %v5508_v61 }
 0x23b   : > { %v4208_v49 = vadd.f32 %v5511_v8, %v4207_v3  ;;  %v4246_v30 = vmul.f32 %v5511_v8, %v5511_v8  ;;  %v5223_v55 = vpop.f32.mrb[121].mxu0  ;;  %v4276_v14 = vadd.f32 %v4275_v20, %v4245_v5  ;;  %v5517_v45 = vadd.f32 %v5516_v2, %v3941_v18 }
 0x23c   : > { %v5224_v51 = vadd.f32 %v5223_v55, %v5222_v40  ;;  %v5225_v19 = vpop.f32.mrb[122].mxu0  ;;  %v4812_v29 = vpack.c.bf16 %v5514_v9, %v5508_v61  ;;  %v4249_v23 = vmul.f32 %v5514_v9, %v5514_v9 }
 0x23d   : > { %v5226_v36 = vpop.f32.mrb[123].mxu0  ;;  %v4277_v13 = vadd.f32 %v4276_v14, %v4246_v30  ;;  %v4807_v28 = vpack.c.bf16 %v5517_v45, %v5511_v8  ;;  %v4209_v59 = vadd.f32 %v5517_v45, %v4208_v49  ;;  %v4247_v46 = vmul.f32 %v5517_v45, %v5517_v45 }
 0x23e   : > { %v5227_v0 = vadd.f32 %v5226_v36, %v5225_v19  ;;  %4867 = vst [vmem:[%s7133_s8 + $0x48] sm:$0xff] %v4812_v29   ;;  %v5522_v38 = vadd.f32 %v7047_v44, %v5224_v51 }
 0x23f   : > { %v5416_v26 = vpop.f32.mrb[4].mxu1  ;;  %4866 = vst [vmem:[%s7133_s8 + $0x40] sm:$0xff] %v4807_v28   ;;  %v4210_v22 = vadd.f32 %v5508_v61, %v4209_v59  ;;  %v4278_v16 = vadd.f32 %v4277_v13, %v4247_v46  ;;  %v7205_v61 = vld [vmem:[#allocation3_spill] sm:$0xff]  ;;  %v7206_v59 = vld [vmem:[#allocation4_spill] sm:$0xff] }
 0x240   : > { %v3954_v47 = vpop.f32.mrb[5].mxu1  ;;  %v5528_v27 = vadd.f32 %v7049_v31, %v5227_v0 }
 0x241   : > { %v5523_v43 = vadd.f32 %v5522_v38, %v3954_v47  ;;  %v5417_v2 = vpop.f32.mrb[6].mxu1  ;;  %v4279_v53 = vadd.f32 %v4278_v16, %v4248_v48  ;;  %v4211_v10 = vadd.f32 %v5514_v9, %v4210_v22 }
 0x242   : > { %v3957_v50 = vpop.f32.mrb[7].mxu1  ;;  %v5228_v60 = vpop.f32.mrb[124].mxu0 }
 0x243   : > { %v4250_v35 = vmul.f32 %v5523_v43, %v5523_v43  ;;  %v5529_v62 = vadd.f32 %v5528_v27, %v3957_v50  ;;  %v5229_v21 = vpop.f32.mrb[125].mxu0  ;;  %v4212_v24 = vadd.f32 %v5523_v43, %v4211_v10  ;;  %v4280_v44 = vadd.f32 %v4279_v53, %v4249_v23 }
 0x244   : > { %v5230_v39 = vadd.f32 %v5229_v21, %v5228_v60  ;;  %v5231_v34 = vpop.f32.mrb[126].mxu0 }
 0x245   : > { %v4817_v17 = vpack.c.bf16 %v5529_v62, %v5523_v43  ;;  %v4251_v6 = vmul.f32 %v5529_v62, %v5529_v62  ;;  %v5232_v4 = vpop.f32.mrb[127].mxu0  ;;  %v4281_v32 = vadd.f32 %v4280_v44, %v4250_v35  ;;  %v4213_v56 = vadd.f32 %v5529_v62, %v4212_v24 }
 0x246   : > { %v5233_v63 = vadd.f32 %v5232_v4, %v5231_v34  ;;  %v5519_v31 = vadd.f32 %v7051_v25, %v5230_v39 }
 0x247   : > { %4868 = vst [vmem:[%s7133_s8 + $0x50] sm:$0xff] %v4817_v17   ;;  %v5420_v1 = vpop.f32.mrb[8].mxu1  ;;  %v4282_v52 = vadd.f32 %v4281_v32, %v4251_v6 }
 0x248   : > { %v3970_v58 = vpop.f32.mrb[9].mxu1  ;;  %v5520_v33 = vadd.f32 %v5519_v31, %v5416_v26  ;;  %v5525_v8 = vadd.f32 %v7205_v61, %v5233_v63 }
 0x249   : > { %v5421_v3 = vpop.f32.mrb[10].mxu1 }
 0x24a   : > { %v3973_v12 = vpop.f32.mrb[11].mxu1  ;;  %v5234_v15 = vpop.f32.mrb[128].mxu0  ;;  %v4252_v5 = vmul.f32 %v5520_v33, %v5520_v33  ;;  %v5526_v20 = vadd.f32 %v5525_v8, %v5417_v2  ;;  %v4214_v18 = vadd.f32 %v5520_v33, %v4213_v56 }
 0x24b   : > { %v5235_v40 = vpop.f32.mrb[129].mxu0 }
 0x24c   : > { %v5236_v49 = vadd.f32 %v5235_v40, %v5234_v15  ;;  %v5237_v30 = vpop.f32.mrb[130].mxu0  ;;  %v4822_v9 = vpack.c.bf16 %v5526_v20, %v5520_v33  ;;  %v4253_v55 = vmul.f32 %v5526_v20, %v5526_v20  ;;  %v4283_v25 = vadd.f32 %v4282_v52, %v4252_v5 }
 0x24d   : > { %v5238_v14 = vpop.f32.mrb[131].mxu0  ;;  %v4215_v45 = vadd.f32 %v5526_v20, %v4214_v18 }
 0x24e   : > { %v5239_v51 = vadd.f32 %v5238_v14, %v5237_v30  ;;  %4869 = vst [vmem:[%s7133_s8 + $0x58] sm:$0xff] %v4822_v9   ;;  %v5534_v19 = vadd.f32 %v7055_v57, %v5236_v49  ;;  %v4284_v29 = vadd.f32 %v4283_v25, %v4253_v55 }
 0x24f   : > { %v5424_v36 = vpop.f32.mrb[12].mxu1 }
 0x250   : > { %v3986_v13 = vpop.f32.mrb[13].mxu1  ;;  %v5535_v28 = vadd.f32 %v5534_v19, %v3970_v58  ;;  %v5540_v46 = vadd.f32 %v7206_v59, %v5239_v51 }
 0x251   : > { %v5425_v0 = vpop.f32.mrb[14].mxu1 }
 0x252   : > { %v3989_v26 = vpop.f32.mrb[15].mxu1  ;;  %v5240_v38 = vpop.f32.mrb[132].mxu0  ;;  %v4216_v48 = vadd.f32 %v5535_v28, %v4215_v45  ;;  %v4254_v22 = vmul.f32 %v5535_v28, %v5535_v28  ;;  %v5541_v16 = vadd.f32 %v5540_v46, %v3973_v12 }
 0x253   : > { %v5241_v47 = vpop.f32.mrb[133].mxu0 }
 0x254   : > { %v5242_v43 = vadd.f32 %v5241_v47, %v5240_v38  ;;  %v5243_v2 = vpop.f32.mrb[134].mxu0  ;;  %v4285_v27 = vadd.f32 %v4284_v29, %v4254_v22  ;;  %v4827_v23 = vpack.c.bf16 %v5541_v16, %v5535_v28  ;;  %v4217_v53 = vadd.f32 %v5541_v16, %v4216_v48 }
 0x255   : > { %v5244_v57 = vpop.f32.mrb[135].mxu0  ;;  %v4255_v10 = vmul.f32 %v5541_v16, %v5541_v16 }
 0x256   : > { %v5245_v50 = vadd.f32 %v5244_v57, %v5243_v2  ;;  %v5531_v60 = vadd.f32 %v7059_v54, %v5242_v43  ;;  %4870 = vst [vmem:[%s7133_s8 + $0x60] sm:$0xff] %v4827_v23  }
 0x257   : > { %v4286_v35 = vadd.f32 %v4285_v27, %v4255_v10 }
 0x258   : > { %v5532_v62 = vadd.f32 %v5531_v60, %v5420_v1  ;;  %v5537_v21 = vadd.f32 %v7061_v41, %v5245_v50 }
 0x25a   : > { %v4256_v24 = vmul.f32 %v5532_v62, %v5532_v62  ;;  %v5538_v44 = vadd.f32 %v5537_v21, %v5421_v3  ;;  %v4218_v39 = vadd.f32 %v5532_v62, %v4217_v53  ;;  %v5246_v34 = vpop.f32.mrb[136].mxu0 }
 0x25b   : > { %v5247_v17 = vpop.f32.mrb[137].mxu0 }
 0x25c   : > { %v4832_v6 = vpack.c.bf16 %v5538_v44, %v5532_v62  ;;  %v4257_v4 = vmul.f32 %v5538_v44, %v5538_v44  ;;  %v4287_v32 = vadd.f32 %v4286_v35, %v4256_v24  ;;  %v5248_v56 = vadd.f32 %v5247_v17, %v5246_v34  ;;  %v5249_v63 = vpop.f32.mrb[138].mxu0 }
 0x25d   : > { %v5250_v31 = vpop.f32.mrb[139].mxu0  ;;  %v4219_v52 = vadd.f32 %v5538_v44, %v4218_v39 }
 0x25e   : > { %4871 = vst [vmem:[%s7133_s8 + $0x68] sm:$0xff] %v4832_v6   ;;  %v5251_v54 = vadd.f32 %v5250_v31, %v5249_v63  ;;  %v5546_v58 = vadd.f32 %v7063_v7, %v5248_v56  ;;  %v4288_v1 = vadd.f32 %v4287_v32, %v4257_v4 }
 0x260   : > { %v5547_v33 = vadd.f32 %v5546_v58, %v3986_v13  ;;  %v5552_v41 = vadd.f32 %v7067_v42, %v5251_v54 }
 0x262   : > { %v4220_v61 = vadd.f32 %v5547_v33, %v4219_v52  ;;  %v4258_v8 = vmul.f32 %v5547_v33, %v5547_v33  ;;  %v5553_v3 = vadd.f32 %v5552_v41, %v3989_v26  ;;  %v5252_v12 = vpop.f32.mrb[140].mxu0 }
 0x263   : > { %v5253_v15 = vpop.f32.mrb[141].mxu0 }
 0x264   : > { %v4289_v5 = vadd.f32 %v4288_v1, %v4258_v8  ;;  %v4837_v20 = vpack.c.bf16 %v5553_v3, %v5547_v33  ;;  %v4221_v18 = vadd.f32 %v5553_v3, %v4220_v61  ;;  %v4259_v40 = vmul.f32 %v5553_v3, %v5553_v3  ;;  %v5255_v49 = vpop.f32.mrb[142].mxu0 }
 0x265   : > { %v5254_v30 = vadd.f32 %v5253_v15, %v5252_v12  ;;  %v5256_v9 = vpop.f32.mrb[143].mxu0 }
 0x266   : > { %4872 = vst [vmem:[%s7133_s8 + $0x70] sm:$0xff] %v4837_v20   ;;  %v4290_v7 = vadd.f32 %v4289_v5, %v4259_v40  ;;  %v5257_v55 = vadd.f32 %v5256_v9, %v5255_v49 }
 0x267   : > { %v5543_v25 = vadd.f32 %v7077_v11, %v5254_v30 }
 0x268   : > { %v5549_v42 = vadd.f32 %v7081_v37, %v5257_v55 }
 0x269   : > { %v5544_v14 = vadd.f32 %v5543_v25, %v5424_v36 }
 0x26a   : > { %v5550_v45 = vadd.f32 %v5549_v42, %v5425_v0 }
 0x26b   : > { %v4222_v51 = vadd.f32 %v5544_v14, %v4221_v18  ;;  %v4260_v19 = vmul.f32 %v5544_v14, %v5544_v14 }
 0x26c   : > { %v4842_v29 = vpack.c.bf16 %v5550_v45, %v5544_v14  ;;  %v4261_v13 = vmul.f32 %v5550_v45, %v5550_v45 }
 0x26d   : > { %v4291_v28 = vadd.f32 %v4290_v7, %v4260_v19  ;;  %v4223_v59 = vadd.f32 %v5550_v45, %v4222_v51 }
 0x26e   : > { %4873 = vst [vmem:[%s7133_s8 + $0x78] sm:$0xff] %v4842_v29  }
 0x26f   : > { %v4224_v46 = vrot.slane %v4223_v59, 4  ;;  %v4292_v26 = vadd.f32 %v4291_v28, %v4261_v13 }
 0x271   : > { %v4225_v38 = vadd.f32 %v4224_v46, %v4223_v59  ;;  %v4293_v48 = vrot.slane %v4292_v26, 4 }
 0x273   : > { %v4226_v22 = vrot.slane %v4225_v38, 2  ;;  %v4294_v16 = vadd.f32 %v4293_v48, %v4292_v26 }
 0x275   : > { %v4227_v47 = vadd.f32 %v4226_v22, %v4225_v38  ;;  %v4295_v11 = vrot.slane %v4294_v16, 2 }
 0x277   : > { %v4228_v43 = vrot.slane %v4227_v47, 1  ;;  %v4296_v37 = vadd.f32 %v4295_v11, %v4294_v16 }
 0x279   : > { %v4297_v36 = vrot.slane %v4296_v37, 1  ;;  %v4229_v0 = vadd.f32 %v4228_v43, %v4227_v47 }
 0x27b   : > { %v4298_v2 = vadd.f32 %v4297_v36, %v4296_v37 }
 0x27d   : > { %v4300_v27 = vsel %vm434_vm0, %v4229_v0, %v4298_v2 }
 0x27e   : > { %4301 = vst [vmem:[%s235_s11] sm:$0x3] %v4300_v27 }
 0x27f PF: > { %s16_s18 = sadd.s32 1, %s5821_s18  }
 0x280   : > { %p13_p4 = scmp.ge.s32.totalorder %s16_s18, 4  }
 0x282   :  { %15 = sbr.rel (!%p13_p4) target bundleno = 1 (0x1), region = 81 }

</bundles_post_ra>
